<compile_context>
chip_gen: v7x
topology: tpu7x:2x2x1
jax: 0.10.0
libtpu: 0.0.40
codegen_flags: <defaults>
</compile_context>

<pallas_src>
import jax
import jax.numpy as jnp
from jax.experimental import pallas as pl
from jax.experimental.pallas import tpu as pltpu

B = 4        # batch (torch default is 64; small for the demo)
S = 32       # tokens after dropping the CLS token (fixed by BatchNorm1d(32))
D = 256      # hidden dim (fixed by Linear(256, 256) in projectHead)
N = B * S    # per-view token count
EPS = 1e-5   # BatchNorm eps (PyTorch default)


# --------------------------------------------------------------------------- #
# Single fused kernel: encoder(both views) -> heads -> decoder -> logits -> losses
# --------------------------------------------------------------------------- #
def _sae_fused_kernel(xcat_ref,
                      w_enc_ref, b_enc_ref,
                      w_dec_ref, b_dec_ref,
                      w_ph1_ref, b_ph1_ref, w_ph2_ref, b_ph2_ref,
                      w_th1_ref, b_th1_ref, w_th2_ref, b_th2_ref,
                      mask_ref, pool_ref,
                      res_ref):
    n = mask_ref.shape[0]          # B*S
    dn = w_enc_ref.shape[0]        # D
    bn = pool_ref.shape[0]         # B
    sn = n // bn                   # S

    def mm(a, w):
        # bf16 MXU inputs, f32 accumulation.
        return jnp.dot(a.astype(jnp.bfloat16), w.astype(jnp.bfloat16),
                       preferred_element_type=jnp.float32)

    # --- encoder & teacher share weights: one batched matmul over both views.
    x_cat = xcat_ref[...]                                   # (2n, dn) [low; high]
    enc = jnp.tanh(mm(x_cat, w_enc_ref[...]) + b_enc_ref[...])
    x_low = enc[:n, :]                                      # student features
    x_high = enc[n:, :]                                     # teacher features
    x_target = x_cat[n:, :]                                 # original x (MSE target)

    # --- projection head: Linear -> BN1d(sn) (train-mode batch stats,
    #     gamma=1, beta=0, biased var) -> ReLU -> Linear
    def head(feat, w1_ref, b1_ref, w2_ref, b2_ref):
        h = mm(feat, w1_ref[...]) + b1_ref[...]             # (n, dn)
        h3 = h.reshape(bn, sn, dn)
        cnt = float(bn * dn)
        mu = jnp.sum(jnp.sum(h3, axis=0), axis=-1, keepdims=True) / cnt     # (sn,1)
        cen = h3 - mu[None, :, :]
        var = jnp.sum(jnp.sum(cen * cen, axis=0), axis=-1, keepdims=True) / cnt
        hn = cen * jax.lax.rsqrt(var + EPS)[None, :, :]
        hr = jnp.maximum(hn, 0.0).reshape(n, dn)
        return mm(hr, w2_ref[...]) + b2_ref[...]

    x_low_ph = head(x_low, w_ph1_ref, b_ph1_ref, w_ph2_ref, b_ph2_ref)
    x_high_ph = head(x_high, w_th1_ref, b_th1_ref, w_th2_ref, b_th2_ref)

    # --- decoder (per-token Linear; CLS row dropped by isTrans slicing).
    output = mm(x_low, w_dec_ref[...]) + b_dec_ref[...]     # (n, dn)

    # --- reconstruct_loss = MSE(output, x)
    diff = output - x_target
    mse = jnp.sum(diff * diff) / float(n * dn)

    # --- logits = flat(x_low_ph) @ flat(x_high_ph).T  (B x B), computed without
    #     an in-kernel (S,D)->(S*D) reshape:  logits = P @ (G * M) @ P.T
    g = jax.lax.dot_general(x_low_ph.astype(jnp.bfloat16),
                            x_high_ph.astype(jnp.bfloat16),
                            dimension_numbers=(((1,), (1,)), ((), ())),
                            preferred_element_type=jnp.float32)          # (n, n)
    gm = g * mask_ref[...]                                               # same-token pairs
    pool = pool_ref[...]                                                 # (bn, n), 0/1
    t = jax.lax.dot_general(gm, pool, (((1,), (1,)), ((), ())),
                            preferred_element_type=jnp.float32)          # (n, bn)
    logits = jax.lax.dot_general(pool, t, (((1,), (0,)), ((), ())),
                                 preferred_element_type=jnp.float32)     # (bn, bn)

    # --- contrast_loss = CrossEntropy(logits, arange(bn))
    m = jnp.max(logits, axis=-1, keepdims=True)
    lse = jnp.log(jnp.sum(jnp.exp(logits - m), axis=-1, keepdims=True)) + m
    row = jax.lax.broadcasted_iota(jnp.int32, (bn, bn), 0)
    col = jax.lax.broadcasted_iota(jnp.int32, (bn, bn), 1)
    diag = jnp.sum(jnp.where(row == col, logits, 0.0), axis=-1, keepdims=True)
    ce = jnp.sum(lse - diag) / float(bn)

    res_ref[0] = mse
    res_ref[1] = ce
    res_ref[2] = mse + ce


def _full_spec(shape):
    nd = len(shape)
    return pl.BlockSpec(shape, lambda i, _nd=nd: (0,) * _nd)


def sae_forward(params, x_other, x):
    bn, sn, dn = x.shape
    n = bn * sn

    # Stack the two views so the shared-weight encoder runs as one matmul.
    x_cat = jnp.concatenate(
        [x_other.reshape(n, dn), x.reshape(n, dn)], axis=0).astype(jnp.float32)

    # Constant helper matrices for the block-diagonal similarity contraction
    # (constant-folded under jit; tiny: 64 KB + 2 KB).
    r = jnp.arange(n, dtype=jnp.int32)
    mask = (r[:, None] % sn == r[None, :] % sn).astype(jnp.float32)          # (n, n)
    pool = (r[None, :] // sn
            == jnp.arange(bn, dtype=jnp.int32)[:, None]).astype(jnp.float32)  # (bn, n)

    b2 = lambda v: v.reshape(1, dn)
    args = (x_cat,
            params["w_enc"], b2(params["b_enc"]),
            params["w_dec"], b2(params["b_dec"]),
            params["w_ph1"], b2(params["b_ph1"]),
            params["w_ph2"], b2(params["b_ph2"]),
            params["w_th1"], b2(params["b_th1"]),
            params["w_th2"], b2(params["b_th2"]),
            mask, pool)

    res = pl.pallas_call(
        _sae_fused_kernel,
        out_shape=jax.ShapeDtypeStruct((3,), jnp.float32),
        grid=(1,),
        in_specs=[_full_spec(a.shape) for a in args],
        out_specs=pl.BlockSpec(memory_space=pltpu.SMEM),
        compiler_params=pltpu.CompilerParams(
            dimension_semantics=("arbitrary",),
            vmem_limit_bytes=32 * 1024 * 1024),
    )(*args)

    loss, reconstruct_loss, contrast_loss = res[2], res[0], res[1]
    return loss, reconstruct_loss, contrast_loss


# --------------------------------------------------------------------------- #
# Parameter init (deterministic; matches SAE._init_weights: xavier W, zero b).
# teacherHead is an independent draw (state at the first forward call).
# --------------------------------------------------------------------------- #
def xavier_uniform(key, shape):
    fan_in, fan_out = shape
    limit = (6.0 / (fan_in + fan_out)) ** 0.5
    return jax.random.uniform(key, shape, jnp.float32, -limit, limit)


def init_params(key):
    ks = jax.random.split(key, 6)
    z = lambda: jnp.zeros((D,), jnp.float32)
    return {
        # NOTE: learned CLS tokens omitted — with per-token synthetic
        # encoder/decoder the CLS-row output is dropped by [:, 1:, :], so it
        # never affects the losses.
        "w_enc": xavier_uniform(ks[0], (D, D)), "b_enc": z(),
        "w_dec": xavier_uniform(ks[1], (D, D)), "b_dec": z(),
        "w_ph1": xavier_uniform(ks[2], (D, D)), "b_ph1": z(),
        "w_ph2": xavier_uniform(ks[3], (D, D)), "b_ph2": z(),
        "w_th1": xavier_uniform(ks[4], (D, D)), "b_th1": z(),
        "w_th2": xavier_uniform(ks[5], (D, D)), "b_th2": z(),
    }


if __name__ == "__main__":
    key = jax.random.PRNGKey(0)
    k_param, k_xo, k_x = jax.random.split(key, 3)
    params = init_params(k_param)
    x_other = jax.random.normal(k_xo, (B, S, D), jnp.float32)  # low-freq view
    x = jax.random.normal(k_x, (B, S, D), jnp.float32)         # high-freq view

    loss, rec, con = jax.jit(sae_forward)(params, x_other, x)
    jax.block_until_ready((loss, rec, con))
    assert bool(jnp.isfinite(loss)) and bool(jnp.isfinite(rec)) and bool(jnp.isfinite(con))
    print("KERNEL_OK")
</pallas_src>

<mosaic_0001>
module attributes {stable_mosaic.version = 11 : i64} {
  func.func @_sae_fused_kernel(%arg0: i32, %arg1: memref<256x256xf32, #tpu.memory_space<vmem>>, %arg2: memref<256x256xf32, #tpu.memory_space<vmem>>, %arg3: memref<1x256xf32, #tpu.memory_space<vmem>>, %arg4: memref<256x256xf32, #tpu.memory_space<vmem>>, %arg5: memref<1x256xf32, #tpu.memory_space<vmem>>, %arg6: memref<256x256xf32, #tpu.memory_space<vmem>>, %arg7: memref<1x256xf32, #tpu.memory_space<vmem>>, %arg8: memref<256x256xf32, #tpu.memory_space<vmem>>, %arg9: memref<1x256xf32, #tpu.memory_space<vmem>>, %arg10: memref<256x256xf32, #tpu.memory_space<vmem>>, %arg11: memref<1x256xf32, #tpu.memory_space<vmem>>, %arg12: memref<256x256xf32, #tpu.memory_space<vmem>>, %arg13: memref<1x256xf32, #tpu.memory_space<vmem>>, %arg14: memref<128x128xf32, #tpu.memory_space<vmem>>, %arg15: memref<4x128xf32, #tpu.memory_space<vmem>>, %arg16: memref<3xf32, #tpu.memory_space<smem>>) attributes {dimension_semantics = [#tpu.dimension_semantics<arbitrary>], iteration_bounds = array<i64: 1>, scalar_prefetch = 0 : i64, scratch_operands = 0 : i64, tpu.core_type = #tpu.core_type<tc>, window_params = [{pipeline_mode = #tpu.pipeline_mode<synchronous>, transform_indices = @transform_0, window_bounds = array<i64: 256, 256>}, {pipeline_mode = #tpu.pipeline_mode<synchronous>, transform_indices = @transform_1, window_bounds = array<i64: 256, 256>}, {pipeline_mode = #tpu.pipeline_mode<synchronous>, transform_indices = @transform_2, window_bounds = array<i64: 1, 256>}, {pipeline_mode = #tpu.pipeline_mode<synchronous>, transform_indices = @transform_3, window_bounds = array<i64: 256, 256>}, {pipeline_mode = #tpu.pipeline_mode<synchronous>, transform_indices = @transform_4, window_bounds = array<i64: 1, 256>}, {pipeline_mode = #tpu.pipeline_mode<synchronous>, transform_indices = @transform_5, window_bounds = array<i64: 256, 256>}, {pipeline_mode = #tpu.pipeline_mode<synchronous>, transform_indices = @transform_6, window_bounds = array<i64: 1, 256>}, {pipeline_mode = #tpu.pipeline_mode<synchronous>, transform_indices = @transform_7, window_bounds = array<i64: 256, 256>}, {pipeline_mode = #tpu.pipeline_mode<synchronous>, transform_indices = @transform_8, window_bounds = array<i64: 1, 256>}, {pipeline_mode = #tpu.pipeline_mode<synchronous>, transform_indices = @transform_9, window_bounds = array<i64: 256, 256>}, {pipeline_mode = #tpu.pipeline_mode<synchronous>, transform_indices = @transform_10, window_bounds = array<i64: 1, 256>}, {pipeline_mode = #tpu.pipeline_mode<synchronous>, transform_indices = @transform_11, window_bounds = array<i64: 256, 256>}, {pipeline_mode = #tpu.pipeline_mode<synchronous>, transform_indices = @transform_12, window_bounds = array<i64: 1, 256>}, {pipeline_mode = #tpu.pipeline_mode<synchronous>, transform_indices = @transform_13, window_bounds = array<i64: 128, 128>}, {pipeline_mode = #tpu.pipeline_mode<synchronous>, transform_indices = @transform_14, window_bounds = array<i64: 4, 128>}, {transform_indices = @transform_15, window_bounds = array<i64: 3>}]} {
    %c0 = arith.constant 0 : index
    %c0_0 = arith.constant 0 : index
    %0 = vector.load %arg1[%c0, %c0_0] : memref<256x256xf32, #tpu.memory_space<vmem>>, vector<256x256xf32>
    %c0_1 = arith.constant 0 : index
    %c0_2 = arith.constant 0 : index
    %1 = vector.load %arg2[%c0_1, %c0_2] : memref<256x256xf32, #tpu.memory_space<vmem>>, vector<256x256xf32>
    %2 = arith.truncf %0 : vector<256x256xf32> to vector<256x256xbf16>
    %3 = arith.truncf %1 : vector<256x256xf32> to vector<256x256xbf16>
    %cst = arith.constant dense<0.000000e+00> : vector<256x256xf32>
    %4 = tpu.matmul %2, %3, %cst {dimension_numbers = #tpu.dot_dimension_numbers<[1], [0], [0], [1], [0, 0, 1, 1], [], []>} : vector<256x256xbf16>, vector<256x256xbf16>, vector<256x256xf32> -> vector<256x256xf32>
    %c0_3 = arith.constant 0 : index
    %c0_4 = arith.constant 0 : index
    %5 = vector.load %arg3[%c0_3, %c0_4] : memref<1x256xf32, #tpu.memory_space<vmem>>, vector<1x256xf32>
    %6 = vector.broadcast %5 : vector<1x256xf32> to vector<256x256xf32>
    %7 = arith.addf %4, %6 : vector<256x256xf32>
    %8 = math.tanh %7 : vector<256x256xf32>
    %9 = vector.extract_strided_slice %8 {offsets = [0, 0], sizes = [128, 256], strides = [1, 1]} : vector<256x256xf32> to vector<128x256xf32>
    %10 = vector.extract_strided_slice %8 {offsets = [128, 0], sizes = [128, 256], strides = [1, 1]} : vector<256x256xf32> to vector<128x256xf32>
    %11 = vector.extract_strided_slice %0 {offsets = [128, 0], sizes = [128, 256], strides = [1, 1]} : vector<256x256xf32> to vector<128x256xf32>
    %c0_5 = arith.constant 0 : index
    %c0_6 = arith.constant 0 : index
    %12 = vector.load %arg6[%c0_5, %c0_6] : memref<256x256xf32, #tpu.memory_space<vmem>>, vector<256x256xf32>
    %13 = arith.truncf %9 : vector<128x256xf32> to vector<128x256xbf16>
    %14 = arith.truncf %12 : vector<256x256xf32> to vector<256x256xbf16>
    %cst_7 = arith.constant dense<0.000000e+00> : vector<128x256xf32>
    %15 = tpu.matmul %13, %14, %cst_7 {dimension_numbers = #tpu.dot_dimension_numbers<[1], [0], [0], [1], [0, 0, 1, 1], [], []>} : vector<128x256xbf16>, vector<256x256xbf16>, vector<128x256xf32> -> vector<128x256xf32>
    %c0_8 = arith.constant 0 : index
    %c0_9 = arith.constant 0 : index
    %16 = vector.load %arg7[%c0_8, %c0_9] : memref<1x256xf32, #tpu.memory_space<vmem>>, vector<1x256xf32>
    %17 = vector.broadcast %16 : vector<1x256xf32> to vector<128x256xf32>
    %18 = arith.addf %15, %17 : vector<128x256xf32>
    %19 = vector.shape_cast %18 : vector<128x256xf32> to vector<4x32x256xf32>
    %cst_10 = arith.constant dense<0.000000e+00> : vector<32x256xf32>
    %20 = vector.multi_reduction <add>, %19, %cst_10 [0] : vector<4x32x256xf32> to vector<32x256xf32>
    %cst_11 = arith.constant dense<0.000000e+00> : vector<32xf32>
    %21 = vector.multi_reduction <add>, %20, %cst_11 [1] : vector<32x256xf32> to vector<32xf32>
    %22 = vector.shape_cast %21 : vector<32xf32> to vector<32x1xf32>
    %cst_12 = arith.constant 1.024000e+03 : f32
    %23 = vector.broadcast %cst_12 : f32 to vector<32x1xf32>
    %24 = arith.divf %22, %23 : vector<32x1xf32>
    %25 = vector.shape_cast %24 : vector<32x1xf32> to vector<1x32x1xf32>
    %26 = vector.broadcast %25 : vector<1x32x1xf32> to vector<4x32x256xf32>
    %27 = arith.subf %19, %26 : vector<4x32x256xf32>
    %28 = arith.mulf %27, %27 : vector<4x32x256xf32>
    %cst_13 = arith.constant dense<0.000000e+00> : vector<32x256xf32>
    %29 = vector.multi_reduction <add>, %28, %cst_13 [0] : vector<4x32x256xf32> to vector<32x256xf32>
    %cst_14 = arith.constant dense<0.000000e+00> : vector<32xf32>
    %30 = vector.multi_reduction <add>, %29, %cst_14 [1] : vector<32x256xf32> to vector<32xf32>
    %31 = vector.shape_cast %30 : vector<32xf32> to vector<32x1xf32>
    %cst_15 = arith.constant 1.024000e+03 : f32
    %32 = vector.broadcast %cst_15 : f32 to vector<32x1xf32>
    %33 = arith.divf %31, %32 : vector<32x1xf32>
    %cst_16 = arith.constant 9.99999974E-6 : f32
    %34 = vector.broadcast %cst_16 : f32 to vector<32x1xf32>
    %35 = arith.addf %33, %34 : vector<32x1xf32>
    %36 = math.rsqrt %35 : vector<32x1xf32>
    %37 = vector.shape_cast %36 : vector<32x1xf32> to vector<1x32x1xf32>
    %38 = vector.broadcast %37 : vector<1x32x1xf32> to vector<4x32x256xf32>
    %39 = arith.mulf %27, %38 : vector<4x32x256xf32>
    %cst_17 = arith.constant 0.000000e+00 : f32
    %40 = vector.broadcast %cst_17 : f32 to vector<4x32x256xf32>
    %41 = arith.maximumf %39, %40 : vector<4x32x256xf32>
    %42 = vector.shape_cast %41 : vector<4x32x256xf32> to vector<128x256xf32>
    %c0_18 = arith.constant 0 : index
    %c0_19 = arith.constant 0 : index
    %43 = vector.load %arg8[%c0_18, %c0_19] : memref<256x256xf32, #tpu.memory_space<vmem>>, vector<256x256xf32>
    %44 = arith.truncf %42 : vector<128x256xf32> to vector<128x256xbf16>
    %45 = arith.truncf %43 : vector<256x256xf32> to vector<256x256xbf16>
    %cst_20 = arith.constant dense<0.000000e+00> : vector<128x256xf32>
    %46 = tpu.matmul %44, %45, %cst_20 {dimension_numbers = #tpu.dot_dimension_numbers<[1], [0], [0], [1], [0, 0, 1, 1], [], []>} : vector<128x256xbf16>, vector<256x256xbf16>, vector<128x256xf32> -> vector<128x256xf32>
    %c0_21 = arith.constant 0 : index
    %c0_22 = arith.constant 0 : index
    %47 = vector.load %arg9[%c0_21, %c0_22] : memref<1x256xf32, #tpu.memory_space<vmem>>, vector<1x256xf32>
    %48 = vector.broadcast %47 : vector<1x256xf32> to vector<128x256xf32>
    %49 = arith.addf %46, %48 : vector<128x256xf32>
    %c0_23 = arith.constant 0 : index
    %c0_24 = arith.constant 0 : index
    %50 = vector.load %arg10[%c0_23, %c0_24] : memref<256x256xf32, #tpu.memory_space<vmem>>, vector<256x256xf32>
    %51 = arith.truncf %10 : vector<128x256xf32> to vector<128x256xbf16>
    %52 = arith.truncf %50 : vector<256x256xf32> to vector<256x256xbf16>
    %cst_25 = arith.constant dense<0.000000e+00> : vector<128x256xf32>
    %53 = tpu.matmul %51, %52, %cst_25 {dimension_numbers = #tpu.dot_dimension_numbers<[1], [0], [0], [1], [0, 0, 1, 1], [], []>} : vector<128x256xbf16>, vector<256x256xbf16>, vector<128x256xf32> -> vector<128x256xf32>
    %c0_26 = arith.constant 0 : index
    %c0_27 = arith.constant 0 : index
    %54 = vector.load %arg11[%c0_26, %c0_27] : memref<1x256xf32, #tpu.memory_space<vmem>>, vector<1x256xf32>
    %55 = vector.broadcast %54 : vector<1x256xf32> to vector<128x256xf32>
    %56 = arith.addf %53, %55 : vector<128x256xf32>
    %57 = vector.shape_cast %56 : vector<128x256xf32> to vector<4x32x256xf32>
    %cst_28 = arith.constant dense<0.000000e+00> : vector<32x256xf32>
    %58 = vector.multi_reduction <add>, %57, %cst_28 [0] : vector<4x32x256xf32> to vector<32x256xf32>
    %cst_29 = arith.constant dense<0.000000e+00> : vector<32xf32>
    %59 = vector.multi_reduction <add>, %58, %cst_29 [1] : vector<32x256xf32> to vector<32xf32>
    %60 = vector.shape_cast %59 : vector<32xf32> to vector<32x1xf32>
    %cst_30 = arith.constant 1.024000e+03 : f32
    %61 = vector.broadcast %cst_30 : f32 to vector<32x1xf32>
    %62 = arith.divf %60, %61 : vector<32x1xf32>
    %63 = vector.shape_cast %62 : vector<32x1xf32> to vector<1x32x1xf32>
    %64 = vector.broadcast %63 : vector<1x32x1xf32> to vector<4x32x256xf32>
    %65 = arith.subf %57, %64 : vector<4x32x256xf32>
    %66 = arith.mulf %65, %65 : vector<4x32x256xf32>
    %cst_31 = arith.constant dense<0.000000e+00> : vector<32x256xf32>
    %67 = vector.multi_reduction <add>, %66, %cst_31 [0] : vector<4x32x256xf32> to vector<32x256xf32>
    %cst_32 = arith.constant dense<0.000000e+00> : vector<32xf32>
    %68 = vector.multi_reduction <add>, %67, %cst_32 [1] : vector<32x256xf32> to vector<32xf32>
    %69 = vector.shape_cast %68 : vector<32xf32> to vector<32x1xf32>
    %cst_33 = arith.constant 1.024000e+03 : f32
    %70 = vector.broadcast %cst_33 : f32 to vector<32x1xf32>
    %71 = arith.divf %69, %70 : vector<32x1xf32>
    %cst_34 = arith.constant 9.99999974E-6 : f32
    %72 = vector.broadcast %cst_34 : f32 to vector<32x1xf32>
    %73 = arith.addf %71, %72 : vector<32x1xf32>
    %74 = math.rsqrt %73 : vector<32x1xf32>
    %75 = vector.shape_cast %74 : vector<32x1xf32> to vector<1x32x1xf32>
    %76 = vector.broadcast %75 : vector<1x32x1xf32> to vector<4x32x256xf32>
    %77 = arith.mulf %65, %76 : vector<4x32x256xf32>
    %cst_35 = arith.constant 0.000000e+00 : f32
    %78 = vector.broadcast %cst_35 : f32 to vector<4x32x256xf32>
    %79 = arith.maximumf %77, %78 : vector<4x32x256xf32>
    %80 = vector.shape_cast %79 : vector<4x32x256xf32> to vector<128x256xf32>
    %c0_36 = arith.constant 0 : index
    %c0_37 = arith.constant 0 : index
    %81 = vector.load %arg12[%c0_36, %c0_37] : memref<256x256xf32, #tpu.memory_space<vmem>>, vector<256x256xf32>
    %82 = arith.truncf %80 : vector<128x256xf32> to vector<128x256xbf16>
    %83 = arith.truncf %81 : vector<256x256xf32> to vector<256x256xbf16>
    %cst_38 = arith.constant dense<0.000000e+00> : vector<128x256xf32>
    %84 = tpu.matmul %82, %83, %cst_38 {dimension_numbers = #tpu.dot_dimension_numbers<[1], [0], [0], [1], [0, 0, 1, 1], [], []>} : vector<128x256xbf16>, vector<256x256xbf16>, vector<128x256xf32> -> vector<128x256xf32>
    %c0_39 = arith.constant 0 : index
    %c0_40 = arith.constant 0 : index
    %85 = vector.load %arg13[%c0_39, %c0_40] : memref<1x256xf32, #tpu.memory_space<vmem>>, vector<1x256xf32>
    %86 = vector.broadcast %85 : vector<1x256xf32> to vector<128x256xf32>
    %87 = arith.addf %84, %86 : vector<128x256xf32>
    %c0_41 = arith.constant 0 : index
    %c0_42 = arith.constant 0 : index
    %88 = vector.load %arg4[%c0_41, %c0_42] : memref<256x256xf32, #tpu.memory_space<vmem>>, vector<256x256xf32>
    %89 = arith.truncf %9 : vector<128x256xf32> to vector<128x256xbf16>
    %90 = arith.truncf %88 : vector<256x256xf32> to vector<256x256xbf16>
    %cst_43 = arith.constant dense<0.000000e+00> : vector<128x256xf32>
    %91 = tpu.matmul %89, %90, %cst_43 {dimension_numbers = #tpu.dot_dimension_numbers<[1], [0], [0], [1], [0, 0, 1, 1], [], []>} : vector<128x256xbf16>, vector<256x256xbf16>, vector<128x256xf32> -> vector<128x256xf32>
    %c0_44 = arith.constant 0 : index
    %c0_45 = arith.constant 0 : index
    %92 = vector.load %arg5[%c0_44, %c0_45] : memref<1x256xf32, #tpu.memory_space<vmem>>, vector<1x256xf32>
    %93 = vector.broadcast %92 : vector<1x256xf32> to vector<128x256xf32>
    %94 = arith.addf %91, %93 : vector<128x256xf32>
    %95 = arith.subf %94, %11 : vector<128x256xf32>
    %96 = arith.mulf %95, %95 : vector<128x256xf32>
    %97 = vector.shape_cast %96 : vector<128x256xf32> to vector<1x128x256xf32>
    %cst_46 = arith.constant dense<0.000000e+00> : vector<1xf32>
    %98 = vector.multi_reduction <add>, %97, %cst_46 [1, 2] : vector<1x128x256xf32> to vector<1xf32>
    %99 = vector.shape_cast %98 : vector<1xf32> to vector<1x1x1xf32>
    %100 = vector.extract %99[0, 0, 0] : f32 from vector<1x1x1xf32>
    %cst_47 = arith.constant 3.276800e+04 : f32
    %101 = arith.divf %100, %cst_47 : f32
    %102 = arith.truncf %49 : vector<128x256xf32> to vector<128x256xbf16>
    %103 = arith.truncf %87 : vector<128x256xf32> to vector<128x256xbf16>
    %cst_48 = arith.constant dense<0.000000e+00> : vector<128x128xf32>
    %104 = tpu.matmul %102, %103, %cst_48 {dimension_numbers = #tpu.dot_dimension_numbers<[1], [1], [0], [0], [0, 0, 1, 0], [], []>} : vector<128x256xbf16>, vector<128x256xbf16>, vector<128x128xf32> -> vector<128x128xf32>
    %c0_49 = arith.constant 0 : index
    %c0_50 = arith.constant 0 : index
    %105 = vector.load %arg14[%c0_49, %c0_50] : memref<128x128xf32, #tpu.memory_space<vmem>>, vector<128x128xf32>
    %106 = arith.mulf %104, %105 : vector<128x128xf32>
    %c0_51 = arith.constant 0 : index
    %c0_52 = arith.constant 0 : index
    %107 = vector.load %arg15[%c0_51, %c0_52] : memref<4x128xf32, #tpu.memory_space<vmem>>, vector<4x128xf32>
    %cst_53 = arith.constant dense<0.000000e+00> : vector<128x4xf32>
    %108 = tpu.matmul %106, %107, %cst_53 {dimension_numbers = #tpu.dot_dimension_numbers<[1], [1], [0], [0], [0, 0, 1, 0], [], []>} : vector<128x128xf32>, vector<4x128xf32>, vector<128x4xf32> -> vector<128x4xf32>
    %cst_54 = arith.constant dense<0.000000e+00> : vector<4x4xf32>
    %109 = tpu.matmul %107, %108, %cst_54 {dimension_numbers = #tpu.dot_dimension_numbers<[1], [0], [0], [1], [0, 0, 1, 1], [], []>} : vector<4x128xf32>, vector<128x4xf32>, vector<4x4xf32> -> vector<4x4xf32>
    %cst_55 = arith.constant dense<0xFF800000> : vector<4xf32>
    %110 = vector.multi_reduction <maximumf>, %109, %cst_55 [1] : vector<4x4xf32> to vector<4xf32>
    %111 = vector.shape_cast %110 : vector<4xf32> to vector<4x1xf32>
    %112 = vector.broadcast %111 : vector<4x1xf32> to vector<4x4xf32>
    %113 = arith.subf %109, %112 : vector<4x4xf32>
    %114 = math.exp %113 : vector<4x4xf32>
    %cst_56 = arith.constant dense<0.000000e+00> : vector<4xf32>
    %115 = vector.multi_reduction <add>, %114, %cst_56 [1] : vector<4x4xf32> to vector<4xf32>
    %116 = vector.shape_cast %115 : vector<4xf32> to vector<4x1xf32>
    %117 = math.log %116 : vector<4x1xf32>
    %118 = arith.addf %117, %111 : vector<4x1xf32>
    %119 = tpu.iota {dimensions = array<i32: 0>} : vector<4x4xi32>
    %120 = tpu.iota {dimensions = array<i32: 1>} : vector<4x4xi32>
    %121 = arith.cmpi eq, %119, %120 : vector<4x4xi32>
    %cst_57 = arith.constant 0.000000e+00 : f32
    %122 = vector.broadcast %cst_57 : f32 to vector<4x4xf32>
    %123 = arith.select %121, %109, %122 : vector<4x4xi1>, vector<4x4xf32>
    %cst_58 = arith.constant dense<0.000000e+00> : vector<4xf32>
    %124 = vector.multi_reduction <add>, %123, %cst_58 [1] : vector<4x4xf32> to vector<4xf32>
    %125 = vector.shape_cast %124 : vector<4xf32> to vector<4x1xf32>
    %126 = arith.subf %118, %125 : vector<4x1xf32>
    %127 = vector.shape_cast %126 : vector<4x1xf32> to vector<1x4x1xf32>
    %cst_59 = arith.constant dense<0.000000e+00> : vector<1xf32>
    %128 = vector.multi_reduction <add>, %127, %cst_59 [1, 2] : vector<1x4x1xf32> to vector<1xf32>
    %129 = vector.shape_cast %128 : vector<1xf32> to vector<1x1x1xf32>
    %130 = vector.extract %129[0, 0, 0] : f32 from vector<1x1x1xf32>
    %cst_60 = arith.constant 4.000000e+00 : f32
    %131 = arith.divf %130, %cst_60 : f32
    %c0_61 = arith.constant 0 : index
    %132 = memref.load %arg16[%c0_61] : memref<3xf32, #tpu.memory_space<smem>>
    memref.store %101, %arg16[%c0_61] : memref<3xf32, #tpu.memory_space<smem>>
    %c1 = arith.constant 1 : index
    %133 = memref.load %arg16[%c1] : memref<3xf32, #tpu.memory_space<smem>>
    memref.store %131, %arg16[%c1] : memref<3xf32, #tpu.memory_space<smem>>
    %134 = arith.addf %101, %131 : f32
    %c2 = arith.constant 2 : index
    %135 = memref.load %arg16[%c2] : memref<3xf32, #tpu.memory_space<smem>>
    memref.store %134, %arg16[%c2] : memref<3xf32, #tpu.memory_space<smem>>
    return
  }
  func.func @transform_0(%arg0: i32) -> (i32, i32) {
    %c0_i32 = arith.constant 0 : i32
    %c0_i32_0 = arith.constant 0 : i32
    %c0_i32_1 = arith.constant 0 : i32
    return %c0_i32, %c0_i32_0 : i32, i32
  }
  func.func @transform_1(%arg0: i32) -> (i32, i32) {
    %c0_i32 = arith.constant 0 : i32
    %c0_i32_0 = arith.constant 0 : i32
    %c0_i32_1 = arith.constant 0 : i32
    return %c0_i32, %c0_i32_0 : i32, i32
  }
  func.func @transform_2(%arg0: i32) -> (i32, i32) {
    %c0_i32 = arith.constant 0 : i32
    %c0_i32_0 = arith.constant 0 : i32
    %c0_i32_1 = arith.constant 0 : i32
    return %c0_i32, %c0_i32_0 : i32, i32
  }
  func.func @transform_3(%arg0: i32) -> (i32, i32) {
    %c0_i32 = arith.constant 0 : i32
    %c0_i32_0 = arith.constant 0 : i32
    %c0_i32_1 = arith.constant 0 : i32
    return %c0_i32, %c0_i32_0 : i32, i32
  }
  func.func @transform_4(%arg0: i32) -> (i32, i32) {
    %c0_i32 = arith.constant 0 : i32
    %c0_i32_0 = arith.constant 0 : i32
    %c0_i32_1 = arith.constant 0 : i32
    return %c0_i32, %c0_i32_0 : i32, i32
  }
  func.func @transform_5(%arg0: i32) -> (i32, i32) {
    %c0_i32 = arith.constant 0 : i32
    %c0_i32_0 = arith.constant 0 : i32
    %c0_i32_1 = arith.constant 0 : i32
    return %c0_i32, %c0_i32_0 : i32, i32
  }
  func.func @transform_6(%arg0: i32) -> (i32, i32) {
    %c0_i32 = arith.constant 0 : i32
    %c0_i32_0 = arith.constant 0 : i32
    %c0_i32_1 = arith.constant 0 : i32
    return %c0_i32, %c0_i32_0 : i32, i32
  }
  func.func @transform_7(%arg0: i32) -> (i32, i32) {
    %c0_i32 = arith.constant 0 : i32
    %c0_i32_0 = arith.constant 0 : i32
    %c0_i32_1 = arith.constant 0 : i32
    return %c0_i32, %c0_i32_0 : i32, i32
  }
  func.func @transform_8(%arg0: i32) -> (i32, i32) {
    %c0_i32 = arith.constant 0 : i32
    %c0_i32_0 = arith.constant 0 : i32
    %c0_i32_1 = arith.constant 0 : i32
    return %c0_i32, %c0_i32_0 : i32, i32
  }
  func.func @transform_9(%arg0: i32) -> (i32, i32) {
    %c0_i32 = arith.constant 0 : i32
    %c0_i32_0 = arith.constant 0 : i32
    %c0_i32_1 = arith.constant 0 : i32
    return %c0_i32, %c0_i32_0 : i32, i32
  }
  func.func @transform_10(%arg0: i32) -> (i32, i32) {
    %c0_i32 = arith.constant 0 : i32
    %c0_i32_0 = arith.constant 0 : i32
    %c0_i32_1 = arith.constant 0 : i32
    return %c0_i32, %c0_i32_0 : i32, i32
  }
  func.func @transform_11(%arg0: i32) -> (i32, i32) {
    %c0_i32 = arith.constant 0 : i32
    %c0_i32_0 = arith.constant 0 : i32
    %c0_i32_1 = arith.constant 0 : i32
    return %c0_i32, %c0_i32_0 : i32, i32
  }
  func.func @transform_12(%arg0: i32) -> (i32, i32) {
    %c0_i32 = arith.constant 0 : i32
    %c0_i32_0 = arith.constant 0 : i32
    %c0_i32_1 = arith.constant 0 : i32
    return %c0_i32, %c0_i32_0 : i32, i32
  }
  func.func @transform_13(%arg0: i32) -> (i32, i32) {
    %c0_i32 = arith.constant 0 : i32
    %c0_i32_0 = arith.constant 0 : i32
    %c0_i32_1 = arith.constant 0 : i32
    return %c0_i32, %c0_i32_0 : i32, i32
  }
  func.func @transform_14(%arg0: i32) -> (i32, i32) {
    %c0_i32 = arith.constant 0 : i32
    %c0_i32_0 = arith.constant 0 : i32
    %c0_i32_1 = arith.constant 0 : i32
    return %c0_i32, %c0_i32_0 : i32, i32
  }
  func.func @transform_15(%arg0: i32) -> i32 {
    %c0_i32 = arith.constant 0 : i32
    %c0_i32_0 = arith.constant 0 : i32
    return %c0_i32 : i32
  }
}

</mosaic_0001>

<bundles_post_ra>
// kernel: sae_forward.1
= control target key start
LH: loop header
LB: loop body
LE: loop exit
PB: predicated region body
PF: predicated region fallthrough
CT: control target
= control target key end

     0   :  { %20 = vsyncpa [#allocation3], 0  ;;  %s5185_s0 = inlined_call_operand.vmem [shape: f32[256,256], index: 0, kind: input, shape index: {}]   ;;  %s5186_s1 = inlined_call_operand.vmem [shape: f32[256,256], index: 1, kind: input, shape index: {}]   ;;  %s5187_s2 = inlined_call_operand.vmem [shape: f32[1,256], index: 2, kind: input, shape index: {}]   ;;  %s5188_s3 = inlined_call_operand.vmem [shape: f32[256,256], index: 3, kind: input, shape index: {}]   ;;  %s5189_s4 = inlined_call_operand.vmem [shape: f32[1,256], index: 4, kind: input, shape index: {}]   ;;  %s5190_s5 = inlined_call_operand.hbm [shape: f32[256,256], index: 5, kind: input, shape index: {}]   ;;  %s5191_s6 = inlined_call_operand.vmem [shape: f32[1,256], index: 6, kind: input, shape index: {}]   ;;  %s5192_s7 = inlined_call_operand.hbm [shape: f32[256,256], index: 7, kind: input, shape index: {}]   ;;  %s5193_s8 = inlined_call_operand.vmem [shape: f32[1,256], index: 8, kind: input, shape index: {}]   ;;  %s5194_s9 = inlined_call_operand.hbm [shape: f32[256,256], index: 9, kind: input, shape index: {}]   ;;  %s5195_s10 = inlined_call_operand.vmem [shape: f32[1,256], index: 10, kind: input, shape index: {}]   ;;  %s5196_s11 = inlined_call_operand.hbm [shape: f32[256,256], index: 11, kind: input, shape index: {}]   ;;  %s5197_s12 = inlined_call_operand.vmem [shape: f32[1,256], index: 12, kind: input, shape index: {}]   ;;  %s5198_s13 = inlined_call_operand.vmem [shape: f32[128,128], index: 13, kind: input, shape index: {}]   ;;  %s5199_s14 = inlined_call_operand.vmem [shape: f32[4,128], index: 14, kind: input, shape index: {}]   ;;  %s5200_s15 = inlined_call_operand.vmem [shape: f32[3], index: 15, kind: output, shape index: {}]  }
   0x1   :  { %21 = vsyncpa [#allocation6], 0 }
   0x2   :  { %22 = vsyncpa [#allocation9], 0 }
   0x3   :  { %23 = vsyncpa [#allocation4], 0  ;;  %s3137_s18 = smov [#allocation5]   ;;  %s3138_s20 = smov [#allocation2]  }
   0x4   :  { %s53_s19 = sshll.u32 %s3137_s18, 4  ;;  %s39_s21 = sshll.u32 %s3138_s20, 4  ;;  %s54_s19 = int_to_ptr.vmem [resolvable:$true] %s53_s19  ;;  %s3227_s21 = int_to_ptr.vmem [resolvable:$true] %s39_s21 }
   0x5   :  { %s3029_s24 = scalar_lea.hbm %s5192_s7, 8192 }
   0x6   :  { %p3030_p0 = scmp.ne.s32.totalorder %s5192_s7, %s3029_s24  ;;  %p3033_p1 = scmp.lt.u32.totalorder %s3029_s24, %s5192_s7 }
   0x8   :  { %p3035_p2 = pnand %p3033_p1, %p3030_p0 }
   0xa   :  { %3038 = shalt.err (!%p3035_p2)
}
   0xb   :  { %s3039_s29 = scalar_lea.vmem %s54_s19, 8192  ;;  %p3044_p4 = scmp.lt.s32.totalorder %s54_s19, %s54_s19 }
   0xc   :  { %p3040_p3 = scmp.ne.s32.totalorder %s54_s19, %s3039_s29  ;;  %p3045_p5 = scmp.lt.s32.totalorder %s3039_s29, %s3039_s29 }
   0xe   :  { %p3046_p6 = por %p3045_p5, %p3044_p4 }
  0x10   :  { %p3047_p7 = pnand %p3046_p6, %p3040_p3 }
  0x12   :  { %3050 = shalt.err (!%p3047_p7)
}
  0x13   :  { %s3139_s30 = smov 256   ;;  %s3140_s16 = smov 16  }
  0x14   :  { %59 = dma.hbm_to_vmem [thread:$0]  %s5192_s7, 8192, %s54_s19, [#allocation6], %s3139_s30, %s3139_s30, %s3140_s16  }
  0x15   :  { %s3051_s23 = scalar_lea.hbm %s5190_s5, 8192 }
  0x16   :  { %p3052_p8 = scmp.ne.s32.totalorder %s5190_s5, %s3051_s23  ;;  %p3055_p9 = scmp.lt.u32.totalorder %s3051_s23, %s5190_s5 }
  0x18   :  { %p3057_p10 = pnand %p3055_p9, %p3052_p8 }
  0x1a   :  { %3060 = shalt.err (!%p3057_p10)
}
  0x1b   :  { %s3061_s28 = scalar_lea.vmem %s3227_s21, 8192  ;;  %p3066_p12 = scmp.lt.s32.totalorder %s3227_s21, %s3227_s21 }
  0x1c   :  { %p3062_p11 = scmp.ne.s32.totalorder %s3227_s21, %s3061_s28  ;;  %p3067_p13 = scmp.lt.s32.totalorder %s3061_s28, %s3061_s28 }
  0x1e   :  { %p3068_p0 = por %p3067_p13, %p3066_p12 }
  0x20   :  { %p3069_p1 = pnand %p3068_p0, %p3062_p11 }
  0x22   :  { %3072 = shalt.err (!%p3069_p1)
}
  0x23   :  { %45 = dma.hbm_to_vmem [thread:$0]  %s5190_s5, 8192, %s3227_s21, [#allocation3], %s3139_s30, %s3139_s30, %s3140_s16  }
  0x24   :  { %s3141_s29 = smov [#allocation7]   ;;  %s3142_s18 = smov [#allocation8]  }
  0x25   :  { %s67_s17 = sshll.u32 %s3141_s29, 4  ;;  %s81_s20 = sshll.u32 %s3142_s18, 4  ;;  %s68_s17 = int_to_ptr.vmem [resolvable:$true] %s67_s17  ;;  %s3264_s20 = int_to_ptr.vmem [resolvable:$true] %s81_s20 }
  0x26   :  { %s3073_s24 = scalar_lea.hbm %s5194_s9, 8192 }
  0x27   :  { %p3074_p2 = scmp.ne.s32.totalorder %s5194_s9, %s3073_s24  ;;  %p3077_p3 = scmp.lt.u32.totalorder %s3073_s24, %s5194_s9 }
  0x29   :  { %p3079_p4 = pnand %p3077_p3, %p3074_p2 }
  0x2b   :  { %3082 = shalt.err (!%p3079_p4)
}
  0x2c   :  { %s3083_s5 = scalar_lea.vmem %s68_s17, 8192  ;;  %p3088_p6 = scmp.lt.s32.totalorder %s68_s17, %s68_s17 }
  0x2d   :  { %p3084_p5 = scmp.ne.s32.totalorder %s68_s17, %s3083_s5  ;;  %p3089_p7 = scmp.lt.s32.totalorder %s3083_s5, %s3083_s5 }
  0x2f   :  { %p3090_p8 = por %p3089_p7, %p3088_p6 }
  0x31   :  { %p3091_p9 = pnand %p3090_p8, %p3084_p5 }
  0x33   :  { %3094 = shalt.err (!%p3091_p9)
}
  0x34   :  { %73 = dma.hbm_to_vmem [thread:$0]  %s5194_s9, 8192, %s68_s17, [#allocation6], %s3139_s30, %s3139_s30, %s3140_s16  }
  0x35   :  { %s3095_s18 = scalar_lea.hbm %s5196_s11, 8192 }
  0x36   :  { %p3096_p10 = scmp.ne.s32.totalorder %s5196_s11, %s3095_s18  ;;  %p3099_p11 = scmp.lt.u32.totalorder %s3095_s18, %s5196_s11 }
  0x38   :  { %p3101_p12 = pnand %p3099_p11, %p3096_p10 }
  0x3a   :  { %3104 = shalt.err (!%p3101_p12)
}
  0x3b   :  { %s3105_s26 = scalar_lea.vmem %s3264_s20, 8192  ;;  %p3110_p0 = scmp.lt.s32.totalorder %s3264_s20, %s3264_s20 }
  0x3c   :  { %p3106_p13 = scmp.ne.s32.totalorder %s3264_s20, %s3105_s26  ;;  %p3111_p1 = scmp.lt.s32.totalorder %s3105_s26, %s3105_s26 }
  0x3e   :  { %p3112_p2 = por %p3111_p1, %p3110_p0 }
  0x40   :  { %p3113_p3 = pnand %p3112_p2, %p3106_p13 }
  0x42   :  { %3116 = shalt.err (!%p3113_p3)
}
  0x43   :  { %87 = dma.hbm_to_vmem [thread:$0]  %s5196_s11, 8192, %s3264_s20, [#allocation9], %s3139_s30, %s3139_s30, %s3140_s16  }
  0x44   :  { %3129 = dma.done.wait [#allocation3], 8192  }
  0x45   :  { %3130 = vsyncadd [#allocation3], 4294959104 }
  0x46   :  { %3131 = dma.done.wait [#allocation6], 16384  }
  0x47   :  { %3132 = vsyncadd [#allocation6], 4294950912 }
  0x48   :  { %3133 = dma.done.wait [#allocation9], 8192  }
  0x49   :  { %3134 = vsyncadd [#allocation9], 4294959104  ;;  %v172_v0 = vld [vmem:[%s5186_s1 + $0x8] sm:$0xff]  ;;  %v174_v1 = vld [vmem:[%s5186_s1 + $0x18] sm:$0xff]  ;;  %vm3144_vm0 = vmmov 0   ;;  %vm2654_vm1 = vcmask 27648  }
  0x4a   :  { %v171_v2 = vld [vmem:[%s5186_s1] sm:$0xff]  ;;  %v268_v3 = vpack.c.bf16 %v174_v1, %v172_v0  ;;  %v173_v4 = vld [vmem:[%s5186_s1 + $0x10] sm:$0xff]  ;;  %v176_v5 = vld [vmem:[%s5186_s1 + $0x28] sm:$0xff]  ;;  %vm2677_vm3 = vcmask 3072  }
  0x4b   :  { %v178_v6 = vld [vmem:[%s5186_s1 + $0x38] sm:$0xff]  ;;  %v267_v7 = vpack.c.bf16 %v173_v4, %v171_v2  ;;  %v175_v9 = vld [vmem:[%s5186_s1 + $0x20] sm:$0xff]  ;;  %v177_v10 = vld [vmem:[%s5186_s1 + $0x30] sm:$0xff] }
  0x4c   :  { %v270_v8 = vpack.c.bf16 %v178_v6, %v176_v5  ;;  %v180_v11 = vld [vmem:[%s5186_s1 + $0x48] sm:$0xff]  ;;  %311 = vmatprep.subr.bf16.mxu0 %v268_v3  ;;  %v182_v12 = vld [vmem:[%s5186_s1 + $0x58] sm:$0xff]  ;;  %v269_v13 = vpack.c.bf16 %v177_v10, %v175_v9  ;;  %v179_v15 = vld [vmem:[%s5186_s1 + $0x40] sm:$0xff] }
  0x4d   :  { %312 = vmatpush1.bf16.msra.mxu0 %v267_v7  ;;  %v272_v14 = vpack.c.bf16 %v182_v12, %v180_v11  ;;  %v181_v16 = vld [vmem:[%s5186_s1 + $0x50] sm:$0xff]  ;;  %v184_v17 = vld [vmem:[%s5186_s1 + $0x68] sm:$0xff]  ;;  %v186_v18 = vld [vmem:[%s5186_s1 + $0x78] sm:$0xff] }
  0x4e   :  { %313 = vmatprep.subr.bf16.mxu0 %v270_v8  ;;  %v271_v19 = vpack.c.bf16 %v181_v16, %v179_v15  ;;  %v274_v20 = vpack.c.bf16 %v186_v18, %v184_v17  ;;  %v183_v21 = vld [vmem:[%s5186_s1 + $0x60] sm:$0xff]  ;;  %v185_v22 = vld [vmem:[%s5186_s1 + $0x70] sm:$0xff]  ;;  %v188_v23 = vld [vmem:[%s5186_s1 + $0x88] sm:$0xff] }
  0x4f   :  { %v190_v24 = vld [vmem:[%s5186_s1 + $0x98] sm:$0xff]  ;;  %v273_v25 = vpack.c.bf16 %v185_v22, %v183_v21  ;;  %v187_v27 = vld [vmem:[%s5186_s1 + $0x80] sm:$0xff]  ;;  %v189_v28 = vld [vmem:[%s5186_s1 + $0x90] sm:$0xff] }
  0x50   :  { %v276_v26 = vpack.c.bf16 %v190_v24, %v188_v23  ;;  %v192_v29 = vld [vmem:[%s5186_s1 + $0xa8] sm:$0xff]  ;;  %v194_v30 = vld [vmem:[%s5186_s1 + $0xb8] sm:$0xff]  ;;  %v275_v31 = vpack.c.bf16 %v189_v28, %v187_v27  ;;  %v191_v33 = vld [vmem:[%s5186_s1 + $0xa0] sm:$0xff] }
  0x51   :  { %314 = vmatpush1.bf16.msra.mxu0 %v269_v13  ;;  %v278_v32 = vpack.c.bf16 %v194_v30, %v192_v29  ;;  %v193_v34 = vld [vmem:[%s5186_s1 + $0xb0] sm:$0xff]  ;;  %v196_v35 = vld [vmem:[%s5186_s1 + $0xc8] sm:$0xff]  ;;  %v198_v36 = vld [vmem:[%s5186_s1 + $0xd8] sm:$0xff] }
  0x52   :  { %315 = vmatprep.subr.bf16.mxu0 %v272_v14  ;;  %v277_v37 = vpack.c.bf16 %v193_v34, %v191_v33  ;;  %v195_v38 = vld [vmem:[%s5186_s1 + $0xc0] sm:$0xff]  ;;  %v280_v39 = vpack.c.bf16 %v198_v36, %v196_v35  ;;  %v197_v40 = vld [vmem:[%s5186_s1 + $0xd0] sm:$0xff]  ;;  %v108_v41 = vld [vmem:[%s5185_s0 + $0x8] sm:$0xff] }
  0x53   :  { %v110_v42 = vld [vmem:[%s5185_s0 + $0x18] sm:$0xff]  ;;  %v200_v43 = vld [vmem:[%s5186_s1 + $0xe8] sm:$0xff]  ;;  %v279_v46 = vpack.c.bf16 %v197_v40, %v195_v38  ;;  %v199_v48 = vld [vmem:[%s5186_s1 + $0xe0] sm:$0xff] }
  0x54   :  { %v202_v44 = vld [vmem:[%s5186_s1 + $0xf8] sm:$0xff]  ;;  %v236_v45 = vpack.c.bf16 %v110_v42, %v108_v41  ;;  %v201_v49 = vld [vmem:[%s5186_s1 + $0xf0] sm:$0xff]  ;;  %v204_v50 = vld [vmem:[%s5186_s1 + $0x108] sm:$0xff] }
  0x55   :  { %316 = vmatpush1.bf16.msra.mxu0 %v271_v19  ;;  %v282_v47 = vpack.c.bf16 %v202_v44, %v200_v43  ;;  %v206_v51 = vld [vmem:[%s5186_s1 + $0x118] sm:$0xff]  ;;  %v281_v52 = vpack.c.bf16 %v201_v49, %v199_v48  ;;  %v203_v54 = vld [vmem:[%s5186_s1 + $0x100] sm:$0xff]  ;;  %v205_v55 = vld [vmem:[%s5186_s1 + $0x110] sm:$0xff] }
  0x56   :  { %317 = vmatprep.subr.bf16.mxu0 %v274_v20  ;;  %343 = vmatprep.mubr.bf16.mxu0 %v236_v45  ;;  %v284_v53 = vpack.c.bf16 %v206_v51, %v204_v50  ;;  %v208_v56 = vld [vmem:[%s5186_s1 + $0x128] sm:$0xff]  ;;  %v210_v57 = vld [vmem:[%s5186_s1 + $0x138] sm:$0xff]  ;;  %v283_v58 = vpack.c.bf16 %v205_v55, %v203_v54  ;;  %v207_v60 = vld [vmem:[%s5186_s1 + $0x120] sm:$0xff] }
  0x57   :  { %v286_v59 = vpack.c.bf16 %v210_v57, %v208_v56  ;;  %v209_v61 = vld [vmem:[%s5186_s1 + $0x130] sm:$0xff]  ;;  %v212_v62 = vld [vmem:[%s5186_s1 + $0x148] sm:$0xff]  ;;  %v214_v63 = vld [vmem:[%s5186_s1 + $0x158] sm:$0xff] }
  0x58   :  { %v285_v0 = vpack.c.bf16 %v209_v61, %v207_v60  ;;  %v288_v1 = vpack.c.bf16 %v214_v63, %v212_v62  ;;  %v211_v2 = vld [vmem:[%s5186_s1 + $0x140] sm:$0xff]  ;;  %v213_v3 = vld [vmem:[%s5186_s1 + $0x150] sm:$0xff]  ;;  %v216_v4 = vld [vmem:[%s5186_s1 + $0x168] sm:$0xff] }
  0x59   :  { %318 = vmatpush1.bf16.msra.mxu0 %v273_v25  ;;  %v218_v5 = vld [vmem:[%s5186_s1 + $0x178] sm:$0xff]  ;;  %v287_v6 = vpack.c.bf16 %v213_v3, %v211_v2  ;;  %v215_v8 = vld [vmem:[%s5186_s1 + $0x160] sm:$0xff]  ;;  %v217_v9 = vld [vmem:[%s5186_s1 + $0x170] sm:$0xff] }
  0x5a   :  { %319 = vmatprep.subr.bf16.mxu0 %v276_v26  ;;  %v290_v7 = vpack.c.bf16 %v218_v5, %v216_v4  ;;  %v220_v10 = vld [vmem:[%s5186_s1 + $0x188] sm:$0xff]  ;;  %v222_v11 = vld [vmem:[%s5186_s1 + $0x198] sm:$0xff]  ;;  %v289_v12 = vpack.c.bf16 %v217_v9, %v215_v8  ;;  %v219_v14 = vld [vmem:[%s5186_s1 + $0x180] sm:$0xff] }
  0x5b   :  { %v292_v13 = vpack.c.bf16 %v222_v11, %v220_v10  ;;  %v221_v15 = vld [vmem:[%s5186_s1 + $0x190] sm:$0xff]  ;;  %v224_v16 = vld [vmem:[%s5186_s1 + $0x1a8] sm:$0xff]  ;;  %v226_v17 = vld [vmem:[%s5186_s1 + $0x1b8] sm:$0xff] }
  0x5c   :  { %v291_v18 = vpack.c.bf16 %v221_v15, %v219_v14  ;;  %v294_v19 = vpack.c.bf16 %v226_v17, %v224_v16  ;;  %v223_v20 = vld [vmem:[%s5186_s1 + $0x1a0] sm:$0xff]  ;;  %v225_v21 = vld [vmem:[%s5186_s1 + $0x1b0] sm:$0xff]  ;;  %v228_v22 = vld [vmem:[%s5186_s1 + $0x1c8] sm:$0xff] }
  0x5d   :  { %320 = vmatpush1.bf16.msra.mxu0 %v275_v31  ;;  %v230_v23 = vld [vmem:[%s5186_s1 + $0x1d8] sm:$0xff]  ;;  %v293_v24 = vpack.c.bf16 %v225_v21, %v223_v20  ;;  %v227_v26 = vld [vmem:[%s5186_s1 + $0x1c0] sm:$0xff]  ;;  %v229_v27 = vld [vmem:[%s5186_s1 + $0x1d0] sm:$0xff] }
  0x5e   :  { %321 = vmatprep.subr.bf16.mxu0 %v278_v32  ;;  %v296_v25 = vpack.c.bf16 %v230_v23, %v228_v22  ;;  %v232_v28 = vld [vmem:[%s5186_s1 + $0x1e8] sm:$0xff]  ;;  %v234_v29 = vld [vmem:[%s5186_s1 + $0x1f8] sm:$0xff]  ;;  %v295_v30 = vpack.c.bf16 %v229_v27, %v227_v26  ;;  %v231_v32 = vld [vmem:[%s5186_s1 + $0x1e0] sm:$0xff] }
  0x5f   :  { %v298_v31 = vpack.c.bf16 %v234_v29, %v232_v28  ;;  %v233_v33 = vld [vmem:[%s5186_s1 + $0x1f0] sm:$0xff]  ;;  %v107_v34 = vld [vmem:[%s5185_s0] sm:$0xff]  ;;  %v112_v36 = vld [vmem:[%s5185_s0 + $0x28] sm:$0xff] }
  0x60   :  { %v109_v35 = vld [vmem:[%s5185_s0 + $0x10] sm:$0xff]  ;;  %v569_v38 = vld [vmem:[#allocation2 + $0x8] sm:$0xff]  ;;  %v568_v40 = vld [vmem:[#allocation2] sm:$0xff]  ;;  %v297_v41 = vpack.c.bf16 %v233_v33, %v231_v32 }
  0x61   :  { %322 = vmatpush1.bf16.msra.mxu0 %v277_v37  ;;  %v114_v37 = vld [vmem:[%s5185_s0 + $0x38] sm:$0xff]  ;;  %v570_v43 = vld [vmem:[#allocation2 + $0x10] sm:$0xff]  ;;  %v573_v44 = vld [vmem:[#allocation2 + $0x28] sm:$0xff]  ;;  %v235_v54 = vpack.c.bf16 %v109_v35, %v107_v34 }
  0x62   :  { %323 = vmatprep.subr.bf16.mxu0 %v280_v39  ;;  %v571_v39 = vld [vmem:[#allocation2 + $0x18] sm:$0xff]  ;;  %v572_v48 = vld [vmem:[#allocation2 + $0x20] sm:$0xff]  ;;  %v574_v49 = vld [vmem:[#allocation2 + $0x30] sm:$0xff] }
  0x63   :  { %v649_v42 = vpack.c.bf16 %v571_v39, %v569_v38  ;;  %v575_v45 = vld [vmem:[#allocation2 + $0x38] sm:$0xff]  ;;  %v1260_v50 = vld [vmem:[#allocation7 + $0x8] sm:$0xff]  ;;  %v650_v55 = vpack.c.bf16 %v574_v49, %v572_v48  ;;  %v576_v61 = vld [vmem:[#allocation2 + $0x40] sm:$0xff] }
  0x64   :  { %v1262_v51 = vld [vmem:[#allocation7 + $0x18] sm:$0xff]  ;;  %v577_v57 = vld [vmem:[#allocation2 + $0x48] sm:$0xff]  ;;  %v578_v62 = vld [vmem:[#allocation2 + $0x50] sm:$0xff] }
  0x65   :  { %324 = vmatpush1.bf16.msra.mxu0 %v279_v46  ;;  %v648_v46 = vpack.c.bf16 %v570_v43, %v568_v40  ;;  %692 = vmatprep.subr.bf16.mxu1 %v649_v42  ;;  %v1340_v56 = vpack.c.bf16 %v1262_v51, %v1260_v50  ;;  %v1264_v2 = vld [vmem:[#allocation7 + $0x28] sm:$0xff]  ;;  %v1266_v3 = vld [vmem:[#allocation7 + $0x38] sm:$0xff]  ;;  %v1263_v4 = vld [vmem:[#allocation7 + $0x20] sm:$0xff]  ;;  %v652_v9 = vpack.c.bf16 %v578_v62, %v576_v61 }
  0x66   :  { %325 = vmatprep.subr.bf16.mxu0 %v282_v47  ;;  %v651_v47 = vpack.c.bf16 %v575_v45, %v573_v44  ;;  %v1265_v5 = vld [vmem:[#allocation7 + $0x30] sm:$0xff]  ;;  %v116_v8 = vld [vmem:[%s5185_s0 + $0x48] sm:$0xff]  ;;  %v1342_v10 = vpack.c.bf16 %v1266_v3, %v1264_v2  ;;  %v118_v11 = vld [vmem:[%s5185_s0 + $0x58] sm:$0xff] }
  0x67   :  { %693 = vmatpush1.bf16.msra.mxu1 %v648_v46  ;;  %v582_v14 = vld [vmem:[#allocation2 + $0x70] sm:$0xff]  ;;  %v1341_v15 = vpack.c.bf16 %v1265_v5, %v1263_v4  ;;  %v585_v16 = vld [vmem:[#allocation2 + $0x88] sm:$0xff]  ;;  %v587_v17 = vld [vmem:[#allocation2 + $0x98] sm:$0xff] }
  0x68   :  { %694 = vmatprep.subr.bf16.mxu1 %v651_v47  ;;  %v1267_v20 = vld [vmem:[#allocation7 + $0x40] sm:$0xff]  ;;  %v1269_v21 = vld [vmem:[#allocation7 + $0x50] sm:$0xff]  ;;  %v657_v26 = vpack.c.bf16 %v587_v17, %v585_v16  ;;  %v589_v29 = vld [vmem:[#allocation2 + $0xa8] sm:$0xff] }
  0x69   :  { %326 = vmatpush1.bf16.msra.mxu0 %v281_v52  ;;  %v1259_v52 = vld [vmem:[#allocation7] sm:$0xff]  ;;  %v586_v28 = vld [vmem:[#allocation2 + $0x90] sm:$0xff]  ;;  %v1272_v32 = vld [vmem:[#allocation7 + $0x68] sm:$0xff] }
  0x6a   :  { %327 = vmatprep.subr.bf16.mxu0 %v284_v53  ;;  %v1261_v53 = vld [vmem:[#allocation7 + $0x10] sm:$0xff]  ;;  %v584_v27 = vld [vmem:[#allocation2 + $0x80] sm:$0xff]  ;;  %v1274_v33 = vld [vmem:[#allocation7 + $0x78] sm:$0xff] }
  0x6b   :  { %v1339_v60 = vpack.c.bf16 %v1261_v53, %v1259_v52  ;;  %695 = vmatpush1.bf16.msra.mxu1 %v650_v55  ;;  %v1271_v34 = vld [vmem:[#allocation7 + $0x60] sm:$0xff]  ;;  %v1273_v35 = vld [vmem:[#allocation7 + $0x70] sm:$0xff]  ;;  %v120_v38 = vld [vmem:[%s5185_s0 + $0x68] sm:$0xff]  ;;  %v656_v39 = vpack.c.bf16 %v586_v28, %v584_v27  ;;  %v1346_v40 = vpack.c.bf16 %v1274_v33, %v1272_v32 }
  0x6c   :  { %v588_v43 = vld [vmem:[#allocation2 + $0xa0] sm:$0xff]  ;;  %v590_v44 = vld [vmem:[#allocation2 + $0xb0] sm:$0xff]  ;;  %v593_v45 = vld [vmem:[#allocation2 + $0xc8] sm:$0xff]  ;;  %v1345_v47 = vpack.c.bf16 %v1273_v35, %v1271_v34 }
  0x6d   :  { %328 = vmatpush1.bf16.msra.mxu0 %v283_v58  ;;  %v579_v58 = vld [vmem:[#allocation2 + $0x58] sm:$0xff]  ;;  %v1276_v48 = vld [vmem:[#allocation7 + $0x88] sm:$0xff]  ;;  %v1275_v50 = vld [vmem:[#allocation7 + $0x80] sm:$0xff]  ;;  %v658_v53 = vpack.c.bf16 %v590_v44, %v588_v43 }
  0x6e   :  { %329 = vmatprep.subr.bf16.mxu0 %v286_v59  ;;  %v238_v59 = vpack.c.bf16 %v114_v37, %v112_v36  ;;  %v653_v63 = vpack.c.bf16 %v579_v58, %v577_v57  ;;  %v115_v36 = vld [vmem:[%s5185_s0 + $0x40] sm:$0xff]  ;;  %v117_v37 = vld [vmem:[%s5185_s0 + $0x50] sm:$0xff]  ;;  %v595_v46 = vld [vmem:[#allocation2 + $0xd8] sm:$0xff] }
  0x6f   :  { %v1278_v49 = vld [vmem:[#allocation7 + $0x98] sm:$0xff]  ;;  %v1277_v51 = vld [vmem:[#allocation7 + $0x90] sm:$0xff]  ;;  %v239_v52 = vpack.c.bf16 %v117_v37, %v115_v36  ;;  %v592_v57 = vld [vmem:[#allocation2 + $0xc0] sm:$0xff] }
  0x70   :  { %696 = vmatprep.subr.bf16.mxu1 %v653_v63  ;;  %v594_v58 = vld [vmem:[#allocation2 + $0xd0] sm:$0xff]  ;;  %v1347_v61 = vpack.c.bf16 %v1277_v51, %v1275_v50  ;;  %v119_v62 = vld [vmem:[%s5185_s0 + $0x60] sm:$0xff]  ;;  %v126_v5 = vld [vmem:[%s5185_s0 + $0x98] sm:$0xff] }
  0x71   :  { %330 = vmatpush1.bf16.msra.mxu0 %v285_v0  ;;  %v581_v0 = vld [vmem:[#allocation2 + $0x68] sm:$0xff]  ;;  %697 = vmatpush1.bf16.msra.mxu1 %v652_v9  ;;  %v121_v63 = vld [vmem:[%s5185_s0 + $0x70] sm:$0xff]  ;;  %v596_v3 = vld [vmem:[#allocation2 + $0xe0] sm:$0xff] }
  0x72   :  { %331 = vmatprep.subr.bf16.mxu0 %v288_v1  ;;  %v583_v1 = vld [vmem:[#allocation2 + $0x78] sm:$0xff]  ;;  %v598_v4 = vld [vmem:[#allocation2 + $0xf0] sm:$0xff]  ;;  %v123_v16 = vld [vmem:[%s5185_s0 + $0x80] sm:$0xff] }
  0x73   :  { %v662_v9 = vpack.c.bf16 %v598_v4, %v596_v3  ;;  %v125_v17 = vld [vmem:[%s5185_s0 + $0x90] sm:$0xff]  ;;  %v127_v33 = vld [vmem:[%s5185_s0 + $0xa0] sm:$0xff]  ;;  %v132_v35 = vld [vmem:[%s5185_s0 + $0xc8] sm:$0xff] }
  0x74   :  { %v129_v34 = vld [vmem:[%s5185_s0 + $0xb0] sm:$0xff]  ;;  %v134_v36 = vld [vmem:[%s5185_s0 + $0xd8] sm:$0xff]  ;;  %v139_v51 = vld [vmem:[%s5185_s0 + $0x100] sm:$0xff] }
  0x75   :  { %332 = vmatpush1.bf16.msra.mxu0 %v287_v6  ;;  %v111_v6 = vld [vmem:[%s5185_s0 + $0x20] sm:$0xff]  ;;  %v245_v37 = vpack.c.bf16 %v129_v34, %v127_v33  ;;  %v162_v33 = vld [vmem:[%s5185_s0 + $0x1b8] sm:$0xff] }
  0x76   :  { %333 = vmatprep.subr.bf16.mxu0 %v290_v7  ;;  %v113_v7 = vld [vmem:[%s5185_s0 + $0x30] sm:$0xff] }
  0x77   :  { %v237_v22 = vpack.c.bf16 %v113_v7, %v111_v6  ;;  %v601_v6 = vld [vmem:[#allocation2 + $0x108] sm:$0xff]  ;;  %v603_v7 = vld [vmem:[#allocation2 + $0x118] sm:$0xff] }
  0x79   :  { %334 = vmatpush1.bf16.msra.mxu0 %v289_v12  ;;  %v655_v12 = vpack.c.bf16 %v583_v1, %v581_v0  ;;  %v660_v0 = vpack.c.bf16 %v594_v58, %v592_v57  ;;  %v124_v1 = vld [vmem:[%s5185_s0 + $0x88] sm:$0xff]  ;;  %v143_v57 = vld [vmem:[%s5185_s0 + $0x120] sm:$0xff]  ;;  %v145_v58 = vld [vmem:[%s5185_s0 + $0x130] sm:$0xff] }
  0x7a   :  { %335 = vmatprep.subr.bf16.mxu0 %v292_v13  ;;  %v580_v13 = vld [vmem:[#allocation2 + $0x60] sm:$0xff] }
  0x7b   :  { %v654_v23 = vpack.c.bf16 %v582_v14, %v580_v13  ;;  %698 = vmatprep.subr.bf16.mxu1 %v655_v12  ;;  %v600_v12 = vld [vmem:[#allocation2 + $0x100] sm:$0xff]  ;;  %v602_v13 = vld [vmem:[#allocation2 + $0x110] sm:$0xff]  ;;  %v605_v14 = vld [vmem:[#allocation2 + $0x128] sm:$0xff] }
  0x7d   :  { %336 = vmatpush1.bf16.msra.mxu0 %v291_v18  ;;  %v1268_v18 = vld [vmem:[#allocation7 + $0x48] sm:$0xff]  ;;  %699 = vmatpush1.bf16.msra.mxu1 %v654_v23  ;;  %v130_v23 = vld [vmem:[%s5185_s0 + $0xb8] sm:$0xff] }
  0x7e   :  { %337 = vmatprep.subr.bf16.mxu0 %v294_v19  ;;  %v1270_v19 = vld [vmem:[#allocation7 + $0x58] sm:$0xff]  ;;  %700 = vmatprep.subr.bf16.mxu1 %v657_v26  ;;  %v243_v26 = vpack.c.bf16 %v125_v17, %v123_v16  ;;  %v617_v16 = vld [vmem:[#allocation2 + $0x188] sm:$0xff] }
  0x7f   :  { %v619_v17 = vld [vmem:[#allocation2 + $0x198] sm:$0xff] }
  0x81   :  { %338 = vmatpush1.bf16.msra.mxu0 %v293_v24  ;;  %v1344_v24 = vpack.c.bf16 %v1270_v19, %v1268_v18  ;;  %701 = vmatpush1.bf16.msra.mxu1 %v656_v39  ;;  %v664_v18 = vpack.c.bf16 %v602_v13, %v600_v12  ;;  %v128_v19 = vld [vmem:[%s5185_s0 + $0xa8] sm:$0xff]  ;;  %v131_v39 = vld [vmem:[%s5185_s0 + $0xc0] sm:$0xff]  ;;  %v158_v13 = vld [vmem:[%s5185_s0 + $0x198] sm:$0xff] }
  0x82   :  { %339 = vmatprep.subr.bf16.mxu0 %v296_v25  ;;  %v240_v25 = vpack.c.bf16 %v118_v11, %v116_v8  ;;  %v241_v8 = vpack.c.bf16 %v121_v63, %v119_v62  ;;  %v665_v11 = vpack.c.bf16 %v603_v7, %v601_v6  ;;  %v246_v28 = vpack.c.bf16 %v130_v23, %v128_v19  ;;  %v147_v63 = vld [vmem:[%s5185_s0 + $0x140] sm:$0xff]  ;;  %v613_v6 = vld [vmem:[#allocation2 + $0x168] sm:$0xff]  ;;  %v615_v7 = vld [vmem:[#allocation2 + $0x178] sm:$0xff] }
  0x83   :  { %v156_v12 = vld [vmem:[%s5185_s0 + $0x188] sm:$0xff]  ;;  %v673_v19 = vpack.c.bf16 %v619_v17, %v617_v16  ;;  %v155_v23 = vld [vmem:[%s5185_s0 + $0x180] sm:$0xff]  ;;  %v169_v16 = vld [vmem:[%s5185_s0 + $0x1f0] sm:$0xff] }
  0x85   :  { %340 = vmatpush1.bf16.msra.mxu0 %v295_v30  ;;  %v591_v30 = vld [vmem:[#allocation2 + $0xb8] sm:$0xff] }
  0x86   :  { %341 = vmatprep.subr.bf16.mxu0 %v298_v31  ;;  %v1343_v31 = vpack.c.bf16 %v1269_v21, %v1267_v20  ;;  %v659_v42 = vpack.c.bf16 %v591_v30, %v589_v29  ;;  %v604_v21 = vld [vmem:[#allocation2 + $0x120] sm:$0xff] }
  0x87   :  { %v608_v30 = vld [vmem:[#allocation2 + $0x140] sm:$0xff] }
  0x88   :  { %702 = vmatprep.subr.bf16.mxu1 %v659_v42  ;;  %v138_v42 = vld [vmem:[%s5185_s0 + $0xf8] sm:$0xff] }
  0x89   :  { %342 = vmatpush1.bf16.msra.mxu0 %v297_v41  ;;  %v122_v41 = vld [vmem:[%s5185_s0 + $0x78] sm:$0xff]  ;;  %703 = vmatpush1.bf16.msra.mxu1 %v658_v53  ;;  %v144_v53 = vld [vmem:[%s5185_s0 + $0x128] sm:$0xff] }
  0x8a   :  { %1383 = vmatprep.subr.bf16.mxu0 %v1340_v56  ;;  %v242_v55 = vpack.c.bf16 %v122_v41, %v120_v38  ;;  %v661_v56 = vpack.c.bf16 %v595_v46, %v593_v45  ;;  %v248_v38 = vpack.c.bf16 %v134_v36, %v132_v35  ;;  %v136_v41 = vld [vmem:[%s5185_s0 + $0xe8] sm:$0xff]  ;;  %v135_v45 = vld [vmem:[%s5185_s0 + $0xe0] sm:$0xff]  ;;  %v137_v46 = vld [vmem:[%s5185_s0 + $0xf0] sm:$0xff] }
  0x8b   :  { %v250_v44 = vpack.c.bf16 %v138_v42, %v136_v41  ;;  %v620_v36 = vld [vmem:[#allocation2 + $0x1a0] sm:$0xff]  ;;  %v627_v41 = vld [vmem:[#allocation2 + $0x1d8] sm:$0xff] }
  0x8c   :  { %344 = vmatmul.mubr.bf16.vlgmr.msra.gmra.mrb[0].mxu0 %v235_v54  ;;  %v1348_v54 = vpack.c.bf16 %v1278_v49, %v1276_v48  ;;  %704 = vmatprep.subr.bf16.mxu1 %v661_v56  ;;  %v142_v48 = vld [vmem:[%s5185_s0 + $0x118] sm:$0xff]  ;;  %v249_v49 = vpack.c.bf16 %v137_v46, %v135_v45  ;;  %v626_v45 = vld [vmem:[#allocation2 + $0x1d0] sm:$0xff] }
  0x8d   :  { %353 = vmatprep.mubr.bf16.mxu0 %v238_v59  ;;  %1384 = vmatpush1.bf16.msra.mxu0 %v1339_v60  ;;  %v597_v59 = vld [vmem:[#allocation2 + $0xe8] sm:$0xff]  ;;  %v599_v60 = vld [vmem:[#allocation2 + $0xf8] sm:$0xff] }
  0x8e   :  { %1385 = vmatprep.subr.bf16.mxu0 %v1342_v10  ;;  %v663_v2 = vpack.c.bf16 %v599_v60, %v597_v59  ;;  %705 = vmatpush1.bf16.msra.mxu1 %v660_v0  ;;  %v244_v10 = vpack.c.bf16 %v126_v5, %v124_v1  ;;  %v148_v59 = vld [vmem:[%s5185_s0 + $0x148] sm:$0xff]  ;;  %v150_v60 = vld [vmem:[%s5185_s0 + $0x158] sm:$0xff]  ;;  %v149_v0 = vld [vmem:[%s5185_s0 + $0x150] sm:$0xff] }
  0x8f   :  { %v256_v62 = vpack.c.bf16 %v150_v60, %v148_v59  ;;  %v152_v1 = vld [vmem:[%s5185_s0 + $0x168] sm:$0xff]  ;;  %v255_v3 = vpack.c.bf16 %v149_v0, %v147_v63  ;;  %v151_v5 = vld [vmem:[%s5185_s0 + $0x160] sm:$0xff] }
  0x90   :  { %706 = vmatprep.subr.bf16.mxu1 %v663_v2  ;;  %v154_v2 = vld [vmem:[%s5185_s0 + $0x178] sm:$0xff]  ;;  %v628_v60 = vld [vmem:[#allocation2 + $0x1e0] sm:$0xff] }
  0x91   :  { %1386 = vmatpush1.bf16.msra.mxu0 %v1341_v15  ;;  %v607_v15 = vld [vmem:[#allocation2 + $0x138] sm:$0xff]  ;;  %v258_v4 = vpack.c.bf16 %v154_v2, %v152_v1  ;;  %v163_v1 = vld [vmem:[%s5185_s0 + $0x1c0] sm:$0xff]  ;;  %v1288_v2 = vld [vmem:[#allocation7 + $0xe8] sm:$0xff] }
  0x92   :  { %1387 = vmatprep.subr.bf16.mxu0 %v1344_v24  ;;  %707 = vmatpush1.bf16.msra.mxu1 %v662_v9  ;;  %v667_v20 = vpack.c.bf16 %v607_v15, %v605_v14  ;;  %v609_v24 = vld [vmem:[#allocation2 + $0x148] sm:$0xff]  ;;  %v671_v9 = vpack.c.bf16 %v615_v7, %v613_v6  ;;  %v1287_v6 = vld [vmem:[#allocation7 + $0xe0] sm:$0xff]  ;;  %v1289_v7 = vld [vmem:[#allocation7 + $0xf0] sm:$0xff] }
  0x93   :  { %708 = vmatprep.subr.bf16.mxu1 %v665_v11  ;;  %v614_v11 = vld [vmem:[#allocation2 + $0x170] sm:$0xff] }
  0x94   :  { %354 = vmatmul.mubr.bf16.gmra.mrb[4].mxu0 %v237_v22  ;;  %v606_v22 = vld [vmem:[#allocation2 + $0x130] sm:$0xff] }
  0x95   :  { %363 = vmatprep.mubr.bf16.mxu0 %v240_v25  ;;  %1388 = vmatpush1.bf16.msra.mxu0 %v1343_v31  ;;  %v611_v25 = vld [vmem:[#allocation2 + $0x158] sm:$0xff]  ;;  %v666_v27 = vpack.c.bf16 %v606_v22, %v604_v21  ;;  %v610_v31 = vld [vmem:[#allocation2 + $0x150] sm:$0xff] }
  0x96   :  { %1389 = vmatprep.subr.bf16.mxu0 %v1346_v40  ;;  %709 = vmatpush1.bf16.msra.mxu1 %v664_v18  ;;  %v669_v29 = vpack.c.bf16 %v611_v25, %v609_v24  ;;  %v668_v32 = vpack.c.bf16 %v610_v31, %v608_v30  ;;  %v133_v40 = vld [vmem:[%s5185_s0 + $0xd0] sm:$0xff]  ;;  %v260_v18 = vpack.c.bf16 %v158_v13, %v156_v12  ;;  %v160_v25 = vld [vmem:[%s5185_s0 + $0x1a8] sm:$0xff]  ;;  %v1279_v30 = vld [vmem:[#allocation7 + $0xa0] sm:$0xff] }
  0x97   :  { %710 = vmatprep.subr.bf16.mxu1 %v667_v20  ;;  %v247_v43 = vpack.c.bf16 %v133_v40, %v131_v39  ;;  %v616_v20 = vld [vmem:[#allocation2 + $0x180] sm:$0xff]  ;;  %v618_v21 = vld [vmem:[#allocation2 + $0x190] sm:$0xff]  ;;  %v625_v40 = vld [vmem:[#allocation2 + $0x1c8] sm:$0xff]  ;;  %v262_v42 = vpack.c.bf16 %v162_v33, %v160_v25 }
  0x98   :  { %v672_v22 = vpack.c.bf16 %v618_v21, %v616_v20  ;;  %v157_v24 = vld [vmem:[%s5185_s0 + $0x190] sm:$0xff]  ;;  %v167_v13 = vld [vmem:[%s5185_s0 + $0x1e0] sm:$0xff] }
  0x99   :  { %1390 = vmatpush1.bf16.msra.mxu0 %v1345_v47  ;;  %v140_v47 = vld [vmem:[%s5185_s0 + $0x108] sm:$0xff]  ;;  %v1281_v31 = vld [vmem:[#allocation7 + $0xb0] sm:$0xff]  ;;  %v259_v39 = vpack.c.bf16 %v157_v24, %v155_v23  ;;  %v265_v21 = vpack.c.bf16 %v169_v16, %v167_v13  ;;  %v1298_v23 = vld [vmem:[#allocation7 + $0x138] sm:$0xff] }
  0x9a   :  { %1391 = vmatprep.subr.bf16.mxu0 %v1348_v54  ;;  %711 = vmatpush1.bf16.msra.mxu1 %v666_v27  ;;  %v252_v50 = vpack.c.bf16 %v142_v48, %v140_v47  ;;  %v146_v54 = vld [vmem:[%s5185_s0 + $0x138] sm:$0xff]  ;;  %v1349_v34 = vpack.c.bf16 %v1281_v31, %v1279_v30  ;;  %v159_v47 = vld [vmem:[%s5185_s0 + $0x1a0] sm:$0xff]  ;;  %v161_v48 = vld [vmem:[%s5185_s0 + $0x1b0] sm:$0xff] }
  0x9b   :  { %712 = vmatprep.subr.bf16.mxu1 %v669_v29  ;;  %v254_v56 = vpack.c.bf16 %v146_v54, %v144_v53  ;;  %v1282_v27 = vld [vmem:[#allocation7 + $0xb8] sm:$0xff]  ;;  %v1283_v54 = vld [vmem:[#allocation7 + $0xc0] sm:$0xff]  ;;  %v261_v63 = vpack.c.bf16 %v161_v48, %v159_v47 }
  0x9c   :  { %364 = vmatmul.mubr.bf16.gmra.mrb[8].mxu0 %v239_v52  ;;  %v141_v52 = vld [vmem:[%s5185_s0 + $0x110] sm:$0xff]  ;;  %v1295_v25 = vld [vmem:[#allocation7 + $0x120] sm:$0xff]  ;;  %v1314_v47 = vld [vmem:[#allocation7 + $0x1b8] sm:$0xff] }
  0x9d   :  { %373 = vmatprep.mubr.bf16.mxu0 %v242_v55  ;;  %1392 = vmatpush1.bf16.msra.mxu0 %v1347_v61  ;;  %v251_v55 = vpack.c.bf16 %v141_v52, %v139_v51  ;;  %v253_v61 = vpack.c.bf16 %v145_v58, %v143_v57  ;;  %v1286_v51 = vld [vmem:[#allocation7 + $0xd8] sm:$0xff]  ;;  %v629_v52 = vld [vmem:[#allocation2 + $0x1e8] sm:$0xff]  ;;  %v1299_v31 = vld [vmem:[#allocation7 + $0x140] sm:$0xff] }
  0x9e   :  { %713 = vmatpush1.bf16.msra.mxu1 %v668_v32  ;;  %v623_v32 = vld [vmem:[#allocation2 + $0x1b8] sm:$0xff] }
  0x9f   :  { %714 = vmatprep.subr.bf16.mxu1 %v671_v9  ;;  %v166_v57 = vld [vmem:[%s5185_s0 + $0x1d8] sm:$0xff] }
  0xa0   :  { %v170_v9 = vld [vmem:[%s5185_s0 + $0x1f8] sm:$0xff] }
  0xa4   :  { %374 = vmatmul.mubr.bf16.gmra.mrb[12].mxu0 %v241_v8  ;;  %v153_v8 = vld [vmem:[%s5185_s0 + $0x170] sm:$0xff] }
  0xa5   :  { %383 = vmatprep.mubr.bf16.mxu0 %v244_v10  ;;  %v612_v10 = vld [vmem:[#allocation2 + $0x160] sm:$0xff]  ;;  %v257_v15 = vpack.c.bf16 %v153_v8, %v151_v5  ;;  %v168_v8 = vld [vmem:[%s5185_s0 + $0x1e8] sm:$0xff] }
  0xa6   :  { %v670_v14 = vpack.c.bf16 %v614_v11, %v612_v10  ;;  %v1353_v10 = vpack.c.bf16 %v1289_v7, %v1287_v6  ;;  %v266_v12 = vpack.c.bf16 %v170_v9, %v168_v8  ;;  %v299_v6 = vld [vmem:[%s5187_s2] sm:$0x3]  ;;  %s2704_s2 = sshll.u32 %s5200_s15, 4  ;;  %s2705_s2 = int_to_ptr.vmem [resolvable:$true] %s2704_s2 }
  0xa7   :  { %s3117_s16 = scalar_lea.vmem %s2705_s2, 16  ;;  %p3122_p5 = scmp.lt.s32.totalorder %s2705_s2, %s2705_s2 }
  0xa8   :  { %715 = vmatpush1.bf16.msra.mxu1 %v670_v14  ;;  %v1292_v14 = vld [vmem:[#allocation7 + $0x108] sm:$0xff]  ;;  %p3118_p4 = scmp.ne.s32.totalorder %s2705_s2, %s3117_s16  ;;  %p3123_p6 = scmp.lt.s32.totalorder %s3117_s16, %s3117_s16 }
  0xa9   :  { %716 = vmatprep.subr.bf16.mxu1 %v673_v19  ;;  %v1293_v19 = vld [vmem:[#allocation7 + $0x110] sm:$0xff] }
  0xaa   :  { %p3124_p7 = por %p3123_p6, %p3122_p5 }
  0xac   :  { %384 = vmatmul.mubr.bf16.gmra.mrb[16].mxu0 %v243_v26  ;;  %v1280_v26 = vld [vmem:[#allocation7 + $0xa8] sm:$0xff]  ;;  %717 = vmatpush1.bf16.msra.mxu1 %v672_v22  ;;  %p3125_p8 = pnand %p3124_p7, %p3118_p4 }
  0xad   :  { %393 = vmatprep.mubr.bf16.mxu0 %v246_v28  ;;  %v621_v28 = vld [vmem:[#allocation2 + $0x1a8] sm:$0xff]  ;;  %v1350_v29 = vpack.c.bf16 %v1282_v27, %v1280_v26  ;;  %v1297_v26 = vld [vmem:[#allocation7 + $0x130] sm:$0xff] }
  0xae   :  { %v675_v35 = vpack.c.bf16 %v623_v32, %v621_v28  ;;  %v1296_v22 = vld [vmem:[#allocation7 + $0x128] sm:$0xff]  ;;  %v1357_v27 = vpack.c.bf16 %v1297_v26, %v1295_v25  ;;  %v1301_v32 = vld [vmem:[#allocation7 + $0x150] sm:$0xff] }
  0xaf   :  { %1393 = vmatprep.subr.bf16.mxu0 %v1350_v29  ;;  %v1358_v24 = vpack.c.bf16 %v1298_v23, %v1296_v22  ;;  %v1300_v28 = vld [vmem:[#allocation7 + $0x148] sm:$0xff]  ;;  %v1302_v29 = vld [vmem:[#allocation7 + $0x158] sm:$0xff]  ;;  %v1359_v33 = vpack.c.bf16 %v1301_v32, %v1299_v31 }
  0xb0   :  { %1394 = vmatpush1.bf16.msra.mxu0 %v1349_v34  ;;  %718 = vmatprep.subr.bf16.mxu1 %v675_v35  ;;  %v1360_v30 = vpack.c.bf16 %v1302_v29, %v1300_v28  ;;  %v1304_v34 = vld [vmem:[#allocation7 + $0x168] sm:$0xff]  ;;  %v1306_v35 = vld [vmem:[#allocation7 + $0x178] sm:$0xff] }
  0xb4   :  { %394 = vmatmul.mubr.bf16.gmra.mrb[20].mxu0 %v245_v37  ;;  %v622_v37 = vld [vmem:[#allocation2 + $0x1b0] sm:$0xff] }
  0xb5   :  { %403 = vmatprep.mubr.bf16.mxu0 %v248_v38  ;;  %v674_v38 = vpack.c.bf16 %v622_v37, %v620_v36  ;;  %v1362_v36 = vpack.c.bf16 %v1306_v35, %v1304_v34  ;;  %v1303_v37 = vld [vmem:[#allocation7 + $0x160] sm:$0xff] }
  0xb7   :  { %719 = vmatpush1.bf16.msra.mxu1 %v674_v38  ;;  %v1305_v38 = vld [vmem:[#allocation7 + $0x170] sm:$0xff] }
  0xbc   :  { %404 = vmatmul.mubr.bf16.gmra.mrb[24].mxu0 %v247_v43  ;;  %v677_v43 = vpack.c.bf16 %v627_v41, %v625_v40  ;;  %v1308_v40 = vld [vmem:[#allocation7 + $0x188] sm:$0xff]  ;;  %v1310_v41 = vld [vmem:[#allocation7 + $0x198] sm:$0xff] }
  0xbd   :  { %413 = vmatprep.mubr.bf16.mxu0 %v250_v44  ;;  %v624_v44 = vld [vmem:[#allocation2 + $0x1c0] sm:$0xff] }
  0xbe   :  { %v676_v46 = vpack.c.bf16 %v626_v45, %v624_v44  ;;  %720 = vmatprep.subr.bf16.mxu1 %v677_v43  ;;  %v1307_v43 = vld [vmem:[#allocation7 + $0x180] sm:$0xff]  ;;  %v1309_v44 = vld [vmem:[#allocation7 + $0x190] sm:$0xff] }
  0xbf   :  { %v1363_v45 = vpack.c.bf16 %v1309_v44, %v1307_v43 }
  0xc0   :  { %721 = vmatpush1.bf16.msra.mxu1 %v676_v46  ;;  %v1312_v46 = vld [vmem:[#allocation7 + $0x1a8] sm:$0xff] }
  0xc1   :  { %v1366_v48 = vpack.c.bf16 %v1314_v47, %v1312_v46 }
  0xc4   :  { %414 = vmatmul.mubr.bf16.gmra.mrb[28].mxu0 %v249_v49  ;;  %v164_v49 = vld [vmem:[%s5185_s0 + $0x1c8] sm:$0xff] }
  0xc5   :  { %423 = vmatprep.mubr.bf16.mxu0 %v252_v50  ;;  %v1284_v50 = vld [vmem:[#allocation7 + $0xc8] sm:$0xff]  ;;  %v264_v0 = vpack.c.bf16 %v166_v57, %v164_v49  ;;  %v1311_v49 = vld [vmem:[#allocation7 + $0x1a0] sm:$0xff] }
  0xc6   :  { %v1352_v53 = vpack.c.bf16 %v1286_v51, %v1284_v50  ;;  %v1313_v50 = vld [vmem:[#allocation7 + $0x1b0] sm:$0xff] }
  0xc7   :  { %v1365_v51 = vpack.c.bf16 %v1313_v50, %v1311_v49 }
  0xc8   :  { %1395 = vmatprep.subr.bf16.mxu0 %v1352_v53  ;;  %v1318_v53 = vld [vmem:[#allocation7 + $0x1d8] sm:$0xff] }
  0xcc   :  { %424 = vmatmul.mubr.bf16.gmra.mrb[32].mxu0 %v251_v55  ;;  %v1285_v55 = vld [vmem:[#allocation7 + $0xd0] sm:$0xff] }
  0xcd   :  { %433 = vmatprep.mubr.bf16.mxu0 %v254_v56  ;;  %v631_v56 = vld [vmem:[#allocation2 + $0x1f8] sm:$0xff]  ;;  %v1351_v58 = vpack.c.bf16 %v1285_v55, %v1283_v54  ;;  %v1315_v55 = vld [vmem:[#allocation7 + $0x1c0] sm:$0xff] }
  0xce   :  { %v679_v59 = vpack.c.bf16 %v631_v56, %v629_v52  ;;  %v1316_v52 = vld [vmem:[#allocation7 + $0x1c8] sm:$0xff]  ;;  %v1317_v56 = vld [vmem:[#allocation7 + $0x1d0] sm:$0xff] }
  0xcf   :  { %1396 = vmatpush1.bf16.msra.mxu0 %v1351_v58  ;;  %v1368_v54 = vpack.c.bf16 %v1318_v53, %v1316_v52  ;;  %v1367_v57 = vpack.c.bf16 %v1317_v56, %v1315_v55  ;;  %v1320_v58 = vld [vmem:[#allocation7 + $0x1e8] sm:$0xff] }
  0xd0   :  { %722 = vmatprep.subr.bf16.mxu1 %v679_v59  ;;  %v1322_v59 = vld [vmem:[#allocation7 + $0x1f8] sm:$0xff] }
  0xd4   :  { %434 = vmatmul.mubr.bf16.gmra.mrb[36].mxu0 %v253_v61  ;;  %v630_v61 = vld [vmem:[#allocation2 + $0x1f0] sm:$0xff] }
  0xd5   :  { %443 = vmatprep.mubr.bf16.mxu0 %v256_v62  ;;  %v678_v62 = vpack.c.bf16 %v630_v61, %v628_v60  ;;  %v1370_v60 = vpack.c.bf16 %v1322_v59, %v1320_v58  ;;  %v1319_v61 = vld [vmem:[#allocation7 + $0x1e0] sm:$0xff] }
  0xd7   :  { %723 = vmatpush1.bf16.msra.mxu1 %v678_v62  ;;  %v1321_v62 = vld [vmem:[#allocation7 + $0x1f0] sm:$0xff] }
  0xdc   :  { %444 = vmatmul.mubr.bf16.gmra.mrb[40].mxu0 %v255_v3  ;;  %v1290_v3 = vld [vmem:[#allocation7 + $0xf8] sm:$0xff] }
  0xdd   :  { %453 = vmatprep.mubr.bf16.mxu0 %v258_v4  ;;  %v165_v4 = vld [vmem:[%s5185_s0 + $0x1d0] sm:$0xff]  ;;  %v1354_v5 = vpack.c.bf16 %v1290_v3, %v1288_v2  ;;  %v5201_v3 = vlaneseq }
  0xde   :  { %v263_v11 = vpack.c.bf16 %v165_v4, %v163_v1  ;;  %v1952_v1 = vld [vmem:[%s5188_s3 + $0x18] sm:$0xff] }
  0xdf   :  { %1397 = vmatprep.subr.bf16.mxu0 %v1354_v5  ;;  %v3692_v4 = vshrl.u32 %v5201_v3, 7 }
  0xe0   :  { %1398 = vmatpush1.bf16.msra.mxu0 %v1353_v10 }
  0xe1   :  { %5256 = vst [vmem:[#allocation15_spill] sm:$0xff] %v3692_v4  ;;  %v3695_v5 = vsub.s32 0, %v3692_v4  ;;  %v3701_v7 = vsub.s32 1, %v3692_v4 }
  0xe3   :  { %5257 = vst [vmem:[#allocation16_spill] sm:$0xff] %v3695_v5  ;;  %5258 = vst [vmem:[#allocation17_spill] sm:$0xff] %v3701_v7  ;;  %v3704_v8 = vrot.slane %v299_v6, %v3695_v5  ;;  %v3707_v9 = vrot.slane %v299_v6, %v3701_v7 }
  0xe4   :  { %454 = vmatmul.mubr.bf16.gmra.mrb[44].mxu0 %v257_v15  ;;  %v1294_v15 = vld [vmem:[#allocation7 + $0x118] sm:$0xff] }
  0xe5   :  { %463 = vmatprep.mubr.bf16.mxu0 %v260_v18  ;;  %v1356_v17 = vpack.c.bf16 %v1294_v15, %v1292_v14  ;;  %v1291_v18 = vld [vmem:[#allocation7 + $0x100] sm:$0xff] }
  0xe6   :  { %v1355_v20 = vpack.c.bf16 %v1293_v19, %v1291_v18 }
  0xe7   :  { %1399 = vmatprep.subr.bf16.mxu0 %v1356_v17 }
  0xe8   :  { %1400 = vmatpush1.bf16.msra.mxu0 %v1355_v20 }
  0xe9   :  { %1401 = vmatprep.subr.bf16.mxu0 %v1358_v24 }
  0xec   :  { %464 = vmatmul.mubr.bf16.gmra.mrb[48].mxu0 %v259_v39  ;;  %v1361_v39 = vpack.c.bf16 %v1305_v38, %v1303_v37 }
  0xed   :  { %473 = vmatprep.mubr.bf16.mxu0 %v262_v42  ;;  %1402 = vmatpush1.bf16.msra.mxu0 %v1357_v27  ;;  %v1364_v42 = vpack.c.bf16 %v1310_v41, %v1308_v40 }
  0xee   :  { %1403 = vmatprep.subr.bf16.mxu0 %v1360_v30 }
  0xf1   :  { %1404 = vmatpush1.bf16.msra.mxu0 %v1359_v33 }
  0xf2   :  { %1405 = vmatprep.subr.bf16.mxu0 %v1362_v36 }
  0xf4   :  { %474 = vmatmul.mubr.bf16.gmra.mrb[52].mxu0 %v261_v63  ;;  %v1369_v63 = vpack.c.bf16 %v1321_v62, %v1319_v61 }
  0xf5   :  { %483 = vmatprep.mubr.bf16.mxu0 %v264_v0  ;;  %1406 = vmatpush1.bf16.msra.mxu0 %v1361_v39  ;;  %v1950_v0 = vld [vmem:[%s5188_s3 + $0x8] sm:$0xff] }
  0xf6   :  { %1407 = vmatprep.subr.bf16.mxu0 %v1364_v42  ;;  %v2014_v2 = vpack.c.bf16 %v1952_v1, %v1950_v0 }
  0xf9   :  { %1408 = vmatpush1.bf16.msra.mxu0 %v1363_v45 }
  0xfa   :  { %1409 = vmatprep.subr.bf16.mxu0 %v1366_v48 }
  0xfc   :  { %484 = vmatmul.mubr.bf16.gmra.mrb[56].mxu0 %v263_v11 }
  0xfd   :  { %493 = vmatprep.mubr.bf16.mxu0 %v266_v12  ;;  %1410 = vmatpush1.bf16.msra.mxu0 %v1365_v51 }
  0xfe   :  { %1411 = vmatprep.subr.bf16.mxu0 %v1368_v54 }
 0x101   :  { %1412 = vmatpush1.bf16.msra.mxu0 %v1367_v57 }
 0x102   :  { %1413 = vmatprep.subr.bf16.mxu0 %v1370_v60 }
 0x104   :  { %494 = vmatmul.mubr.bf16.gmra.mrb[60].mxu0 %v265_v21 }
 0x105   :  { %1414 = vmatpush1.bf16.msra.mxu0 %v1369_v63 }
 0x106   :  { %2057 = vmatprep.subr.bf16.mxu0 %v2014_v2 }
 0x15f   :  { %v345_v10 = vpop.f32.mrb[0].mxu0 }
 0x160   :  { %v346_v11 = vadd.f32 %v345_v10, %v3704_v8  ;;  %v347_v12 = vpop.f32.mrb[1].mxu0 }
 0x161   :  { %v348_v13 = vadd.f32 %v347_v12, %v3707_v9  ;;  %v349_v14 = vpop.f32.mrb[2].mxu0 }
 0x162   :  { %2849 = vtanh.f32 %v346_v11  ;;  %v350_v15 = vadd.f32 %v349_v14, %v3704_v8  ;;  %v351_v16 = vpop.f32.mrb[3].mxu0 }
 0x163   :  { %2851 = vtanh.f32 %v348_v13  ;;  %v352_v17 = vadd.f32 %v351_v16, %v3707_v9 }
 0x164   :  { %2853 = vtanh.f32 %v350_v15 }
 0x165   :  { %2855 = vtanh.f32 %v352_v17 }
 0x167   :  { %v355_v18 = vpop.f32.mrb[4].mxu0 }
 0x168   :  { %v356_v19 = vadd.f32 %v355_v18, %v3704_v8  ;;  %v357_v20 = vpop.f32.mrb[5].mxu0 }
 0x169   :  { %v358_v21 = vadd.f32 %v357_v20, %v3707_v9  ;;  %v359_v22 = vpop.f32.mrb[6].mxu0 }
 0x16a   :  { %2857 = vtanh.f32 %v356_v19  ;;  %v360_v23 = vadd.f32 %v359_v22, %v3704_v8  ;;  %v361_v24 = vpop.f32.mrb[7].mxu0 }
 0x16b   :  { %2859 = vtanh.f32 %v358_v21  ;;  %v362_v25 = vadd.f32 %v361_v24, %v3707_v9 }
 0x16c   :  { %v2850_v26 = vpop.eup %2849  ;;  %2861 = vtanh.f32 %v360_v23 }
 0x16d   :  { %v2852_v27 = vpop.eup %2851  ;;  %2863 = vtanh.f32 %v362_v25 }
 0x16e   :  { %v2854_v28 = vpop.eup %2853 }
 0x16f   :  { %v2856_v29 = vpop.eup %2855  ;;  %v365_v30 = vpop.f32.mrb[8].mxu0  ;;  %v3717_v31 = vpack.c.bf16 %v2854_v28, %v2850_v26 }
 0x170   :  { %v366_v32 = vadd.f32 %v365_v30, %v3704_v8  ;;  %v367_v33 = vpop.f32.mrb[9].mxu0  ;;  %v3720_v34 = vpack.c.bf16 %v2856_v29, %v2852_v27 }
 0x171   :  { %v368_v35 = vadd.f32 %v367_v33, %v3707_v9  ;;  %v369_v36 = vpop.f32.mrb[10].mxu0 }
 0x172   :  { %2865 = vtanh.f32 %v366_v32  ;;  %v370_v37 = vadd.f32 %v369_v36, %v3704_v8  ;;  %v371_v38 = vpop.f32.mrb[11].mxu0  ;;  %724 = vmatprep.mubr.bf16.mxu1 %v3720_v34 }
 0x173   :  { %2867 = vtanh.f32 %v368_v35  ;;  %v372_v39 = vadd.f32 %v371_v38, %v3707_v9  ;;  %725 = vmatmul.mubr.bf16.vlgmr.msra.gmra.mrb[0].mxu1 %v3717_v31 }
 0x174   :  { %v2858_v40 = vpop.eup %2857  ;;  %2869 = vtanh.f32 %v370_v37 }
 0x175   :  { %v2860_v41 = vpop.eup %2859  ;;  %2871 = vtanh.f32 %v372_v39 }
 0x176   :  { %v2862_v42 = vpop.eup %2861 }
 0x177   :  { %v2864_v43 = vpop.eup %2863  ;;  %v375_v44 = vpop.f32.mrb[12].mxu0  ;;  %v3727_v45 = vpack.c.bf16 %v2862_v42, %v2858_v40 }
 0x178   :  { %v376_v46 = vadd.f32 %v375_v44, %v3704_v8  ;;  %v377_v47 = vpop.f32.mrb[13].mxu0  ;;  %v3730_v48 = vpack.c.bf16 %v2864_v43, %v2860_v41 }
 0x179   :  { %v378_v49 = vadd.f32 %v377_v47, %v3707_v9  ;;  %v379_v50 = vpop.f32.mrb[14].mxu0 }
 0x17a   :  { %2873 = vtanh.f32 %v376_v46  ;;  %v380_v51 = vadd.f32 %v379_v50, %v3704_v8  ;;  %v381_v52 = vpop.f32.mrb[15].mxu0  ;;  %734 = vmatprep.mubr.bf16.mxu1 %v3730_v48 }
 0x17b   :  { %2875 = vtanh.f32 %v378_v49  ;;  %v382_v53 = vadd.f32 %v381_v52, %v3707_v9  ;;  %735 = vmatmul.mubr.bf16.gmra.mrb[4].mxu1 %v3727_v45 }
 0x17c   :  { %v2866_v54 = vpop.eup %2865  ;;  %2877 = vtanh.f32 %v380_v51 }
 0x17d   :  { %v2868_v55 = vpop.eup %2867  ;;  %2879 = vtanh.f32 %v382_v53 }
 0x17e   :  { %v2870_v56 = vpop.eup %2869 }
 0x17f   :  { %v2872_v57 = vpop.eup %2871  ;;  %v385_v58 = vpop.f32.mrb[16].mxu0  ;;  %v3737_v59 = vpack.c.bf16 %v2870_v56, %v2866_v54 }
 0x180   :  { %v386_v60 = vadd.f32 %v385_v58, %v3704_v8  ;;  %v387_v61 = vpop.f32.mrb[17].mxu0  ;;  %v3740_v62 = vpack.c.bf16 %v2872_v57, %v2868_v55 }
 0x181   :  { %v388_v63 = vadd.f32 %v387_v61, %v3707_v9  ;;  %v389_v0 = vpop.f32.mrb[18].mxu0 }
 0x182   :  { %2881 = vtanh.f32 %v386_v60  ;;  %v390_v1 = vadd.f32 %v389_v0, %v3704_v8  ;;  %v391_v2 = vpop.f32.mrb[19].mxu0  ;;  %744 = vmatprep.mubr.bf16.mxu1 %v3740_v62 }
 0x183   :  { %2883 = vtanh.f32 %v388_v63  ;;  %v392_v6 = vadd.f32 %v391_v2, %v3707_v9  ;;  %745 = vmatmul.mubr.bf16.gmra.mrb[8].mxu1 %v3737_v59 }
 0x184   :  { %v2874_v10 = vpop.eup %2873  ;;  %2885 = vtanh.f32 %v390_v1 }
 0x185   :  { %v2876_v11 = vpop.eup %2875  ;;  %2887 = vtanh.f32 %v392_v6 }
 0x186   :  { %v2878_v12 = vpop.eup %2877 }
 0x187   :  { %v2880_v13 = vpop.eup %2879  ;;  %v395_v14 = vpop.f32.mrb[20].mxu0  ;;  %v3747_v15 = vpack.c.bf16 %v2878_v12, %v2874_v10 }
 0x188   :  { %v396_v16 = vadd.f32 %v395_v14, %v3704_v8  ;;  %v397_v17 = vpop.f32.mrb[21].mxu0  ;;  %v3750_v18 = vpack.c.bf16 %v2880_v13, %v2876_v11 }
 0x189   :  { %v398_v19 = vadd.f32 %v397_v17, %v3707_v9  ;;  %v399_v20 = vpop.f32.mrb[22].mxu0 }
 0x18a   :  { %2889 = vtanh.f32 %v396_v16  ;;  %v400_v21 = vadd.f32 %v399_v20, %v3704_v8  ;;  %v401_v22 = vpop.f32.mrb[23].mxu0  ;;  %754 = vmatprep.mubr.bf16.mxu1 %v3750_v18 }
 0x18b   :  { %2891 = vtanh.f32 %v398_v19  ;;  %v402_v23 = vadd.f32 %v401_v22, %v3707_v9  ;;  %755 = vmatmul.mubr.bf16.gmra.mrb[12].mxu1 %v3747_v15 }
 0x18c   :  { %v2882_v24 = vpop.eup %2881  ;;  %2893 = vtanh.f32 %v400_v21 }
 0x18d   :  { %v2884_v25 = vpop.eup %2883  ;;  %2895 = vtanh.f32 %v402_v23 }
 0x18e   :  { %v2886_v26 = vpop.eup %2885 }
 0x18f   :  { %v2888_v27 = vpop.eup %2887  ;;  %v405_v28 = vpop.f32.mrb[24].mxu0  ;;  %v3757_v29 = vpack.c.bf16 %v2886_v26, %v2882_v24 }
 0x190   :  { %v406_v30 = vadd.f32 %v405_v28, %v3704_v8  ;;  %v407_v32 = vpop.f32.mrb[25].mxu0  ;;  %v3760_v33 = vpack.c.bf16 %v2888_v27, %v2884_v25 }
 0x191   :  { %v408_v35 = vadd.f32 %v407_v32, %v3707_v9  ;;  %v409_v36 = vpop.f32.mrb[26].mxu0 }
 0x192   :  { %2897 = vtanh.f32 %v406_v30  ;;  %v410_v37 = vadd.f32 %v409_v36, %v3704_v8  ;;  %v411_v38 = vpop.f32.mrb[27].mxu0  ;;  %764 = vmatprep.mubr.bf16.mxu1 %v3760_v33  ;;  %v1949_v36 = vld [vmem:[%s5188_s3] sm:$0xff] }
 0x193   :  { %2899 = vtanh.f32 %v408_v35  ;;  %v412_v39 = vadd.f32 %v411_v38, %v3707_v9  ;;  %765 = vmatmul.mubr.bf16.gmra.mrb[16].mxu1 %v3757_v29 }
 0x194   :  { %v2890_v40 = vpop.eup %2889  ;;  %2901 = vtanh.f32 %v410_v37  ;;  %v1951_v37 = vld [vmem:[%s5188_s3 + $0x10] sm:$0xff] }
 0x195   :  { %v2892_v41 = vpop.eup %2891  ;;  %2903 = vtanh.f32 %v412_v39  ;;  %v1954_v39 = vld [vmem:[%s5188_s3 + $0x28] sm:$0xff] }
 0x196   :  { %v2894_v42 = vpop.eup %2893 }
 0x197   :  { %v2896_v43 = vpop.eup %2895  ;;  %v415_v44 = vpop.f32.mrb[28].mxu0  ;;  %v3767_v46 = vpack.c.bf16 %v2894_v42, %v2890_v40  ;;  %v1956_v40 = vld [vmem:[%s5188_s3 + $0x38] sm:$0xff] }
 0x198   :  { %v416_v47 = vadd.f32 %v415_v44, %v3704_v8  ;;  %v417_v49 = vpop.f32.mrb[29].mxu0  ;;  %v3770_v50 = vpack.c.bf16 %v2896_v43, %v2892_v41 }
 0x199   :  { %v418_v51 = vadd.f32 %v417_v49, %v3707_v9  ;;  %v419_v52 = vpop.f32.mrb[30].mxu0 }
 0x19a   :  { %2905 = vtanh.f32 %v416_v47  ;;  %v420_v53 = vadd.f32 %v419_v52, %v3704_v8  ;;  %v421_v54 = vpop.f32.mrb[31].mxu0  ;;  %774 = vmatprep.mubr.bf16.mxu1 %v3770_v50 }
 0x19b   :  { %2907 = vtanh.f32 %v418_v51  ;;  %v422_v55 = vadd.f32 %v421_v54, %v3707_v9  ;;  %775 = vmatmul.mubr.bf16.gmra.mrb[20].mxu1 %v3767_v46  ;;  %v2013_v51 = vpack.c.bf16 %v1951_v37, %v1949_v36  ;;  %v2016_v54 = vpack.c.bf16 %v1956_v40, %v1954_v39  ;;  %v1963_v36 = vld [vmem:[%s5188_s3 + $0x70] sm:$0xff]  ;;  %v1966_v39 = vld [vmem:[%s5188_s3 + $0x88] sm:$0xff]  ;;  %v1968_v40 = vld [vmem:[%s5188_s3 + $0x98] sm:$0xff] }
 0x19c   :  { %v2898_v56 = vpop.eup %2897  ;;  %2909 = vtanh.f32 %v420_v53 }
 0x19d   :  { %v2900_v57 = vpop.eup %2899  ;;  %2911 = vtanh.f32 %v422_v55  ;;  %v1953_v55 = vld [vmem:[%s5188_s3 + $0x20] sm:$0xff] }
 0x19e   :  { %v2902_v58 = vpop.eup %2901 }
 0x19f   :  { %v2904_v60 = vpop.eup %2903  ;;  %v425_v61 = vpop.f32.mrb[32].mxu0  ;;  %v3777_v63 = vpack.c.bf16 %v2902_v58, %v2898_v56  ;;  %v1955_v56 = vld [vmem:[%s5188_s3 + $0x30] sm:$0xff] }
 0x1a0   :  { %v426_v0 = vadd.f32 %v425_v61, %v3704_v8  ;;  %v427_v1 = vpop.f32.mrb[33].mxu0  ;;  %v3780_v2 = vpack.c.bf16 %v2904_v60, %v2900_v57  ;;  %v1958_v60 = vld [vmem:[%s5188_s3 + $0x48] sm:$0xff]  ;;  %v1960_v61 = vld [vmem:[%s5188_s3 + $0x58] sm:$0xff] }
 0x1a1   :  { %v428_v6 = vadd.f32 %v427_v1, %v3707_v9  ;;  %v429_v10 = vpop.f32.mrb[34].mxu0 }
 0x1a2   :  { %2913 = vtanh.f32 %v426_v0  ;;  %v430_v11 = vadd.f32 %v429_v10, %v3704_v8  ;;  %v431_v12 = vpop.f32.mrb[35].mxu0  ;;  %784 = vmatprep.mubr.bf16.mxu1 %v3780_v2 }
 0x1a3   :  { %2915 = vtanh.f32 %v428_v6  ;;  %v432_v13 = vadd.f32 %v431_v12, %v3707_v9  ;;  %785 = vmatmul.mubr.bf16.gmra.mrb[24].mxu1 %v3777_v63  ;;  %v2015_v6 = vpack.c.bf16 %v1955_v56, %v1953_v55  ;;  %v1957_v12 = vld [vmem:[%s5188_s3 + $0x40] sm:$0xff] }
 0x1a4   :  { %v2906_v14 = vpop.eup %2905  ;;  %2917 = vtanh.f32 %v430_v11  ;;  %v2018_v11 = vpack.c.bf16 %v1960_v61, %v1958_v60 }
 0x1a5   :  { %v2908_v16 = vpop.eup %2907  ;;  %2919 = vtanh.f32 %v432_v13  ;;  %v1959_v13 = vld [vmem:[%s5188_s3 + $0x50] sm:$0xff] }
 0x1a6   :  { %v2910_v17 = vpop.eup %2909 }
 0x1a7   :  { %v2912_v19 = vpop.eup %2911  ;;  %v435_v20 = vpop.f32.mrb[36].mxu0  ;;  %v3787_v21 = vpack.c.bf16 %v2910_v17, %v2906_v14  ;;  %v1964_v17 = vld [vmem:[%s5188_s3 + $0x78] sm:$0xff] }
 0x1a8   :  { %v436_v22 = vadd.f32 %v435_v20, %v3704_v8  ;;  %v437_v23 = vpop.f32.mrb[37].mxu0  ;;  %v3790_v24 = vpack.c.bf16 %v2912_v19, %v2908_v16  ;;  %v1962_v16 = vld [vmem:[%s5188_s3 + $0x68] sm:$0xff] }
 0x1a9   :  { %v438_v25 = vadd.f32 %v437_v23, %v3707_v9  ;;  %v439_v26 = vpop.f32.mrb[38].mxu0 }
 0x1aa   :  { %2921 = vtanh.f32 %v436_v22  ;;  %v440_v27 = vadd.f32 %v439_v26, %v3704_v8  ;;  %v441_v28 = vpop.f32.mrb[39].mxu0  ;;  %794 = vmatprep.mubr.bf16.mxu1 %v3790_v24 }
 0x1ab   :  { %2923 = vtanh.f32 %v438_v25  ;;  %v442_v30 = vadd.f32 %v441_v28, %v3707_v9  ;;  %795 = vmatmul.mubr.bf16.gmra.mrb[28].mxu1 %v3787_v21 }
 0x1ac   :  { %v2914_v32 = vpop.eup %2913  ;;  %2925 = vtanh.f32 %v440_v27  ;;  %v2017_v27 = vpack.c.bf16 %v1959_v13, %v1957_v12  ;;  %v1971_v12 = vld [vmem:[%s5188_s3 + $0xb0] sm:$0xff] }
 0x1ad   :  { %v2916_v35 = vpop.eup %2915  ;;  %2927 = vtanh.f32 %v442_v30 }
 0x1ae   :  { %v2918_v38 = vpop.eup %2917 }
 0x1af   :  { %v2920_v41 = vpop.eup %2919  ;;  %v445_v42 = vpop.f32.mrb[40].mxu0  ;;  %v1323_v43 = vpack.c.bf16 %v2918_v38, %v2914_v32  ;;  %v2020_v32 = vpack.c.bf16 %v1964_v17, %v1962_v16  ;;  %v1974_v16 = vld [vmem:[%s5188_s3 + $0xc8] sm:$0xff]  ;;  %v1976_v17 = vld [vmem:[%s5188_s3 + $0xd8] sm:$0xff] }
 0x1b0   :  { %v446_v44 = vadd.f32 %v445_v42, %v3704_v8  ;;  %v447_v47 = vpop.f32.mrb[41].mxu0  ;;  %v1324_v49 = vpack.c.bf16 %v2920_v41, %v2916_v35  ;;  %v1961_v35 = vld [vmem:[%s5188_s3 + $0x60] sm:$0xff] }
 0x1b1   :  { %v448_v52 = vadd.f32 %v447_v47, %v3707_v9  ;;  %v449_v53 = vpop.f32.mrb[42].mxu0  ;;  %v2022_v47 = vpack.c.bf16 %v1968_v40, %v1966_v39 }
 0x1b2   :  { %2929 = vtanh.f32 %v446_v44  ;;  %v450_v57 = vadd.f32 %v449_v53, %v3704_v8  ;;  %v451_v58 = vpop.f32.mrb[43].mxu0  ;;  %1415 = vmatprep.mubr.bf16.mxu0 %v1324_v49  ;;  %v1965_v49 = vld [vmem:[%s5188_s3 + $0x80] sm:$0xff]  ;;  %v1970_v53 = vld [vmem:[%s5188_s3 + $0xa8] sm:$0xff] }
 0x1b3   :  { %2931 = vtanh.f32 %v448_v52  ;;  %v452_v0 = vadd.f32 %v451_v58, %v3707_v9  ;;  %1416 = vmatmul.mubr.bf16.vlgmr.msra.gmra.mrb[64].mxu0 %v1323_v43  ;;  %v2019_v43 = vpack.c.bf16 %v1963_v36, %v1961_v35 }
 0x1b4   :  { %v2922_v1 = vpop.eup %2921  ;;  %2933 = vtanh.f32 %v450_v57  ;;  %2058 = vmatpush1.bf16.msra.mxu0 %v2013_v51  ;;  %v1967_v51 = vld [vmem:[%s5188_s3 + $0x90] sm:$0xff] }
 0x1b5   :  { %v2924_v10 = vpop.eup %2923  ;;  %2935 = vtanh.f32 %v452_v0  ;;  %2059 = vmatprep.subr.bf16.mxu0 %v2016_v54  ;;  %v1972_v54 = vld [vmem:[%s5188_s3 + $0xb8] sm:$0xff]  ;;  %v2021_v0 = vpack.c.bf16 %v1967_v51, %v1965_v49  ;;  %v1979_v49 = vld [vmem:[%s5188_s3 + $0xf0] sm:$0xff] }
 0x1b6   :  { %v2926_v14 = vpop.eup %2925 }
 0x1b7   :  { %v2928_v19 = vpop.eup %2927  ;;  %v455_v20 = vpop.f32.mrb[44].mxu0  ;;  %v1325_v22 = vpack.c.bf16 %v2926_v14, %v2922_v1 }
 0x1b8   :  { %v456_v23 = vadd.f32 %v455_v20, %v3704_v8  ;;  %v457_v25 = vpop.f32.mrb[45].mxu0  ;;  %2060 = vmatpush1.bf16.msra.mxu0 %v2015_v6  ;;  %v1326_v26 = vpack.c.bf16 %v2928_v19, %v2924_v10  ;;  %v2024_v10 = vpack.c.bf16 %v1972_v54, %v1970_v53  ;;  %v1982_v53 = vld [vmem:[%s5188_s3 + $0x108] sm:$0xff]  ;;  %v1984_v54 = vld [vmem:[%s5188_s3 + $0x118] sm:$0xff] }
 0x1b9   :  { %v458_v28 = vadd.f32 %v457_v25, %v3707_v9  ;;  %v459_v30 = vpop.f32.mrb[46].mxu0  ;;  %2061 = vmatprep.subr.bf16.mxu0 %v2018_v11  ;;  %v1969_v11 = vld [vmem:[%s5188_s3 + $0xa0] sm:$0xff]  ;;  %v2026_v25 = vpack.c.bf16 %v1976_v17, %v1974_v16 }
 0x1ba   :  { %2937 = vtanh.f32 %v456_v23  ;;  %v460_v37 = vadd.f32 %v459_v30, %v3704_v8  ;;  %v461_v38 = vpop.f32.mrb[47].mxu0  ;;  %1425 = vmatprep.mubr.bf16.mxu0 %v1326_v26  ;;  %v1973_v26 = vld [vmem:[%s5188_s3 + $0xc0] sm:$0xff]  ;;  %v1978_v30 = vld [vmem:[%s5188_s3 + $0xe8] sm:$0xff] }
 0x1bb   :  { %2939 = vtanh.f32 %v458_v28  ;;  %v462_v41 = vadd.f32 %v461_v38, %v3707_v9  ;;  %1426 = vmatmul.mubr.bf16.gmra.mrb[68].mxu0 %v1325_v22  ;;  %v2023_v22 = vpack.c.bf16 %v1971_v12, %v1969_v11 }
 0x1bc   :  { %v2930_v42 = vpop.eup %2929  ;;  %2941 = vtanh.f32 %v460_v37  ;;  %2062 = vmatpush1.bf16.msra.mxu0 %v2017_v27  ;;  %v1975_v27 = vld [vmem:[%s5188_s3 + $0xd0] sm:$0xff] }
 0x1bd   :  { %v2932_v44 = vpop.eup %2931  ;;  %2943 = vtanh.f32 %v462_v41  ;;  %2063 = vmatprep.subr.bf16.mxu0 %v2020_v32  ;;  %v1980_v32 = vld [vmem:[%s5188_s3 + $0xf8] sm:$0xff]  ;;  %v2025_v41 = vpack.c.bf16 %v1975_v27, %v1973_v26  ;;  %v1987_v26 = vld [vmem:[%s5188_s3 + $0x130] sm:$0xff] }
 0x1be   :  { %v2934_v52 = vpop.eup %2933 }
 0x1bf   :  { %v2936_v55 = vpop.eup %2935  ;;  %v465_v56 = vpop.f32.mrb[48].mxu0  ;;  %v1327_v57 = vpack.c.bf16 %v2934_v52, %v2930_v42 }
 0x1c0   :  { %v466_v58 = vadd.f32 %v465_v56, %v3704_v8  ;;  %v467_v60 = vpop.f32.mrb[49].mxu0  ;;  %2064 = vmatpush1.bf16.msra.mxu0 %v2019_v43  ;;  %v1328_v61 = vpack.c.bf16 %v2936_v55, %v2932_v44  ;;  %v2028_v44 = vpack.c.bf16 %v1980_v32, %v1978_v30  ;;  %v1990_v30 = vld [vmem:[%s5188_s3 + $0x148] sm:$0xff]  ;;  %v1992_v32 = vld [vmem:[%s5188_s3 + $0x158] sm:$0xff] }
 0x1c1   :  { %v468_v1 = vadd.f32 %v467_v60, %v3707_v9  ;;  %v469_v6 = vpop.f32.mrb[50].mxu0  ;;  %2065 = vmatprep.subr.bf16.mxu0 %v2022_v47  ;;  %v1977_v47 = vld [vmem:[%s5188_s3 + $0xe0] sm:$0xff]  ;;  %v2030_v60 = vpack.c.bf16 %v1984_v54, %v1982_v53 }
 0x1c2   :  { %2945 = vtanh.f32 %v466_v58  ;;  %v470_v13 = vadd.f32 %v469_v6, %v3704_v8  ;;  %v471_v14 = vpop.f32.mrb[51].mxu0  ;;  %1435 = vmatprep.mubr.bf16.mxu0 %v1328_v61  ;;  %v1981_v61 = vld [vmem:[%s5188_s3 + $0x100] sm:$0xff]  ;;  %v1986_v6 = vld [vmem:[%s5188_s3 + $0x128] sm:$0xff] }
 0x1c3   :  { %2947 = vtanh.f32 %v468_v1  ;;  %v472_v19 = vadd.f32 %v471_v14, %v3707_v9  ;;  %1436 = vmatmul.mubr.bf16.gmra.mrb[72].mxu0 %v1327_v57  ;;  %v2027_v57 = vpack.c.bf16 %v1979_v49, %v1977_v47 }
 0x1c4   :  { %v2938_v20 = vpop.eup %2937  ;;  %2949 = vtanh.f32 %v470_v13  ;;  %2066 = vmatpush1.bf16.msra.mxu0 %v2021_v0  ;;  %v1983_v0 = vld [vmem:[%s5188_s3 + $0x110] sm:$0xff] }
 0x1c5   :  { %v2940_v23 = vpop.eup %2939  ;;  %2951 = vtanh.f32 %v472_v19  ;;  %2067 = vmatprep.subr.bf16.mxu0 %v2024_v10  ;;  %v1988_v10 = vld [vmem:[%s5188_s3 + $0x138] sm:$0xff]  ;;  %v2029_v19 = vpack.c.bf16 %v1983_v0, %v1981_v61  ;;  %v1995_v61 = vld [vmem:[%s5188_s3 + $0x170] sm:$0xff] }
 0x1c6   :  { %v2942_v28 = vpop.eup %2941 }
 0x1c7   :  { %v2944_v35 = vpop.eup %2943  ;;  %v475_v36 = vpop.f32.mrb[52].mxu0  ;;  %v1329_v37 = vpack.c.bf16 %v2942_v28, %v2938_v20 }
 0x1c8   :  { %v476_v38 = vadd.f32 %v475_v36, %v3704_v8  ;;  %v477_v39 = vpop.f32.mrb[53].mxu0  ;;  %2068 = vmatpush1.bf16.msra.mxu0 %v2023_v22  ;;  %v1330_v40 = vpack.c.bf16 %v2944_v35, %v2940_v23  ;;  %v2032_v23 = vpack.c.bf16 %v1988_v10, %v1986_v6  ;;  %v1998_v6 = vld [vmem:[%s5188_s3 + $0x188] sm:$0xff]  ;;  %v2000_v10 = vld [vmem:[%s5188_s3 + $0x198] sm:$0xff] }
 0x1c9   :  { %v478_v42 = vadd.f32 %v477_v39, %v3707_v9  ;;  %v479_v43 = vpop.f32.mrb[54].mxu0  ;;  %2069 = vmatprep.subr.bf16.mxu0 %v2026_v25  ;;  %v1985_v25 = vld [vmem:[%s5188_s3 + $0x120] sm:$0xff]  ;;  %v2034_v39 = vpack.c.bf16 %v1992_v32, %v1990_v30  ;;  %v2003_v30 = vld [vmem:[%s5188_s3 + $0x1b0] sm:$0xff]  ;;  %v2006_v32 = vld [vmem:[%s5188_s3 + $0x1c8] sm:$0xff] }
 0x1ca   :  { %2953 = vtanh.f32 %v476_v38  ;;  %v480_v51 = vadd.f32 %v479_v43, %v3704_v8  ;;  %v481_v52 = vpop.f32.mrb[55].mxu0  ;;  %1445 = vmatprep.mubr.bf16.mxu0 %v1330_v40  ;;  %v1989_v40 = vld [vmem:[%s5188_s3 + $0x140] sm:$0xff]  ;;  %v1994_v43 = vld [vmem:[%s5188_s3 + $0x168] sm:$0xff] }
 0x1cb   :  { %2955 = vtanh.f32 %v478_v42  ;;  %v482_v55 = vadd.f32 %v481_v52, %v3707_v9  ;;  %1446 = vmatmul.mubr.bf16.gmra.mrb[76].mxu0 %v1329_v37  ;;  %v2031_v37 = vpack.c.bf16 %v1987_v26, %v1985_v25 }
 0x1cc   :  { %v2946_v56 = vpop.eup %2945  ;;  %2957 = vtanh.f32 %v480_v51  ;;  %2070 = vmatpush1.bf16.msra.mxu0 %v2025_v41  ;;  %v1991_v41 = vld [vmem:[%s5188_s3 + $0x150] sm:$0xff] }
 0x1cd   :  { %v2948_v58 = vpop.eup %2947  ;;  %2959 = vtanh.f32 %v482_v55  ;;  %2071 = vmatprep.subr.bf16.mxu0 %v2028_v44  ;;  %v1996_v44 = vld [vmem:[%s5188_s3 + $0x178] sm:$0xff]  ;;  %v2033_v55 = vpack.c.bf16 %v1991_v41, %v1989_v40  ;;  %v2005_v40 = vld [vmem:[%s5188_s3 + $0x1c0] sm:$0xff]  ;;  %v2007_v41 = vld [vmem:[%s5188_s3 + $0x1d0] sm:$0xff] }
 0x1ce   :  { %v2950_v1 = vpop.eup %2949 }
 0x1cf   :  { %v2952_v11 = vpop.eup %2951  ;;  %v485_v12 = vpop.f32.mrb[56].mxu0  ;;  %v1331_v13 = vpack.c.bf16 %v2950_v1, %v2946_v56 }
 0x1d0   :  { %v486_v14 = vadd.f32 %v485_v12, %v3704_v8  ;;  %v487_v16 = vpop.f32.mrb[57].mxu0  ;;  %2072 = vmatpush1.bf16.msra.mxu0 %v2027_v57  ;;  %v1332_v17 = vpack.c.bf16 %v2952_v11, %v2948_v58  ;;  %v2036_v58 = vpack.c.bf16 %v1996_v44, %v1994_v43  ;;  %v2010_v43 = vld [vmem:[%s5188_s3 + $0x1e8] sm:$0xff]  ;;  %v2012_v44 = vld [vmem:[%s5188_s3 + $0x1f8] sm:$0xff] }
 0x1d1   :  { %v488_v20 = vadd.f32 %v487_v16, %v3707_v9  ;;  %v489_v22 = vpop.f32.mrb[58].mxu0  ;;  %2073 = vmatprep.subr.bf16.mxu0 %v2030_v60  ;;  %v1993_v60 = vld [vmem:[%s5188_s3 + $0x160] sm:$0xff] }
 0x1d2   :  { %2961 = vtanh.f32 %v486_v14  ;;  %v490_v27 = vadd.f32 %v489_v22, %v3704_v8  ;;  %v491_v28 = vpop.f32.mrb[59].mxu0  ;;  %1455 = vmatprep.mubr.bf16.mxu0 %v1332_v17  ;;  %v1997_v16 = vld [vmem:[%s5188_s3 + $0x180] sm:$0xff]  ;;  %v1999_v17 = vld [vmem:[%s5188_s3 + $0x190] sm:$0xff] }
 0x1d3   :  { %2963 = vtanh.f32 %v488_v20  ;;  %v492_v35 = vadd.f32 %v491_v28, %v3707_v9  ;;  %1456 = vmatmul.mubr.bf16.gmra.mrb[80].mxu0 %v1331_v13  ;;  %v2035_v13 = vpack.c.bf16 %v1995_v61, %v1993_v60  ;;  %v2004_v20 = vld [vmem:[%s5188_s3 + $0x1b8] sm:$0xff]  ;;  %v2037_v26 = vpack.c.bf16 %v1999_v17, %v1997_v16  ;;  %v2001_v28 = vld [vmem:[%s5188_s3 + $0x1a0] sm:$0xff] }
 0x1d4   :  { %v2954_v36 = vpop.eup %2953  ;;  %2965 = vtanh.f32 %v490_v27  ;;  %2074 = vmatpush1.bf16.msra.mxu0 %v2029_v19 }
 0x1d5   :  { %v2956_v38 = vpop.eup %2955  ;;  %2967 = vtanh.f32 %v492_v35  ;;  %2075 = vmatprep.subr.bf16.mxu0 %v2032_v23  ;;  %v2008_v35 = vld [vmem:[%s5188_s3 + $0x1d8] sm:$0xff] }
 0x1d6   :  { %v2958_v42 = vpop.eup %2957 }
 0x1d7   :  { %v2960_v47 = vpop.eup %2959  ;;  %v495_v49 = vpop.f32.mrb[60].mxu0  ;;  %v1333_v51 = vpack.c.bf16 %v2958_v42, %v2954_v36 }
 0x1d8   :  { %v496_v52 = vadd.f32 %v495_v49, %v3704_v8  ;;  %v497_v53 = vpop.f32.mrb[61].mxu0  ;;  %2076 = vmatpush1.bf16.msra.mxu0 %v2031_v37  ;;  %v1334_v54 = vpack.c.bf16 %v2960_v47, %v2956_v38  ;;  %v2039_v37 = vpack.c.bf16 %v2003_v30, %v2001_v28 }
 0x1d9   :  { %v498_v56 = vadd.f32 %v497_v53, %v3707_v9  ;;  %v499_v57 = vpop.f32.mrb[62].mxu0  ;;  %2077 = vmatprep.subr.bf16.mxu0 %v2034_v39  ;;  %v2042_v39 = vpack.c.bf16 %v2008_v35, %v2006_v32  ;;  %v2044_v53 = vpack.c.bf16 %v2012_v44, %v2010_v43 }
 0x1da   :  { %2969 = vtanh.f32 %v496_v52  ;;  %v500_v0 = vadd.f32 %v499_v57, %v3704_v8  ;;  %v501_v1 = vpop.f32.mrb[63].mxu0  ;;  %1465 = vmatprep.mubr.bf16.mxu0 %v1334_v54  ;;  %v2038_v8 = vpack.c.bf16 %v2000_v10, %v1998_v6  ;;  %v2041_v52 = vpack.c.bf16 %v2007_v41, %v2005_v40  ;;  %v2009_v54 = vld [vmem:[%s5188_s3 + $0x1e0] sm:$0xff] }
 0x1db   :  { %2971 = vtanh.f32 %v498_v56  ;;  %v502_v11 = vadd.f32 %v501_v1, %v3707_v9  ;;  %1466 = vmatmul.mubr.bf16.gmra.mrb[84].mxu0 %v1333_v51  ;;  %v2002_v9 = vld [vmem:[%s5188_s3 + $0x1a8] sm:$0xff] }
 0x1dc   :  { %v2962_v12 = vpop.eup %2961  ;;  %2973 = vtanh.f32 %v500_v0  ;;  %2078 = vmatpush1.bf16.msra.mxu0 %v2033_v55  ;;  %v2040_v27 = vpack.c.bf16 %v2004_v20, %v2002_v9  ;;  %v2011_v55 = vld [vmem:[%s5188_s3 + $0x1f0] sm:$0xff]  ;;  %v680_v0 = vld [vmem:[%s5191_s6] sm:$0x3] }
 0x1dd   :  { %v2964_v14 = vpop.eup %2963  ;;  %2975 = vtanh.f32 %v502_v11  ;;  %2079 = vmatprep.subr.bf16.mxu0 %v2036_v58  ;;  %v2043_v56 = vpack.c.bf16 %v2011_v55, %v2009_v54  ;;  %v4029_v6 = vrot.slane %v680_v0, %v3695_v5  ;;  %v4032_v11 = vrot.slane %v680_v0, %v3701_v7 }
 0x1de   :  { %v2966_v19 = vpop.eup %2965 }
 0x1df   :  { %v2968_v22 = vpop.eup %2967  ;;  %v1335_v23 = vpack.c.bf16 %v2966_v19, %v2962_v12 }
 0x1e0   :  { %2080 = vmatpush1.bf16.msra.mxu0 %v2035_v13  ;;  %v1336_v25 = vpack.c.bf16 %v2968_v22, %v2964_v14 }
 0x1e1   :  { %2081 = vmatprep.subr.bf16.mxu0 %v2038_v8 }
 0x1e2   :  { %1475 = vmatprep.mubr.bf16.mxu0 %v1336_v25 }
 0x1e3   :  { %1476 = vmatmul.mubr.bf16.gmra.mrb[88].mxu0 %v1335_v23 }
 0x1e4   :  { %v2970_v36 = vpop.eup %2969  ;;  %2082 = vmatpush1.bf16.msra.mxu0 %v2037_v26 }
 0x1e5   :  { %v2972_v38 = vpop.eup %2971  ;;  %2083 = vmatprep.subr.bf16.mxu0 %v2040_v27 }
 0x1e6   :  { %v2974_v42 = vpop.eup %2973 }
 0x1e7   :  { %v2976_v47 = vpop.eup %2975  ;;  %v1337_v49 = vpack.c.bf16 %v2974_v42, %v2970_v36 }
 0x1e8   :  { %2084 = vmatpush1.bf16.msra.mxu0 %v2039_v37  ;;  %v1338_v51 = vpack.c.bf16 %v2976_v47, %v2972_v38 }
 0x1e9   :  { %2085 = vmatprep.subr.bf16.mxu0 %v2042_v39 }
 0x1ea   :  { %1485 = vmatprep.mubr.bf16.mxu0 %v1338_v51 }
 0x1eb   :  { %1486 = vmatmul.mubr.bf16.gmra.mrb[92].mxu0 %v1337_v49 }
 0x1ec   :  { %2086 = vmatpush1.bf16.msra.mxu0 %v2041_v52  ;;  %2089 = vmatprep.mubr.bf16.mxu0 %v3720_v34 }
 0x1ed   :  { %2087 = vmatprep.subr.bf16.mxu0 %v2044_v53 }
 0x1f0   :  { %2088 = vmatpush1.bf16.msra.mxu0 %v2043_v56 }
 0x1f3   :  { %2090 = vmatmul.mubr.bf16.vlgmr.msra.gmra.mrb[96].mxu0 %v3717_v31 }
 0x1f4   :  { %2099 = vmatprep.mubr.bf16.mxu0 %v3730_v48 }
 0x1fb   :  { %2100 = vmatmul.mubr.bf16.gmra.mrb[100].mxu0 %v3727_v45 }
 0x1fc   :  { %2109 = vmatprep.mubr.bf16.mxu0 %v3740_v62 }
 0x203   :  { %2110 = vmatmul.mubr.bf16.gmra.mrb[104].mxu0 %v3737_v59 }
 0x204   :  { %2119 = vmatprep.mubr.bf16.mxu0 %v3750_v18 }
 0x20b   :  { %2120 = vmatmul.mubr.bf16.gmra.mrb[108].mxu0 %v3747_v15 }
 0x20c   :  { %2129 = vmatprep.mubr.bf16.mxu0 %v3760_v33 }
 0x213   :  { %2130 = vmatmul.mubr.bf16.gmra.mrb[112].mxu0 %v3757_v29 }
 0x214   :  { %2139 = vmatprep.mubr.bf16.mxu0 %v3770_v50 }
 0x21b   :  { %2140 = vmatmul.mubr.bf16.gmra.mrb[116].mxu0 %v3767_v46 }
 0x21c   :  { %2149 = vmatprep.mubr.bf16.mxu0 %v3780_v2 }
 0x223   :  { %2150 = vmatmul.mubr.bf16.gmra.mrb[120].mxu0 %v3777_v63 }
 0x224   :  { %2159 = vmatprep.mubr.bf16.mxu0 %v3790_v24 }
 0x22b   :  { %2160 = vmatmul.mubr.bf16.gmra.mrb[124].mxu0 %v3787_v21 }
 0x246   :  { %v726_v31 = vpop.f32.mrb[0].mxu1 }
 0x247   :  { %v728_v34 = vpop.f32.mrb[1].mxu1  ;;  %v4041_v16 = vadd.f32 %v726_v31, %v4029_v6 }
 0x248   :  { %v730_v45 = vpop.f32.mrb[2].mxu1  ;;  %v4047_v19 = vadd.f32 %v728_v34, %v4032_v11 }
 0x249   :  { %v732_v48 = vpop.f32.mrb[3].mxu1  ;;  %v4059_v23 = vadd.f32 %v730_v45, %v4029_v6 }
 0x24a   :  { %v4064_v26 = vadd.f32 %v732_v48, %v4032_v11 }
 0x24e   :  { %v736_v59 = vpop.f32.mrb[4].mxu1 }
 0x24f   :  { %v738_v62 = vpop.f32.mrb[5].mxu1  ;;  %v4075_v35 = vadd.f32 %v736_v59, %v4029_v6 }
 0x250   :  { %v740_v15 = vpop.f32.mrb[6].mxu1  ;;  %v4106_v31 = vadd.f32 %v738_v62, %v4032_v11 }
 0x251   :  { %v4023_v18 = vpop.f32.mrb[7].mxu1  ;;  %v4123_v62 = vadd.f32 %v740_v15, %v4029_v6 }
 0x256   :  { %v746_v29 = vpop.f32.mrb[8].mxu1 }
 0x257   :  { %v748_v33 = vpop.f32.mrb[9].mxu1  ;;  %v4035_v13 = vadd.f32 %v746_v29, %v4029_v6 }
 0x258   :  { %v750_v46 = vpop.f32.mrb[10].mxu1  ;;  %v4038_v8 = vadd.f32 %v748_v33, %v4032_v11 }
 0x259   :  { %v752_v50 = vpop.f32.mrb[11].mxu1  ;;  %v4050_v9 = vadd.f32 %v750_v46, %v4029_v6  ;;  %v805_v25 = vadd.f32 %v4035_v13, %v4041_v16 }
 0x25a   :  { %v4053_v20 = vadd.f32 %v752_v50, %v4032_v11  ;;  %v808_v27 = vadd.f32 %v4038_v8, %v4047_v19 }
 0x25b   :  { %v811_v39 = vadd.f32 %v4050_v9, %v4059_v23 }
 0x25c   :  { %v814_v40 = vadd.f32 %v4053_v20, %v4064_v26 }
 0x25e   :  { %v756_v2 = vpop.f32.mrb[12].mxu1 }
 0x25f   :  { %v758_v57 = vpop.f32.mrb[13].mxu1  ;;  %v4090_v44 = vadd.f32 %v756_v2, %v4029_v6  ;;  %v4129_v2 = vadd.f32 %v4023_v18, %v4032_v11 }
 0x260   :  { %v760_v63 = vpop.f32.mrb[14].mxu1  ;;  %v4093_v47 = vadd.f32 %v758_v57, %v4032_v11 }
 0x261   :  { %v762_v58 = vpop.f32.mrb[15].mxu1  ;;  %v4109_v34 = vadd.f32 %v760_v63, %v4029_v6  ;;  %v817_v50 = vadd.f32 %v4090_v44, %v4075_v35 }
 0x262   :  { %v4112_v45 = vadd.f32 %v762_v58, %v4032_v11  ;;  %v820_v57 = vadd.f32 %v4093_v47, %v4106_v31 }
 0x263   :  { %v823_v15 = vadd.f32 %v4109_v34, %v4123_v62 }
 0x266   :  { %v766_v24 = vpop.f32.mrb[16].mxu1 }
 0x267   :  { %v768_v60 = vpop.f32.mrb[17].mxu1  ;;  %v4044_v17 = vadd.f32 %v766_v24, %v4029_v6 }
 0x268   :  { %v770_v21 = vpop.f32.mrb[18].mxu1  ;;  %v4056_v22 = vadd.f32 %v768_v60, %v4032_v11 }
 0x269   :  { %v772_v61 = vpop.f32.mrb[19].mxu1  ;;  %v4069_v28 = vadd.f32 %v770_v21, %v4029_v6  ;;  %v806_v36 = vadd.f32 %v805_v25, %v4044_v17 }
 0x26a   :  { %v4072_v30 = vadd.f32 %v772_v61, %v4032_v11  ;;  %v809_v41 = vadd.f32 %v808_v27, %v4056_v22  ;;  %v826_v61 = vadd.f32 %v4112_v45, %v4129_v2 }
 0x26b   :  { %v812_v53 = vadd.f32 %v811_v39, %v4069_v28 }
 0x26c   :  { %v815_v54 = vadd.f32 %v814_v40, %v4072_v30 }
 0x26e   :  { %v776_v1 = vpop.f32.mrb[20].mxu1 }
 0x26f   :  { %v778_v10 = vpop.f32.mrb[21].mxu1  ;;  %v4115_v48 = vadd.f32 %v776_v1, %v4029_v6 }
 0x270   :  { %v780_v12 = vpop.f32.mrb[22].mxu1  ;;  %v4118_v59 = vadd.f32 %v778_v10, %v4032_v11 }
 0x271   :  { %v782_v14 = vpop.f32.mrb[23].mxu1  ;;  %v4134_v63 = vadd.f32 %v780_v12, %v4029_v6  ;;  %v818_v60 = vadd.f32 %v817_v50, %v4115_v48 }
 0x272   :  { %v4137_v58 = vadd.f32 %v782_v14, %v4032_v11  ;;  %v821_v0 = vadd.f32 %v820_v57, %v4118_v59 }
 0x273   :  { %5259 = vst [vmem:[#allocation18_spill] sm:$0xff] %v4134_v63 }
 0x274   :  { %5260 = vst [vmem:[#allocation19_spill] sm:$0xff] %v4137_v58 }
 0x276   :  { %v786_v32 = vpop.f32.mrb[24].mxu1 }
 0x277   :  { %v4079_v37 = vadd.f32 %v786_v32, %v4029_v6  ;;  %v788_v38 = vpop.f32.mrb[25].mxu1  ;;  %v824_v32 = vadd.f32 %v823_v15, %v4134_v63 }
 0x278   :  { %v4087_v42 = vadd.f32 %v788_v38, %v4032_v11  ;;  %v790_v43 = vpop.f32.mrb[26].mxu1 }
 0x279   :  { %v4096_v49 = vadd.f32 %v790_v43, %v4029_v6  ;;  %v792_v51 = vpop.f32.mrb[27].mxu1  ;;  %v807_v52 = vadd.f32 %v806_v36, %v4079_v37  ;;  %v827_v36 = vadd.f32 %v826_v61, %v4137_v58 }
 0x27a   :  { %v4102_v55 = vadd.f32 %v792_v51, %v4032_v11  ;;  %v810_v56 = vadd.f32 %v809_v41, %v4087_v42 }
 0x27b   :  { %v813_v29 = vadd.f32 %v812_v53, %v4096_v49 }
 0x27c   :  { %v816_v33 = vadd.f32 %v815_v54, %v4102_v55  ;;  %v829_v46 = vadd.f32 %v810_v56, %v807_v52 }
 0x27e   :  { %v796_v24 = vpop.f32.mrb[28].mxu1  ;;  %830 = vadd.xlane.f32.xlu0 %v829_v46  ;;  %v832_v12 = vadd.f32 %v816_v33, %v813_v29 }
 0x27f   :  { %v4143_v21 = vadd.f32 %v796_v24, %v4029_v6  ;;  %v798_v18 = vpop.f32.mrb[29].mxu1 }
 0x280   :  { %v4149_v1 = vadd.f32 %v798_v18, %v4032_v11  ;;  %v800_v10 = vpop.f32.mrb[30].mxu1 }
 0x281   :  { %v4152_v14 = vadd.f32 %v800_v10, %v4029_v6  ;;  %v802_v25 = vpop.f32.mrb[31].mxu1  ;;  %v819_v27 = vadd.f32 %v818_v60, %v4143_v21 }
 0x282   :  { %v4158_v38 = vadd.f32 %v802_v25, %v4032_v11  ;;  %833 = vadd.xlane.f32.xlu0 %v832_v12  ;;  %v822_v39 = vadd.f32 %v821_v0, %v4149_v1 }
 0x283   :  { %5261 = vst [vmem:[#allocation20_spill] sm:$0xff] %v4152_v14  ;;  %v825_v40 = vadd.f32 %v824_v32, %v4152_v14 }
 0x284   :  { %5262 = vst [vmem:[#allocation21_spill] sm:$0xff] %v4158_v38  ;;  %v828_v41 = vadd.f32 %v827_v36, %v4158_v38  ;;  %v835_v43 = vadd.f32 %v822_v39, %v819_v27  ;;  %v1371_v27 = vld [vmem:[%s5195_s10] sm:$0x3] }
 0x285   :  { %v4169_v36 = vrot.slane %v1371_v27, %v3695_v5 }
 0x286   :  { %v1417_v6 = vpop.f32.mrb[64].mxu0  ;;  %836 = vadd.xlane.f32.xlu1 %v835_v43  ;;  %v838_v53 = vadd.f32 %v828_v41, %v825_v40  ;;  %v4172_v40 = vrot.slane %v1371_v27, %v3701_v7 }
 0x287   :  { %v1419_v51 = vpop.f32.mrb[65].mxu0  ;;  %v4181_v4 = vadd.f32 %v1417_v6, %v4169_v36 }
 0x288   :  { %v1421_v52 = vpop.f32.mrb[66].mxu0  ;;  %v4190_v27 = vadd.f32 %v1419_v51, %v4172_v40 }
 0x289   :  { %v1423_v54 = vpop.f32.mrb[67].mxu0  ;;  %5265 = vst [vmem:[#allocation24_spill] sm:$0xff] %v4181_v4 }
 0x28a   :  { %839 = vadd.xlane.f32.xlu1 %v838_v53  ;;  %5268 = vst [vmem:[#allocation27_spill] sm:$0xff] %v4190_v27 }
 0x28e   :  { %v1427_v56 = vpop.f32.mrb[68].mxu0 }
 0x28f   :  { %v1429_v29 = vpop.f32.mrb[69].mxu0 }
 0x290   :  { %v1431_v33 = vpop.f32.mrb[70].mxu0 }
 0x291   :  { %v4163_v11 = vpop.f32.mrb[71].mxu0 }
 0x296   :  { %v1437_v46 = vpop.f32.mrb[72].mxu0 }
 0x297   :  { %v1439_v50 = vpop.f32.mrb[73].mxu0  ;;  %v4175_v43 = vadd.f32 %v1437_v46, %v4169_v36 }
 0x298   :  { %v1441_v57 = vpop.f32.mrb[74].mxu0  ;;  %v4178_v3 = vadd.f32 %v1439_v50, %v4172_v40  ;;  %v4199_v50 = vadd.f32 %v1421_v52, %v4169_v36 }
 0x299   :  { %v1443_v24 = vpop.f32.mrb[75].mxu0  ;;  %5263 = vst [vmem:[#allocation22_spill] sm:$0xff] %v4175_v43  ;;  %v4184_v38 = vadd.f32 %v1441_v57, %v4169_v36  ;;  %v1496_v6 = vadd.f32 %v4175_v43, %v4181_v4  ;;  %v4221_v4 = vadd.f32 %v1427_v56, %v4169_v36 }
 0x29a   :  { %5264 = vst [vmem:[#allocation23_spill] sm:$0xff] %v4178_v3  ;;  %v4193_v58 = vadd.f32 %v1443_v24, %v4172_v40  ;;  %5270 = vst [vmem:[#allocation29_spill] sm:$0xff] %v4199_v50  ;;  %v1499_v51 = vadd.f32 %v4178_v3, %v4190_v27 }
 0x29b   :  { %5266 = vst [vmem:[#allocation25_spill] sm:$0xff] %v4184_v38  ;;  %v1502_v52 = vadd.f32 %v4184_v38, %v4199_v50  ;;  %5271 = vst [vmem:[#allocation30_spill] sm:$0xff] %v4221_v4 }
 0x29c   :  { %5269 = vst [vmem:[#allocation28_spill] sm:$0xff] %v4193_v58 }
 0x29e   :  { %v1447_v15 = vpop.f32.mrb[76].mxu0 }
 0x29f   :  { %v1449_v60 = vpop.f32.mrb[77].mxu0  ;;  %v4230_v38 = vadd.f32 %v1447_v15, %v4169_v36  ;;  %v4246_v15 = vadd.f32 %v1429_v29, %v4172_v40  ;;  %v4263_v29 = vadd.f32 %v1431_v33, %v4169_v36 }
 0x2a0   :  { %v1451_v18 = vpop.f32.mrb[78].mxu0 }
 0x2a1   :  { %v1453_v61 = vpop.f32.mrb[79].mxu0  ;;  %5272 = vst [vmem:[#allocation31_spill] sm:$0xff] %v4230_v38  ;;  %5274 = vst [vmem:[#allocation33_spill] sm:$0xff] %v4246_v15 }
 0x2a2   :  { %5279 = vst [vmem:[#allocation38_spill] sm:$0xff] %v4263_v29 }
 0x2a6   :  { %v1457_v0 = vpop.f32.mrb[80].mxu0 }
 0x2a7   :  { %v1459_v10 = vpop.f32.mrb[81].mxu0  ;;  %v4187_v14 = vadd.f32 %v1457_v0, %v4169_v36  ;;  %v4207_v0 = vadd.f32 %v1423_v54, %v4172_v40 }
 0x2a8   :  { %v1461_v12 = vpop.f32.mrb[82].mxu0  ;;  %v4196_v46 = vadd.f32 %v1459_v10, %v4172_v40 }
 0x2a9   :  { %v1463_v25 = vpop.f32.mrb[83].mxu0  ;;  %5267 = vst [vmem:[#allocation26_spill] sm:$0xff] %v4187_v14  ;;  %v4204_v57 = vadd.f32 %v1461_v12, %v4169_v36  ;;  %v1497_v63 = vadd.f32 %v1496_v6, %v4187_v14  ;;  %v1505_v54 = vadd.f32 %v4193_v58, %v4207_v0  ;;  %v4238_v14 = vadd.f32 %v1449_v60, %v4172_v40 }
 0x2aa   :  { %v4212_v24 = vadd.f32 %v1463_v25, %v4172_v40  ;;  %v1500_v3 = vadd.f32 %v1499_v51, %v4196_v46  ;;  %v4256_v60 = vadd.f32 %v1453_v61, %v4172_v40 }
 0x2ab   :  { %v1503_v6 = vadd.f32 %v1502_v52, %v4204_v57  ;;  %5273 = vst [vmem:[#allocation32_spill] sm:$0xff] %v4238_v14  ;;  %v4249_v52 = vadd.f32 %v1451_v18, %v4169_v36  ;;  %v1508_v18 = vadd.f32 %v4230_v38, %v4221_v4  ;;  %v1511_v61 = vadd.f32 %v4238_v14, %v4246_v15 }
 0x2ac   :  { %v1506_v51 = vadd.f32 %v1505_v54, %v4212_v24  ;;  %5277 = vst [vmem:[#allocation36_spill] sm:$0xff] %v4256_v60 }
 0x2ad   :  { %5275 = vst [vmem:[#allocation34_spill] sm:$0xff] %v4249_v52 }
 0x2ae   :  { %v1467_v32 = vpop.f32.mrb[84].mxu0 }
 0x2af   :  { %v1469_v39 = vpop.f32.mrb[85].mxu0 }
 0x2b0   :  { %v1471_v41 = vpop.f32.mrb[86].mxu0  ;;  %v4259_v54 = vadd.f32 %v1469_v39, %v4172_v40 }
 0x2b1   :  { %v1473_v53 = vpop.f32.mrb[87].mxu0 }
 0x2b2   :  { %5278 = vst [vmem:[#allocation37_spill] sm:$0xff] %v4259_v54  ;;  %v4277_v39 = vadd.f32 %v1473_v53, %v4172_v40  ;;  %v1512_v14 = vadd.f32 %v1511_v61, %v4259_v54 }
 0x2b4   :  { %5282 = vst [vmem:[#allocation41_spill] sm:$0xff] %v4277_v39 }
 0x2b6   :  { %v1477_v10 = vpop.f32.mrb[88].mxu0 }
 0x2b7   :  { %v4218_v43 = vadd.f32 %v1477_v10, %v4169_v36  ;;  %v1479_v12 = vpop.f32.mrb[89].mxu0 }
 0x2b8   :  { %v4227_v25 = vadd.f32 %v1479_v12, %v4172_v40  ;;  %v1481_v27 = vpop.f32.mrb[90].mxu0 }
 0x2b9   :  { %v1498_v10 = vadd.f32 %v1497_v63, %v4218_v43  ;;  %v4235_v50 = vadd.f32 %v1481_v27, %v4169_v36  ;;  %v1483_v56 = vpop.f32.mrb[91].mxu0  ;;  %v4252_v63 = vadd.f32 %v1467_v32, %v4169_v36  ;;  %v4268_v32 = vadd.f32 %v1471_v41, %v4169_v36 }
 0x2ba   :  { %v1501_v12 = vadd.f32 %v1500_v3, %v4227_v25  ;;  %v4243_v58 = vadd.f32 %v1483_v56, %v4172_v40 }
 0x2bb   :  { %5276 = vst [vmem:[#allocation35_spill] sm:$0xff] %v4252_v63  ;;  %v1504_v27 = vadd.f32 %v1503_v6, %v4235_v50  ;;  %5280 = vst [vmem:[#allocation39_spill] sm:$0xff] %v4268_v32  ;;  %v4272_v6 = vadd.f32 %v4163_v11, %v4172_v40 }
 0x2bc   :  { %v1507_v3 = vadd.f32 %v1506_v51, %v4243_v58  ;;  %v1520_v56 = vadd.f32 %v1501_v12, %v1498_v10  ;;  %v1514_v51 = vadd.f32 %v4249_v52, %v4263_v29  ;;  %v1509_v12 = vadd.f32 %v1508_v18, %v4252_v63 }
 0x2bd   :  { %5281 = vst [vmem:[#allocation40_spill] sm:$0xff] %v4272_v6  ;;  %v1517_v11 = vadd.f32 %v4256_v60, %v4272_v6 }
 0x2be   :  { %v1487_v10 = vpop.f32.mrb[92].mxu0  ;;  %1521 = vadd.xlane.f32.xlu0 %v1520_v56  ;;  %v1523_v33 = vadd.f32 %v1507_v3, %v1504_v27  ;;  %v2045_v27 = vld [vmem:[%s5189_s4] sm:$0x3]  ;;  %v1515_v3 = vadd.f32 %v1514_v51, %v4268_v32 }
 0x2bf   :  { %v4283_v41 = vadd.f32 %v1487_v10, %v4169_v36  ;;  %v1489_v38 = vpop.f32.mrb[93].mxu0  ;;  %v1518_v60 = vadd.f32 %v1517_v11, %v4277_v39  ;;  %v4306_v52 = vrot.slane %v2045_v27, %v3695_v5 }
 0x2c0   :  { %v4289_v53 = vadd.f32 %v1489_v38, %v4172_v40  ;;  %v1491_v15 = vpop.f32.mrb[94].mxu0  ;;  %1524 = vadd.xlane.f32.xlu1 %v1523_v33 }
 0x2c1   :  { %5283 = vst [vmem:[#allocation42_spill] sm:$0xff] %v4283_v41  ;;  %v1510_v56 = vadd.f32 %v1509_v12, %v4283_v41  ;;  %v4297_v18 = vadd.f32 %v1491_v15, %v4169_v36  ;;  %v1493_v10 = vpop.f32.mrb[95].mxu0  ;;  %v4310_v12 = vrot.slane %v2045_v27, %v3701_v7  ;;  %v1028_v41 = vld [vmem:[#allocation5 + $0x30] sm:$0xff] }
 0x2c2   :  { %5284 = vst [vmem:[#allocation43_spill] sm:$0xff] %v4289_v53  ;;  %v1513_v61 = vadd.f32 %v1512_v14, %v4289_v53  ;;  %v4302_v38 = vadd.f32 %v1493_v10, %v4172_v40  ;;  %v1026_v53 = vld [vmem:[#allocation5 + $0x20] sm:$0xff] }
 0x2c3   :  { %5285 = vst [vmem:[#allocation44_spill] sm:$0xff] %v4297_v18  ;;  %v1516_v33 = vadd.f32 %v1515_v3, %v4297_v18  ;;  %v2997_v3 = vld [vmem:[%s5185_s0 + $0x100] sm:$0xff] }
 0x2c4   :  { %5286 = vst [vmem:[#allocation45_spill] sm:$0xff] %v4302_v38  ;;  %v1519_v51 = vadd.f32 %v1518_v60, %v4302_v38  ;;  %v1526_v32 = vadd.f32 %v1513_v61, %v1510_v56 }
 0x2c6   :  { %v2091_v36 = vpop.f32.mrb[96].mxu0  ;;  %1527 = vadd.xlane.f32.xlu0 %v1526_v32  ;;  %v1529_v15 = vadd.f32 %v1519_v51, %v1516_v33  ;;  %v2998_v32 = vld [vmem:[%s5185_s0 + $0x108] sm:$0xff]  ;;  %v2999_v51 = vld [vmem:[%s5185_s0 + $0x110] sm:$0xff] }
 0x2c7   :  { %v2092_v11 = vadd.f32 %v2091_v36, %v4306_v52  ;;  %v2093_v14 = vpop.f32.mrb[97].mxu0 }
 0x2c8   :  { %v2094_v40 = vadd.f32 %v2093_v14, %v4310_v12  ;;  %v2095_v10 = vpop.f32.mrb[98].mxu0  ;;  %1530 = vadd.xlane.f32.xlu1 %v1529_v15 }
 0x2c9   :  { %v2170_v5 = vsub.f32 %v2092_v11, %v2997_v3  ;;  %v2096_v60 = vadd.f32 %v2095_v10, %v4306_v52  ;;  %v2097_v56 = vpop.f32.mrb[99].mxu0  ;;  %v3000_v11 = vld [vmem:[%s5185_s0 + $0x118] sm:$0xff] }
 0x2ca   :  { %v2171_v27 = vsub.f32 %v2094_v40, %v2998_v32  ;;  %v2098_v61 = vadd.f32 %v2097_v56, %v4310_v12 }
 0x2cb   :  { %v2202_v33 = vmul.f32 %v2170_v5, %v2170_v5  ;;  %v2172_v36 = vsub.f32 %v2096_v60, %v2999_v51  ;;  %v3001_v60 = vld [vmem:[%s5185_s0 + $0x120] sm:$0xff] }
 0x2cc   :  { %v2203_v15 = vmul.f32 %v2171_v27, %v2171_v27  ;;  %v2173_v14 = vsub.f32 %v2098_v61, %v3000_v11  ;;  %v3003_v11 = vld [vmem:[%s5185_s0 + $0x130] sm:$0xff] }
 0x2cd   :  { %v2204_v10 = vmul.f32 %v2172_v36, %v2172_v36 }
 0x2ce   :  { %v2234_v3 = vadd.f32 %v2203_v15, %v2202_v33  ;;  %v2101_v7 = vpop.f32.mrb[100].mxu0  ;;  %v2205_v56 = vmul.f32 %v2173_v14, %v2173_v14  ;;  %v3002_v33 = vld [vmem:[%s5185_s0 + $0x128] sm:$0xff] }
 0x2cf   :  { %v2102_v38 = vadd.f32 %v2101_v7, %v4306_v52  ;;  %v2103_v40 = vpop.f32.mrb[101].mxu0 }
 0x2d0   :  { %v2235_v32 = vadd.f32 %v2234_v3, %v2204_v10  ;;  %v2104_v5 = vadd.f32 %v2103_v40, %v4310_v12  ;;  %v2105_v18 = vpop.f32.mrb[102].mxu0 }
 0x2d1   :  { %v2174_v27 = vsub.f32 %v2102_v38, %v3001_v60  ;;  %v2106_v51 = vadd.f32 %v2105_v18, %v4306_v52  ;;  %v2107_v39 = vpop.f32.mrb[103].mxu0  ;;  %v3004_v18 = vld [vmem:[%s5185_s0 + $0x138] sm:$0xff] }
 0x2d2   :  { %v2236_v61 = vadd.f32 %v2235_v32, %v2205_v56  ;;  %v2175_v7 = vsub.f32 %v2104_v5, %v3002_v33  ;;  %v2108_v36 = vadd.f32 %v2107_v39, %v4310_v12 }
 0x2d3   :  { %v2206_v15 = vmul.f32 %v2174_v27, %v2174_v27  ;;  %v2176_v14 = vsub.f32 %v2106_v51, %v3003_v11  ;;  %v3005_v51 = vld [vmem:[%s5185_s0 + $0x140] sm:$0xff] }
 0x2d4   :  { %v2207_v10 = vmul.f32 %v2175_v7, %v2175_v7  ;;  %v2177_v38 = vsub.f32 %v2108_v36, %v3004_v18  ;;  %v3006_v36 = vld [vmem:[%s5185_s0 + $0x148] sm:$0xff]  ;;  %v3007_v18 = vld [vmem:[%s5185_s0 + $0x150] sm:$0xff] }
 0x2d5   :  { %v2237_v3 = vadd.f32 %v2236_v61, %v2206_v15  ;;  %v2208_v56 = vmul.f32 %v2176_v14, %v2176_v14 }
 0x2d6   :  { %v2111_v40 = vpop.f32.mrb[104].mxu0  ;;  %v2209_v6 = vmul.f32 %v2177_v38, %v2177_v38 }
 0x2d7   :  { %v2238_v32 = vadd.f32 %v2237_v3, %v2207_v10  ;;  %v2112_v5 = vadd.f32 %v2111_v40, %v4306_v52  ;;  %v2113_v60 = vpop.f32.mrb[105].mxu0 }
 0x2d8   :  { %v2114_v39 = vadd.f32 %v2113_v60, %v4310_v12  ;;  %v2115_v27 = vpop.f32.mrb[106].mxu0 }
 0x2d9   :  { %v2239_v33 = vadd.f32 %v2238_v32, %v2208_v56  ;;  %v2178_v61 = vsub.f32 %v2112_v5, %v3005_v51  ;;  %v2116_v7 = vadd.f32 %v2115_v27, %v4306_v52  ;;  %v2117_v15 = vpop.f32.mrb[107].mxu0  ;;  %v3008_v56 = vld [vmem:[%s5185_s0 + $0x158] sm:$0xff] }
 0x2da   :  { %v2179_v11 = vsub.f32 %v2114_v39, %v3006_v36  ;;  %v2118_v14 = vadd.f32 %v2117_v15, %v4310_v12 }
 0x2db   :  { %v2240_v10 = vadd.f32 %v2239_v33, %v2209_v6  ;;  %v2210_v3 = vmul.f32 %v2178_v61, %v2178_v61  ;;  %v2180_v38 = vsub.f32 %v2116_v7, %v3007_v18  ;;  %v3009_v7 = vld [vmem:[%s5185_s0 + $0x160] sm:$0xff] }
 0x2dc   :  { %v2211_v40 = vmul.f32 %v2179_v11, %v2179_v11  ;;  %v2181_v5 = vsub.f32 %v2118_v14, %v3008_v56  ;;  %v3010_v14 = vld [vmem:[%s5185_s0 + $0x168] sm:$0xff]  ;;  %v3011_v56 = vld [vmem:[%s5185_s0 + $0x170] sm:$0xff] }
 0x2dd   :  { %v2241_v32 = vadd.f32 %v2240_v10, %v2210_v3  ;;  %v2212_v51 = vmul.f32 %v2180_v38, %v2180_v38 }
 0x2de   :  { %v2121_v60 = vpop.f32.mrb[108].mxu0  ;;  %v2213_v36 = vmul.f32 %v2181_v5, %v2181_v5 }
 0x2df   :  { %v2242_v27 = vadd.f32 %v2241_v32, %v2211_v40  ;;  %v2122_v39 = vadd.f32 %v2121_v60, %v4306_v52  ;;  %v2123_v15 = vpop.f32.mrb[109].mxu0 }
 0x2e0   :  { %v2124_v6 = vadd.f32 %v2123_v15, %v4310_v12  ;;  %v2125_v33 = vpop.f32.mrb[110].mxu0 }
 0x2e1   :  { %v2243_v61 = vadd.f32 %v2242_v27, %v2212_v51  ;;  %v2182_v11 = vsub.f32 %v2122_v39, %v3009_v7  ;;  %v2126_v10 = vadd.f32 %v2125_v33, %v4306_v52  ;;  %v2127_v3 = vpop.f32.mrb[111].mxu0  ;;  %v3012_v51 = vld [vmem:[%s5185_s0 + $0x178] sm:$0xff] }
 0x2e2   :  { %v2183_v18 = vsub.f32 %v2124_v6, %v3010_v14  ;;  %v2128_v38 = vadd.f32 %v2127_v3, %v4310_v12 }
 0x2e3   :  { %v2244_v40 = vadd.f32 %v2243_v61, %v2213_v36  ;;  %v2214_v32 = vmul.f32 %v2182_v11, %v2182_v11  ;;  %v2184_v5 = vsub.f32 %v2126_v10, %v3011_v56  ;;  %v3013_v10 = vld [vmem:[%s5185_s0 + $0x180] sm:$0xff] }
 0x2e4   :  { %v2215_v60 = vmul.f32 %v2183_v18, %v2183_v18  ;;  %v2185_v39 = vsub.f32 %v2128_v38, %v3012_v51  ;;  %v3014_v38 = vld [vmem:[%s5185_s0 + $0x188] sm:$0xff]  ;;  %v3015_v51 = vld [vmem:[%s5185_s0 + $0x190] sm:$0xff] }
 0x2e5   :  { %v2245_v27 = vadd.f32 %v2244_v40, %v2214_v32  ;;  %v2216_v7 = vmul.f32 %v2184_v5, %v2184_v5 }
 0x2e6   :  { %v2131_v15 = vpop.f32.mrb[112].mxu0  ;;  %v2217_v14 = vmul.f32 %v2185_v39, %v2185_v39 }
 0x2e7   :  { %v2246_v33 = vadd.f32 %v2245_v27, %v2215_v60  ;;  %v2132_v6 = vadd.f32 %v2131_v15, %v4306_v52  ;;  %v2133_v3 = vpop.f32.mrb[113].mxu0 }
 0x2e8   :  { %v2134_v61 = vadd.f32 %v2133_v3, %v4310_v12  ;;  %v2135_v36 = vpop.f32.mrb[114].mxu0  ;;  %v1025_v3 = vld [vmem:[#allocation5 + $0x18] sm:$0xff] }
 0x2e9   :  { %v2247_v11 = vadd.f32 %v2246_v33, %v2216_v7  ;;  %v2186_v18 = vsub.f32 %v2132_v6, %v3013_v10  ;;  %v2136_v40 = vadd.f32 %v2135_v36, %v4306_v52  ;;  %v2137_v32 = vpop.f32.mrb[115].mxu0  ;;  %v3016_v33 = vld [vmem:[%s5185_s0 + $0x198] sm:$0xff]  ;;  %v1023_v6 = vld [vmem:[#allocation5 + $0x8] sm:$0xff]  ;;  %v1022_v36 = vld [vmem:[#allocation5] sm:$0xff] }
 0x2ea   :  { %v2187_v56 = vsub.f32 %v2134_v61, %v3014_v38  ;;  %v2138_v5 = vadd.f32 %v2137_v32, %v4310_v12  ;;  %v1103_v61 = vpack.c.bf16 %v1025_v3, %v1023_v6  ;;  %v1024_v38 = vld [vmem:[#allocation5 + $0x10] sm:$0xff]  ;;  %v1027_v32 = vld [vmem:[#allocation5 + $0x28] sm:$0xff]  ;;  %v1104_v6 = vpack.c.bf16 %v1028_v41, %v1026_v53 }
 0x2eb   :  { %v2248_v60 = vadd.f32 %v2247_v11, %v2217_v14  ;;  %v2218_v27 = vmul.f32 %v2186_v18, %v2186_v18  ;;  %v2188_v39 = vsub.f32 %v2136_v40, %v3015_v51  ;;  %v1029_v11 = vld [vmem:[#allocation5 + $0x38] sm:$0xff]  ;;  %v1102_v18 = vpack.c.bf16 %v1024_v38, %v1022_v36  ;;  %v1031_v40 = vld [vmem:[#allocation5 + $0x48] sm:$0xff]  ;;  %v3017_v36 = vld [vmem:[%s5185_s0 + $0x1a0] sm:$0xff] }
 0x2ec   :  { %v2219_v15 = vmul.f32 %v2187_v56, %v2187_v56  ;;  %v2189_v7 = vsub.f32 %v2138_v5, %v3016_v33  ;;  %v1105_v29 = vpack.c.bf16 %v1029_v11, %v1027_v32  ;;  %1146 = vmatprep.subr.bf16.mxu1 %v1103_v61  ;;  %v1033_v5 = vld [vmem:[#allocation5 + $0x58] sm:$0xff]  ;;  %v1030_v32 = vld [vmem:[#allocation5 + $0x40] sm:$0xff]  ;;  %v1032_v61 = vld [vmem:[#allocation5 + $0x50] sm:$0xff] }
 0x2ed   :  { %v2249_v10 = vadd.f32 %v2248_v60, %v2218_v27  ;;  %v2220_v51 = vmul.f32 %v2188_v39, %v2188_v39  ;;  %1147 = vmatpush1.bf16.msra.mxu1 %v1102_v18  ;;  %v1035_v53 = vld [vmem:[#allocation5 + $0x68] sm:$0xff]  ;;  %v1037_v11 = vld [vmem:[#allocation5 + $0x78] sm:$0xff] }
 0x2ee   :  { %v2141_v14 = vpop.f32.mrb[116].mxu0  ;;  %v2221_v33 = vmul.f32 %v2189_v7, %v2189_v7  ;;  %1148 = vmatprep.subr.bf16.mxu1 %v1105_v29 }
 0x2ef   :  { %v2250_v56 = vadd.f32 %v2249_v10, %v2219_v15  ;;  %v2142_v54 = vadd.f32 %v2141_v14, %v4306_v52  ;;  %v2143_v63 = vpop.f32.mrb[117].mxu0  ;;  %v1107_v10 = vpack.c.bf16 %v1033_v5, %v1031_v40  ;;  %v1106_v40 = vpack.c.bf16 %v1032_v61, %v1030_v32 }
 0x2f0   :  { %v2144_v60 = vadd.f32 %v2143_v63, %v4310_v12  ;;  %v2145_v27 = vpop.f32.mrb[118].mxu0  ;;  %v3018_v63 = vld [vmem:[%s5185_s0 + $0x1a8] sm:$0xff] }
 0x2f1   :  { %v2251_v3 = vadd.f32 %v2250_v56, %v2220_v51  ;;  %v2190_v38 = vsub.f32 %v2142_v54, %v3017_v36  ;;  %v2146_v15 = vadd.f32 %v2145_v27, %v4306_v52  ;;  %v2147_v39 = vpop.f32.mrb[119].mxu0  ;;  %v3019_v54 = vld [vmem:[%s5185_s0 + $0x1b0] sm:$0xff]  ;;  %1149 = vmatpush1.bf16.msra.mxu1 %v1104_v6  ;;  %v1034_v51 = vld [vmem:[#allocation5 + $0x60] sm:$0xff]  ;;  %v1109_v36 = vpack.c.bf16 %v1037_v11, %v1035_v53 }
 0x2f2   :  { %v2191_v7 = vsub.f32 %v2144_v60, %v3018_v63  ;;  %v2148_v41 = vadd.f32 %v2147_v39, %v4310_v12  ;;  %v3020_v60 = vld [vmem:[%s5185_s0 + $0x1b8] sm:$0xff]  ;;  %1150 = vmatprep.subr.bf16.mxu1 %v1107_v10  ;;  %v1036_v39 = vld [vmem:[#allocation5 + $0x70] sm:$0xff]  ;;  %v3021_v10 = vld [vmem:[%s5185_s0 + $0x1c0] sm:$0xff] }
 0x2f3   :  { %v2252_v14 = vadd.f32 %v2251_v3, %v2221_v33  ;;  %v2222_v18 = vmul.f32 %v2190_v38, %v2190_v38  ;;  %v2192_v56 = vsub.f32 %v2146_v15, %v3019_v54  ;;  %v1039_v33 = vld [vmem:[#allocation5 + $0x88] sm:$0xff]  ;;  %v1041_v3 = vld [vmem:[#allocation5 + $0x98] sm:$0xff]  ;;  %v1108_v61 = vpack.c.bf16 %v1036_v39, %v1034_v51 }
 0x2f4   :  { %v2223_v29 = vmul.f32 %v2191_v7, %v2191_v7  ;;  %v2193_v27 = vsub.f32 %v2148_v41, %v3020_v60  ;;  %v1045_v60 = vld [vmem:[#allocation5 + $0xb8] sm:$0xff] }
 0x2f5   :  { %v2253_v5 = vadd.f32 %v2252_v14, %v2222_v18  ;;  %v2224_v4 = vmul.f32 %v2192_v56, %v2192_v56  ;;  %1151 = vmatpush1.bf16.msra.mxu1 %v1106_v40  ;;  %v1111_v14 = vpack.c.bf16 %v1041_v3, %v1039_v33  ;;  %v1038_v56 = vld [vmem:[#allocation5 + $0x80] sm:$0xff]  ;;  %v3023_v33 = vld [vmem:[%s5185_s0 + $0x1d0] sm:$0xff] }
 0x2f6   :  { %v2151_v38 = vpop.f32.mrb[120].mxu0  ;;  %v2225_v54 = vmul.f32 %v2193_v27, %v2193_v27  ;;  %1152 = vmatprep.subr.bf16.mxu1 %v1109_v36 }
 0x2f7   :  { %v2254_v63 = vadd.f32 %v2253_v5, %v2223_v29  ;;  %v2152_v15 = vadd.f32 %v2151_v38, %v4306_v52  ;;  %v2153_v7 = vpop.f32.mrb[121].mxu0  ;;  %v1040_v29 = vld [vmem:[#allocation5 + $0x90] sm:$0xff]  ;;  %v3022_v5 = vld [vmem:[%s5185_s0 + $0x1c8] sm:$0xff] }
 0x2f8   :  { %v2154_v6 = vadd.f32 %v2153_v7, %v4310_v12  ;;  %v2155_v32 = vpop.f32.mrb[122].mxu0  ;;  %v1110_v36 = vpack.c.bf16 %v1040_v29, %v1038_v56  ;;  %v3024_v7 = vld [vmem:[%s5185_s0 + $0x1d8] sm:$0xff] }
 0x2f9   :  { %v2255_v18 = vadd.f32 %v2254_v63, %v2224_v4  ;;  %v2194_v41 = vsub.f32 %v2152_v15, %v3021_v10  ;;  %v2156_v53 = vadd.f32 %v2155_v32, %v4306_v52  ;;  %v2157_v11 = vpop.f32.mrb[123].mxu0  ;;  %v1043_v4 = vld [vmem:[#allocation5 + $0xa8] sm:$0xff]  ;;  %1153 = vmatpush1.bf16.msra.mxu1 %v1108_v61  ;;  %v1042_v63 = vld [vmem:[#allocation5 + $0xa0] sm:$0xff]  ;;  %v1044_v10 = vld [vmem:[#allocation5 + $0xb0] sm:$0xff] }
 0x2fa   :  { %v2195_v40 = vsub.f32 %v2154_v6, %v3022_v5  ;;  %v2158_v51 = vadd.f32 %v2157_v11, %v4310_v12  ;;  %1154 = vmatprep.subr.bf16.mxu1 %v1111_v14  ;;  %v1113_v32 = vpack.c.bf16 %v1045_v60, %v1043_v4  ;;  %v1112_v29 = vpack.c.bf16 %v1044_v10, %v1042_v63  ;;  %v3025_v14 = vld [vmem:[%s5185_s0 + $0x1e0] sm:$0xff] }
 0x2fb   :  { %v2256_v27 = vadd.f32 %v2255_v18, %v2225_v54  ;;  %v2226_v39 = vmul.f32 %v2194_v41, %v2194_v41  ;;  %v2196_v3 = vsub.f32 %v2156_v53, %v3023_v33  ;;  %v1047_v18 = vld [vmem:[#allocation5 + $0xc8] sm:$0xff]  ;;  %v1049_v54 = vld [vmem:[#allocation5 + $0xd8] sm:$0xff] }
 0x2fc   :  { %v2227_v38 = vmul.f32 %v2195_v40, %v2195_v40  ;;  %v2197_v6 = vsub.f32 %v2158_v51, %v3024_v7  ;;  %v1051_v7 = vld [vmem:[#allocation5 + $0xe8] sm:$0xff] }
 0x2fd   :  { %v2257_v15 = vadd.f32 %v2256_v27, %v2226_v39  ;;  %v2228_v5 = vmul.f32 %v2196_v3, %v2196_v3  ;;  %1155 = vmatpush1.bf16.msra.mxu1 %v1110_v36  ;;  %v1115_v27 = vpack.c.bf16 %v1049_v54, %v1047_v18  ;;  %v1046_v3 = vld [vmem:[#allocation5 + $0xc0] sm:$0xff]  ;;  %v3027_v54 = vld [vmem:[%s5185_s0 + $0x1f0] sm:$0xff] }
 0x2fe   :  { %v2161_v41 = vpop.f32.mrb[124].mxu0  ;;  %v2229_v33 = vmul.f32 %v2197_v6, %v2197_v6  ;;  %1156 = vmatprep.subr.bf16.mxu1 %v1113_v32  ;;  %v1053_v6 = vld [vmem:[#allocation5 + $0xf8] sm:$0xff] }
 0x2ff   :  { %v2258_v11 = vadd.f32 %v2257_v15, %v2227_v38  ;;  %v2162_v53 = vadd.f32 %v2161_v41, %v4306_v52  ;;  %v2163_v40 = vpop.f32.mrb[125].mxu0  ;;  %v1048_v38 = vld [vmem:[#allocation5 + $0xd0] sm:$0xff]  ;;  %v3026_v15 = vld [vmem:[%s5185_s0 + $0x1e8] sm:$0xff] }
 0x300   :  { %v2164_v61 = vadd.f32 %v2163_v40, %v4310_v12  ;;  %v2165_v56 = vpop.f32.mrb[126].mxu0  ;;  %v1114_v32 = vpack.c.bf16 %v1048_v38, %v1046_v3  ;;  %v1050_v40 = vld [vmem:[#allocation5 + $0xe0] sm:$0xff]  ;;  %v1056_v3 = vld [vmem:[#allocation5 + $0x110] sm:$0xff]  ;;  %v1059_v38 = vld [vmem:[#allocation5 + $0x128] sm:$0xff] }
 0x301   :  { %v2259_v39 = vadd.f32 %v2258_v11, %v2228_v5  ;;  %v2198_v51 = vsub.f32 %v2162_v53, %v3025_v14  ;;  %v2166_v4 = vadd.f32 %v2165_v56, %v4306_v52  ;;  %v2167_v60 = vpop.f32.mrb[127].mxu0  ;;  %1157 = vmatpush1.bf16.msra.mxu1 %v1112_v29  ;;  %v3028_v5 = vld [vmem:[%s5185_s0 + $0x1f8] sm:$0xff]  ;;  %v1055_v56 = vld [vmem:[#allocation5 + $0x108] sm:$0xff] }
 0x302   :  { %v2199_v36 = vsub.f32 %v2164_v61, %v3026_v15  ;;  %v2168_v63 = vadd.f32 %v2167_v60, %v4310_v12  ;;  %1158 = vmatprep.subr.bf16.mxu1 %v1115_v27  ;;  %v1117_v12 = vpack.c.bf16 %v1053_v6, %v1051_v7  ;;  %v1052_v61 = vld [vmem:[#allocation5 + $0xf0] sm:$0xff]  ;;  %v1054_v60 = vld [vmem:[#allocation5 + $0x100] sm:$0xff] }
 0x303   :  { %v2260_v10 = vadd.f32 %v2259_v39, %v2229_v33  ;;  %v2230_v18 = vmul.f32 %v2198_v51, %v2198_v51  ;;  %v2200_v52 = vsub.f32 %v2166_v4, %v3027_v54  ;;  %v1057_v39 = vld [vmem:[#allocation5 + $0x118] sm:$0xff]  ;;  %v1116_v51 = vpack.c.bf16 %v1052_v61, %v1050_v40 }
 0x304   :  { %v2231_v41 = vmul.f32 %v2199_v36, %v2199_v36  ;;  %v2201_v53 = vsub.f32 %v2168_v63, %v3028_v5  ;;  %v1119_v29 = vpack.c.bf16 %v1057_v39, %v1055_v56  ;;  %v1061_v36 = vld [vmem:[#allocation5 + $0x138] sm:$0xff]  ;;  %v1060_v63 = vld [vmem:[#allocation5 + $0x130] sm:$0xff] }
 0x305   :  { %v2261_v11 = vadd.f32 %v2260_v10, %v2230_v18  ;;  %v2232_v14 = vmul.f32 %v2200_v52, %v2200_v52  ;;  %1159 = vmatpush1.bf16.msra.mxu1 %v1114_v32  ;;  %v1058_v10 = vld [vmem:[#allocation5 + $0x120] sm:$0xff]  ;;  %v1118_v18 = vpack.c.bf16 %v1056_v3, %v1054_v60  ;;  %v1121_v54 = vpack.c.bf16 %v1061_v36, %v1059_v38 }
 0x306   :  { %v2233_v4 = vmul.f32 %v2201_v53, %v2201_v53  ;;  %1160 = vmatprep.subr.bf16.mxu1 %v1117_v12  ;;  %v1120_v52 = vpack.c.bf16 %v1060_v63, %v1058_v10 }
 0x307   :  { %v2262_v33 = vadd.f32 %v2261_v11, %v2231_v41 }
 0x309   :  { %v2263_v15 = vadd.f32 %v2262_v33, %v2232_v14  ;;  %1161 = vmatpush1.bf16.msra.mxu1 %v1116_v51 }
 0x30a   :  { %1162 = vmatprep.subr.bf16.mxu1 %v1119_v29 }
 0x30b   :  { %v831_v27 = vpop.xlane.xlu0 %830  ;;  %v4440_v7 = vadd.f32 %v2263_v15, %v2233_v4 }
 0x30c   :  { %v842_v6 = vmul.f32 0.0009765625, %v831_v27 }
 0x30d   :  { %5287 = vst [vmem:[#allocation46_spill] sm:$0xff] %v4440_v7  ;;  %1163 = vmatpush1.bf16.msra.mxu1 %v1118_v18 }
 0x30e   :  { %v4443_v41 = vsub.f32 %v4041_v16, %v842_v6  ;;  %v4446_v32 = vsub.f32 %v4047_v19, %v842_v6  ;;  %v4449_v11 = vsub.f32 %v4035_v13, %v842_v6  ;;  %v4452_v5 = vsub.f32 %v4038_v8, %v842_v6  ;;  %1164 = vmatprep.subr.bf16.mxu1 %v1121_v54 }
 0x30f   :  { %v834_v53 = vpop.xlane.xlu0 %833  ;;  %v4455_v12 = vsub.f32 %v4044_v17, %v842_v6  ;;  %v4458_v40 = vsub.f32 %v4056_v22, %v842_v6  ;;  %v4461_v61 = vsub.f32 %v4079_v37, %v842_v6  ;;  %v4464_v16 = vsub.f32 %v4087_v42, %v842_v6 }
 0x310   :  { %v843_v19 = vmul.f32 0.0009765625, %v834_v53  ;;  %v878_v13 = vmul.f32 %v4443_v41, %v4443_v41  ;;  %v879_v8 = vmul.f32 %v4446_v32, %v4446_v32  ;;  %v886_v17 = vmul.f32 %v4449_v11, %v4449_v11 }
 0x311   :  { %v887_v22 = vmul.f32 %v4452_v5, %v4452_v5  ;;  %v894_v37 = vmul.f32 %v4455_v12, %v4455_v12  ;;  %v895_v42 = vmul.f32 %v4458_v40, %v4458_v40  ;;  %v902_v56 = vmul.f32 %v4461_v61, %v4461_v61  ;;  %1165 = vmatpush1.bf16.msra.mxu1 %v1120_v52 }
 0x312   :  { %v903_v39 = vmul.f32 %v4464_v16, %v4464_v16  ;;  %v910_v33 = vadd.f32 %v886_v17, %v878_v13  ;;  %v4483_v14 = vsub.f32 %v4059_v23, %v843_v19  ;;  %v4486_v51 = vsub.f32 %v4064_v26, %v843_v19 }
 0x313   :  { %v837_v4 = vpop.xlane.xlu1 %836  ;;  %v913_v29 = vadd.f32 %v887_v22, %v879_v8  ;;  %v4489_v60 = vsub.f32 %v4050_v9, %v843_v19  ;;  %v4492_v3 = vsub.f32 %v4053_v20, %v843_v19  ;;  %v4495_v38 = vsub.f32 %v4069_v28, %v843_v19 }
 0x314   :  { %v844_v15 = vmul.f32 0.0009765625, %v837_v4  ;;  %v911_v36 = vadd.f32 %v910_v33, %v894_v37  ;;  %v4498_v10 = vsub.f32 %v4072_v30, %v843_v19  ;;  %v4501_v23 = vsub.f32 %v4096_v49, %v843_v19 }
 0x315   :  { %v914_v26 = vadd.f32 %v913_v29, %v895_v42  ;;  %v4504_v63 = vsub.f32 %v4102_v55, %v843_v19  ;;  %v880_v9 = vmul.f32 %v4483_v14, %v4483_v14  ;;  %v881_v20 = vmul.f32 %v4486_v51, %v4486_v51 }
 0x316   :  { %v912_v28 = vadd.f32 %v911_v36, %v902_v56  ;;  %v888_v27 = vmul.f32 %v4489_v60, %v4489_v60  ;;  %v889_v30 = vmul.f32 %v4492_v3, %v4492_v3  ;;  %v896_v49 = vmul.f32 %v4495_v38, %v4495_v38 }
 0x317   :  { %v840_v6 = vpop.xlane.xlu1 %839  ;;  %v915_v18 = vadd.f32 %v914_v26, %v903_v39  ;;  %v897_v55 = vmul.f32 %v4498_v10, %v4498_v10  ;;  %v904_v54 = vmul.f32 %v4501_v23, %v4501_v23  ;;  %v905_v52 = vmul.f32 %v4504_v63, %v4504_v63 }
 0x318   :  { %v845_v53 = vmul.f32 0.0009765625, %v840_v6  ;;  %v916_v19 = vadd.f32 %v888_v27, %v880_v9  ;;  %v919_v13 = vadd.f32 %v889_v30, %v881_v20  ;;  %v4523_v8 = vsub.f32 %v4075_v35, %v844_v15  ;;  %v5288_v6 = vld [vmem:[#allocation18_spill] sm:$0xff] }
 0x319   :  { %v934_v17 = vadd.f32 %v915_v18, %v912_v28  ;;  %v4526_v22 = vsub.f32 %v4106_v31, %v844_v15  ;;  %v4529_v37 = vsub.f32 %v4090_v44, %v844_v15  ;;  %v4532_v42 = vsub.f32 %v4093_v47, %v844_v15 }
 0x31a   :  { %v917_v56 = vadd.f32 %v916_v19, %v896_v49  ;;  %v920_v39 = vadd.f32 %v919_v13, %v897_v55  ;;  %v4535_v33 = vsub.f32 %v4115_v48, %v844_v15  ;;  %v4538_v4 = vsub.f32 %v4118_v59, %v844_v15 }
 0x31b   :  { %935 = vadd.xlane.f32.xlu0 %v934_v17  ;;  %v4541_v35 = vsub.f32 %v4143_v21, %v844_v15  ;;  %v4544_v31 = vsub.f32 %v4149_v1, %v844_v15  ;;  %v882_v44 = vmul.f32 %v4523_v8, %v4523_v8  ;;  %v883_v47 = vmul.f32 %v4526_v22, %v4526_v22 }
 0x31c   :  { %v918_v29 = vadd.f32 %v917_v56, %v904_v54  ;;  %v921_v36 = vadd.f32 %v920_v39, %v905_v52  ;;  %v890_v48 = vmul.f32 %v4529_v37, %v4529_v37  ;;  %v891_v59 = vmul.f32 %v4532_v42, %v4532_v42 }
 0x31d   :  { %v898_v21 = vmul.f32 %v4535_v33, %v4535_v33  ;;  %v899_v1 = vmul.f32 %v4538_v4, %v4538_v4  ;;  %v906_v15 = vmul.f32 %v4541_v35, %v4541_v35  ;;  %v4561_v28 = vsub.f32 %v4123_v62, %v845_v53  ;;  %v5289_v62 = vld [vmem:[#allocation19_spill] sm:$0xff] }
 0x31e   :  { %v937_v26 = vadd.f32 %v921_v36, %v918_v29  ;;  %v922_v9 = vadd.f32 %v890_v48, %v882_v44  ;;  %v925_v20 = vadd.f32 %v891_v59, %v883_v47  ;;  %v4564_v27 = vsub.f32 %v4129_v2, %v845_v53  ;;  %v5290_v2 = vld [vmem:[#allocation20_spill] sm:$0xff]  ;;  %v5291_v44 = vld [vmem:[#allocation21_spill] sm:$0xff] }
 0x31f   :  { %v4567_v30 = vsub.f32 %v4109_v34, %v845_v53  ;;  %v4570_v49 = vsub.f32 %v4112_v45, %v845_v53  ;;  %v4573_v18 = vsub.f32 %v5288_v6, %v845_v53  ;;  %v907_v55 = vmul.f32 %v4544_v31, %v4544_v31 }
 0x320   :  { %938 = vadd.xlane.f32.xlu1 %v937_v26  ;;  %v923_v54 = vadd.f32 %v922_v9, %v898_v21  ;;  %v926_v52 = vadd.f32 %v925_v20, %v899_v1  ;;  %v4578_v19 = vsub.f32 %v5289_v62, %v845_v53  ;;  %v4581_v13 = vsub.f32 %v5290_v2, %v845_v53  ;;  %v1062_v62 = vld [vmem:[#allocation5 + $0x140] sm:$0xff] }
 0x321   :  { %v884_v34 = vmul.f32 %v4561_v28, %v4561_v28  ;;  %v885_v45 = vmul.f32 %v4564_v27, %v4564_v27  ;;  %v892_v17 = vmul.f32 %v4567_v30, %v4567_v30  ;;  %v4590_v47 = vsub.f32 %v5291_v44, %v845_v53 }
 0x322   :  { %v924_v56 = vadd.f32 %v923_v54, %v906_v15  ;;  %v927_v39 = vadd.f32 %v926_v52, %v907_v55  ;;  %v893_v29 = vmul.f32 %v4570_v49, %v4570_v49  ;;  %v900_v36 = vmul.f32 %v4573_v18, %v4573_v18  ;;  %v1063_v54 = vld [vmem:[#allocation5 + $0x148] sm:$0xff]  ;;  %v1065_v52 = vld [vmem:[#allocation5 + $0x158] sm:$0xff] }
 0x323   :  { %v928_v48 = vadd.f32 %v892_v17, %v884_v34  ;;  %v901_v21 = vmul.f32 %v4578_v19, %v4578_v19  ;;  %v908_v26 = vmul.f32 %v4581_v13, %v4581_v13  ;;  %v909_v53 = vmul.f32 %v4590_v47, %v4590_v47  ;;  %v1064_v34 = vld [vmem:[#allocation5 + $0x150] sm:$0xff] }
 0x324   :  { %v940_v59 = vadd.f32 %v927_v39, %v924_v56  ;;  %v931_v1 = vadd.f32 %v893_v29, %v885_v45  ;;  %v1123_v2 = vpack.c.bf16 %v1065_v52, %v1063_v54  ;;  %v1122_v17 = vpack.c.bf16 %v1064_v34, %v1062_v62  ;;  %v1067_v45 = vld [vmem:[#allocation5 + $0x168] sm:$0xff]  ;;  %v1069_v56 = vld [vmem:[#allocation5 + $0x178] sm:$0xff]  ;;  %v1066_v39 = vld [vmem:[#allocation5 + $0x160] sm:$0xff] }
 0x325   :  { %v929_v15 = vadd.f32 %v928_v48, %v900_v36  ;;  %v1125_v44 = vpack.c.bf16 %v1069_v56, %v1067_v45  ;;  %v1068_v29 = vld [vmem:[#allocation5 + $0x170] sm:$0xff]  ;;  %v1071_v48 = vld [vmem:[#allocation5 + $0x188] sm:$0xff]  ;;  %v1081_v62 = vld [vmem:[#allocation5 + $0x1d8] sm:$0xff] }
 0x326   :  { %941 = vadd.xlane.f32.xlu0 %v940_v59  ;;  %v932_v9 = vadd.f32 %v931_v1, %v901_v21  ;;  %1166 = vmatprep.subr.bf16.mxu1 %v1123_v2  ;;  %v1124_v36 = vpack.c.bf16 %v1068_v29, %v1066_v39  ;;  %v1073_v59 = vld [vmem:[#allocation5 + $0x198] sm:$0xff]  ;;  %v1070_v21 = vld [vmem:[#allocation5 + $0x180] sm:$0xff]  ;;  %v1079_v52 = vld [vmem:[#allocation5 + $0x1c8] sm:$0xff] }
 0x327   :  { %v930_v20 = vadd.f32 %v929_v15, %v908_v26  ;;  %1167 = vmatpush1.bf16.msra.mxu1 %v1122_v17  ;;  %v1127_v1 = vpack.c.bf16 %v1073_v59, %v1071_v48  ;;  %v1072_v26 = vld [vmem:[#allocation5 + $0x190] sm:$0xff]  ;;  %v1078_v2 = vld [vmem:[#allocation5 + $0x1c0] sm:$0xff]  ;;  %v1131_v34 = vpack.c.bf16 %v1081_v62, %v1079_v52  ;;  %v1083_v45 = vld [vmem:[#allocation5 + $0x1e8] sm:$0xff] }
 0x328   :  { %v933_v6 = vadd.f32 %v932_v9, %v909_v53  ;;  %1168 = vmatprep.subr.bf16.mxu1 %v1125_v44  ;;  %v1126_v15 = vpack.c.bf16 %v1072_v26, %v1070_v21  ;;  %v1075_v53 = vld [vmem:[#allocation5 + $0x1a8] sm:$0xff]  ;;  %v1077_v9 = vld [vmem:[#allocation5 + $0x1b8] sm:$0xff]  ;;  %v1080_v17 = vld [vmem:[#allocation5 + $0x1d0] sm:$0xff] }
 0x329   :  { %v1085_v56 = vld [vmem:[#allocation5 + $0x1f8] sm:$0xff]  ;;  %v1130_v39 = vpack.c.bf16 %v1080_v17, %v1078_v2  ;;  %v1082_v29 = vld [vmem:[#allocation5 + $0x1e0] sm:$0xff]  ;;  %v1713_v59 = vld [vmem:[#allocation8 + $0x8] sm:$0xff] }
 0x32a   :  { %v943_v55 = vadd.f32 %v933_v6, %v930_v20  ;;  %v1129_v20 = vpack.c.bf16 %v1077_v9, %v1075_v53  ;;  %v1074_v6 = vld [vmem:[#allocation5 + $0x1a0] sm:$0xff]  ;;  %v1133_v44 = vpack.c.bf16 %v1085_v56, %v1083_v45  ;;  %v1715_v21 = vld [vmem:[#allocation8 + $0x18] sm:$0xff] }
 0x32b   :  { %1169 = vmatpush1.bf16.msra.mxu1 %v1124_v36  ;;  %v1084_v36 = vld [vmem:[#allocation5 + $0x1f0] sm:$0xff]  ;;  %v5294_v52 = vld [vmem:[#allocation22_spill] sm:$0xff]  ;;  %v5296_v2 = vld [vmem:[#allocation23_spill] sm:$0xff] }
 0x32c   :  { %944 = vadd.xlane.f32.xlu1 %v943_v55  ;;  %1170 = vmatprep.subr.bf16.mxu1 %v1127_v1  ;;  %v1076_v55 = vld [vmem:[#allocation5 + $0x1b0] sm:$0xff]  ;;  %v1132_v48 = vpack.c.bf16 %v1084_v36, %v1082_v29  ;;  %v1793_v1 = vpack.c.bf16 %v1715_v21, %v1713_v59  ;;  %v5298_v17 = vld [vmem:[#allocation26_spill] sm:$0xff] }
 0x32d   :  { %v1128_v54 = vpack.c.bf16 %v1076_v55, %v1074_v6  ;;  %v5293_v55 = vld [vmem:[#allocation27_spill] sm:$0xff] }
 0x32f   :  { %1171 = vmatpush1.bf16.msra.mxu1 %v1126_v15 }
 0x330   :  { %1172 = vmatprep.subr.bf16.mxu1 %v1129_v20  ;;  %v5292_v20 = vld [vmem:[#allocation24_spill] sm:$0xff] }
 0x333   :  { %1173 = vmatpush1.bf16.msra.mxu1 %v1128_v54 }
 0x334   :  { %1174 = vmatprep.subr.bf16.mxu1 %v1131_v34 }
 0x337   :  { %1175 = vmatpush1.bf16.msra.mxu1 %v1130_v39 }
 0x338   :  { %1176 = vmatprep.subr.bf16.mxu1 %v1133_v44 }
 0x33b   :  { %1177 = vmatpush1.bf16.msra.mxu1 %v1132_v48 }
 0x33c   :  { %1836 = vmatprep.subr.bf16.mxu1 %v1793_v1 }
 0x34b   :  { %v1522_v26 = vpop.xlane.xlu0 %1521 }
 0x34c   :  { %v1532_v15 = vmul.f32 0.0009765625, %v1522_v26  ;;  %v5303_v26 = vld [vmem:[#allocation29_spill] sm:$0xff] }
 0x34d   :  { %v1525_v53 = vpop.xlane.xlu1 %1524 }
 0x34e   :  { %v1533_v9 = vmul.f32 0.0009765625, %v1525_v53  ;;  %v4603_v6 = vsub.f32 %v5292_v20, %v1532_v15  ;;  %v4606_v54 = vsub.f32 %v5293_v55, %v1532_v15  ;;  %v4609_v62 = vsub.f32 %v5294_v52, %v1532_v15  ;;  %v5304_v52 = vld [vmem:[#allocation25_spill] sm:$0xff] }
 0x34f   :  { %v4612_v34 = vsub.f32 %v5296_v2, %v1532_v15  ;;  %v4615_v45 = vsub.f32 %v5298_v17, %v1532_v15  ;;  %v4618_v56 = vsub.f32 %v4196_v46, %v1532_v15  ;;  %v4621_v39 = vsub.f32 %v4218_v43, %v1532_v15  ;;  %v5306_v17 = vld [vmem:[#allocation28_spill] sm:$0xff] }
 0x350   :  { %5295 = vst [vmem:[#allocation18_spill] sm:$0xff] %v4609_v62  ;;  %v4624_v44 = vsub.f32 %v4227_v25, %v1532_v15  ;;  %v1568_v29 = vmul.f32 %v4603_v6, %v4603_v6  ;;  %v1569_v36 = vmul.f32 %v4606_v54, %v4606_v54  ;;  %v1576_v48 = vmul.f32 %v4609_v62, %v4609_v62  ;;  %v5316_v62 = vld [vmem:[#allocation32_spill] sm:$0xff] }
 0x351   :  { %5297 = vst [vmem:[#allocation19_spill] sm:$0xff] %v4612_v34  ;;  %5299 = vst [vmem:[#allocation20_spill] sm:$0xff] %v4615_v45  ;;  %v1577_v59 = vmul.f32 %v4612_v34, %v4612_v34  ;;  %v1584_v46 = vmul.f32 %v4615_v45, %v4615_v45  ;;  %v1585_v43 = vmul.f32 %v4618_v56, %v4618_v56  ;;  %v5317_v34 = vld [vmem:[#allocation35_spill] sm:$0xff] }
 0x352   :  { %5300 = vst [vmem:[#allocation21_spill] sm:$0xff] %v4618_v56  ;;  %5301 = vst [vmem:[#allocation24_spill] sm:$0xff] %v4621_v39  ;;  %v1592_v25 = vmul.f32 %v4621_v39, %v4621_v39  ;;  %v1593_v21 = vmul.f32 %v4624_v44, %v4624_v44  ;;  %v1600_v1 = vadd.f32 %v1576_v48, %v1568_v29  ;;  %v5313_v56 = vld [vmem:[#allocation33_spill] sm:$0xff] }
 0x353   :  { %5302 = vst [vmem:[#allocation27_spill] sm:$0xff] %v4624_v44  ;;  %v4643_v15 = vsub.f32 %v5303_v26, %v1533_v9  ;;  %v4646_v53 = vsub.f32 %v4207_v0, %v1533_v9  ;;  %v1528_v20 = vpop.xlane.xlu0 %1527  ;;  %v1603_v55 = vadd.f32 %v1577_v59, %v1569_v36  ;;  %v4649_v2 = vsub.f32 %v5304_v52, %v1533_v9 }
 0x354   :  { %v4652_v7 = vsub.f32 %v5306_v17, %v1533_v9  ;;  %v4655_v39 = vsub.f32 %v4204_v57, %v1533_v9  ;;  %v1534_v45 = vmul.f32 0.0009765625, %v1528_v20  ;;  %v1601_v44 = vadd.f32 %v1600_v1, %v1584_v46 }
 0x355   :  { %5305 = vst [vmem:[#allocation22_spill] sm:$0xff] %v4649_v2  ;;  %v4658_v29 = vsub.f32 %v4212_v24, %v1533_v9  ;;  %v4661_v48 = vsub.f32 %v4235_v50, %v1533_v9  ;;  %v1531_v0 = vpop.xlane.xlu1 %1530  ;;  %v1604_v26 = vadd.f32 %v1603_v55, %v1585_v43  ;;  %v4664_v36 = vsub.f32 %v4243_v58, %v1533_v9  ;;  %v5312_v55 = vld [vmem:[#allocation30_spill] sm:$0xff] }
 0x356   :  { %5307 = vst [vmem:[#allocation23_spill] sm:$0xff] %v4652_v7  ;;  %5308 = vst [vmem:[#allocation26_spill] sm:$0xff] %v4655_v39  ;;  %v1570_v59 = vmul.f32 %v4643_v15, %v4643_v15  ;;  %v1571_v57 = vmul.f32 %v4646_v53, %v4646_v53  ;;  %v1535_v52 = vmul.f32 0.0009765625, %v1531_v0  ;;  %v1602_v20 = vadd.f32 %v1601_v44, %v1592_v25 }
 0x357   :  { %5309 = vst [vmem:[#allocation29_spill] sm:$0xff] %v4658_v29  ;;  %5310 = vst [vmem:[#allocation25_spill] sm:$0xff] %v4661_v48  ;;  %v1578_v24 = vmul.f32 %v4649_v2, %v4649_v2  ;;  %v1579_v50 = vmul.f32 %v4652_v7, %v4652_v7  ;;  %v1605_v46 = vadd.f32 %v1604_v26, %v1593_v21  ;;  %v5314_v26 = vld [vmem:[#allocation31_spill] sm:$0xff] }
 0x358   :  { %5311 = vst [vmem:[#allocation28_spill] sm:$0xff] %v4664_v36  ;;  %v1586_v43 = vmul.f32 %v4655_v39, %v4655_v39  ;;  %v1587_v58 = vmul.f32 %v4658_v29, %v4658_v29  ;;  %v1594_v9 = vmul.f32 %v4661_v48, %v4661_v48  ;;  %v1595_v1 = vmul.f32 %v4664_v36, %v4664_v36  ;;  %v5329_v36 = vld [vmem:[#allocation36_spill] sm:$0xff] }
 0x359   :  { %v1606_v44 = vadd.f32 %v1578_v24, %v1570_v59  ;;  %v1609_v25 = vadd.f32 %v1579_v50, %v1571_v57  ;;  %v4683_v17 = vsub.f32 %v5312_v55, %v1534_v45  ;;  %v1624_v0 = vadd.f32 %v1605_v46, %v1602_v20  ;;  %v5319_v59 = vld [vmem:[#allocation37_spill] sm:$0xff]  ;;  %v5321_v24 = vld [vmem:[#allocation42_spill] sm:$0xff] }
 0x35a   :  { %v4686_v21 = vsub.f32 %v5313_v56, %v1534_v45  ;;  %v4689_v39 = vsub.f32 %v5314_v26, %v1534_v45  ;;  %v4692_v29 = vsub.f32 %v5316_v62, %v1534_v45  ;;  %v4695_v7 = vsub.f32 %v5317_v34, %v1534_v45  ;;  %v5323_v56 = vld [vmem:[#allocation43_spill] sm:$0xff] }
 0x35b   :  { %v1607_v2 = vadd.f32 %v1606_v44, %v1586_v43  ;;  %v1610_v48 = vadd.f32 %v1609_v25, %v1587_v58  ;;  %v4698_v57 = vsub.f32 %v5319_v59, %v1534_v45  ;;  %1625 = vadd.xlane.f32.xlu0 %v1624_v0  ;;  %v4701_v20 = vsub.f32 %v5321_v24, %v1534_v45  ;;  %v5327_v24 = vld [vmem:[#allocation34_spill] sm:$0xff] }
 0x35c   :  { %5315 = vst [vmem:[#allocation30_spill] sm:$0xff] %v4689_v39  ;;  %5318 = vst [vmem:[#allocation33_spill] sm:$0xff] %v4695_v7  ;;  %v4704_v50 = vsub.f32 %v5323_v56, %v1534_v45  ;;  %v1572_v46 = vmul.f32 %v4683_v17, %v4683_v17  ;;  %v1573_v62 = vmul.f32 %v4686_v21, %v4686_v21 }
 0x35d   :  { %5320 = vst [vmem:[#allocation31_spill] sm:$0xff] %v4698_v57  ;;  %5322 = vst [vmem:[#allocation32_spill] sm:$0xff] %v4701_v20  ;;  %v1608_v43 = vadd.f32 %v1607_v2, %v1594_v9  ;;  %v1611_v58 = vadd.f32 %v1610_v48, %v1595_v1  ;;  %v1580_v34 = vmul.f32 %v4689_v39, %v4689_v39  ;;  %v5325_v2 = vld [vmem:[#allocation38_spill] sm:$0xff]  ;;  %v5326_v9 = vld [vmem:[#allocation40_spill] sm:$0xff] }
 0x35e   :  { %5324 = vst [vmem:[#allocation35_spill] sm:$0xff] %v4704_v50  ;;  %v1581_v44 = vmul.f32 %v4692_v29, %v4692_v29  ;;  %v1588_v25 = vmul.f32 %v4695_v7, %v4695_v7  ;;  %v1589_v45 = vmul.f32 %v4698_v57, %v4698_v57  ;;  %v1596_v55 = vmul.f32 %v4701_v20, %v4701_v20  ;;  %v5330_v39 = vld [vmem:[#allocation39_spill] sm:$0xff]  ;;  %v5335_v20 = vld [vmem:[#allocation45_spill] sm:$0xff] }
 0x35f   :  { %v1627_v0 = vadd.f32 %v1611_v58, %v1608_v43  ;;  %v1612_v26 = vadd.f32 %v1580_v34, %v1572_v46  ;;  %v4721_v48 = vsub.f32 %v5325_v2, %v1535_v52  ;;  %v4724_v1 = vsub.f32 %v5326_v9, %v1535_v52  ;;  %v5332_v58 = vld [vmem:[#allocation41_spill] sm:$0xff] }
 0x360   :  { %v1615_v59 = vadd.f32 %v1581_v44, %v1573_v62  ;;  %v4727_v56 = vsub.f32 %v5327_v24, %v1535_v52  ;;  %v4730_v7 = vsub.f32 %v5329_v36, %v1535_v52  ;;  %v4733_v57 = vsub.f32 %v5330_v39, %v1535_v52  ;;  %v5333_v44 = vld [vmem:[#allocation44_spill] sm:$0xff] }
 0x361   :  { %1628 = vadd.xlane.f32.xlu1 %v1627_v0  ;;  %v1597_v46 = vmul.f32 %v4704_v50, %v4704_v50  ;;  %v1613_v62 = vadd.f32 %v1612_v26, %v1588_v25  ;;  %v4738_v34 = vsub.f32 %v5332_v58, %v1535_v52  ;;  %v4741_v2 = vsub.f32 %v5333_v44, %v1535_v52 }
 0x362   :  { %5328 = vst [vmem:[#allocation37_spill] sm:$0xff] %v4727_v56  ;;  %5331 = vst [vmem:[#allocation42_spill] sm:$0xff] %v4733_v57  ;;  %v1616_v43 = vadd.f32 %v1615_v59, %v1589_v45  ;;  %v1574_v9 = vmul.f32 %v4721_v48, %v4721_v48  ;;  %v1575_v36 = vmul.f32 %v4724_v1, %v4724_v1 }
 0x363   :  { %5334 = vst [vmem:[#allocation43_spill] sm:$0xff] %v4741_v2  ;;  %v1582_v39 = vmul.f32 %v4727_v56, %v4727_v56  ;;  %v1614_v0 = vadd.f32 %v1613_v62, %v1596_v55  ;;  %v4750_v25 = vsub.f32 %v5335_v20, %v1535_v52  ;;  %v1583_v45 = vmul.f32 %v4730_v7, %v4730_v7 }
 0x364   :  { %v1617_v24 = vadd.f32 %v1616_v43, %v1597_v46  ;;  %v1590_v26 = vmul.f32 %v4733_v57, %v4733_v57  ;;  %v1591_v44 = vmul.f32 %v4738_v34, %v4738_v34  ;;  %v1598_v56 = vmul.f32 %v4741_v2, %v4741_v2 }
 0x365   :  { %5336 = vst [vmem:[#allocation38_spill] sm:$0xff] %v4750_v25  ;;  %v1618_v59 = vadd.f32 %v1582_v39, %v1574_v9  ;;  %v1621_v50 = vadd.f32 %v1583_v45, %v1575_v36  ;;  %v1599_v52 = vmul.f32 %v4750_v25, %v4750_v25 }
 0x366   :  { %v1630_v58 = vadd.f32 %v1617_v24, %v1614_v0 }
 0x367   :  { %v1619_v55 = vadd.f32 %v1618_v59, %v1590_v26  ;;  %v1622_v20 = vadd.f32 %v1621_v50, %v1591_v44 }
 0x368   :  { %1631 = vadd.xlane.f32.xlu0 %v1630_v58 }
 0x369   :  { %v1620_v46 = vadd.f32 %v1619_v55, %v1598_v56  ;;  %v1623_v62 = vadd.f32 %v1622_v20, %v1599_v52  ;;  %v1712_v20 = vld [vmem:[#allocation8] sm:$0xff] }
 0x36b   :  { %v1633_v43 = vadd.f32 %v1623_v62, %v1620_v46  ;;  %v1714_v46 = vld [vmem:[#allocation8 + $0x10] sm:$0xff] }
 0x36d   :  { %1634 = vadd.xlane.f32.xlu1 %v1633_v43 }
 0x3a8   :  { %v936_v57 = vpop.xlane.xlu0 %935 }
 0x3a9   :  { %v946_v9 = vmul.f32 0.0009765625, %v936_v57 }
 0x3ab   :  { %v950_v39 = vadd.f32 1e-05, %v946_v9 }
 0x3ad   :  { %v939_v0 = vpop.xlane.xlu1 %938  ;;  %2977 = vrsqrt.f32 %v950_v39 }
 0x3ae   :  { %v947_v24 = vmul.f32 0.0009765625, %v939_v0  ;;  %v1719_v0 = vld [vmem:[#allocation8 + $0x38] sm:$0xff] }
 0x3b0   :  { %v951_v36 = vadd.f32 1e-05, %v947_v24 }
 0x3b2   :  { %2979 = vrsqrt.f32 %v951_v36  ;;  %v1792_v36 = vpack.c.bf16 %v1714_v46, %v1712_v20  ;;  %v1725_v46 = vld [vmem:[#allocation8 + $0x68] sm:$0xff] }
 0x3b3   :  { %v942_v45 = vpop.xlane.xlu0 %941 }
 0x3b4   :  { %v948_v2 = vmul.f32 0.0009765625, %v942_v45 }
 0x3b6   :  { %v952_v26 = vadd.f32 1e-05, %v948_v2 }
 0x3b7   :  { %v4762_v59 = vpop.eup %2977 }
 0x3b8   :  { %2981 = vrsqrt.f32 %v952_v26  ;;  %v959_v56 = vmul.f32 %v4762_v59, %v4446_v32  ;;  %v958_v57 = vmul.f32 %v4762_v59, %v4443_v41  ;;  %v1717_v32 = vld [vmem:[#allocation8 + $0x28] sm:$0xff]  ;;  %v1716_v26 = vld [vmem:[#allocation8 + $0x20] sm:$0xff] }
 0x3b9   :  { %v945_v58 = vpop.xlane.xlu1 %944  ;;  %v1795_v45 = vpack.c.bf16 %v1719_v0, %v1717_v32 }
 0x3ba   :  { %v949_v50 = vmul.f32 0.0009765625, %v945_v58  ;;  %v991_v62 = vmax.f32 %v959_v56, 0.0  ;;  %v990_v9 = vmax.f32 %v958_v57, 0.0  ;;  %v1718_v58 = vld [vmem:[#allocation8 + $0x30] sm:$0xff] }
 0x3bc   :  { %v4768_v44 = vpop.eup %2979  ;;  %v953_v55 = vadd.f32 1e-05, %v949_v50  ;;  %v1723_v50 = vld [vmem:[#allocation8 + $0x58] sm:$0xff] }
 0x3bd   :  { %v961_v52 = vmul.f32 %v4768_v44, %v4486_v51  ;;  %v960_v2 = vmul.f32 %v4768_v44, %v4483_v14  ;;  %v1721_v51 = vld [vmem:[#allocation8 + $0x48] sm:$0xff]  ;;  %v1794_v14 = vpack.c.bf16 %v1718_v58, %v1716_v26  ;;  %v969_v57 = vmul.f32 %v4768_v44, %v4492_v3 }
 0x3be   :  { %2983 = vrsqrt.f32 %v953_v55  ;;  %v1797_v56 = vpack.c.bf16 %v1723_v50, %v1721_v51  ;;  %v1720_v55 = vld [vmem:[#allocation8 + $0x40] sm:$0xff]  ;;  %v967_v3 = vmul.f32 %v4762_v59, %v4452_v5  ;;  %v1729_v58 = vld [vmem:[#allocation8 + $0x88] sm:$0xff]  ;;  %v1731_v51 = vld [vmem:[#allocation8 + $0x98] sm:$0xff]  ;;  %v968_v5 = vmul.f32 %v4768_v44, %v4489_v60 }
 0x3bf   :  { %v993_v43 = vmax.f32 %v961_v52, 0.0  ;;  %v992_v39 = vmax.f32 %v960_v2, 0.0  ;;  %v1722_v52 = vld [vmem:[#allocation8 + $0x50] sm:$0xff] }
 0x3c0   :  { %v1796_v32 = vpack.c.bf16 %v1722_v52, %v1720_v55  ;;  %v1730_v55 = vld [vmem:[#allocation8 + $0x90] sm:$0xff] }
 0x3c1   :  { %v1087_v24 = vpack.c.bf16 %v993_v43, %v991_v62  ;;  %v1086_v41 = vpack.c.bf16 %v992_v39, %v990_v9  ;;  %v1727_v62 = vld [vmem:[#allocation8 + $0x78] sm:$0xff] }
 0x3c2   :  { %v4774_v25 = vpop.eup %2981  ;;  %v1799_v0 = vpack.c.bf16 %v1727_v62, %v1725_v46  ;;  %v1735_v46 = vld [vmem:[#allocation8 + $0xb8] sm:$0xff]  ;;  %v966_v62 = vmul.f32 %v4762_v59, %v4449_v11 }
 0x3c3   :  { %1178 = vmatprep.mubr.bf16.mxu1 %v1087_v24  ;;  %v963_v2 = vmul.f32 %v4774_v25, %v4526_v22  ;;  %v962_v20 = vmul.f32 %v4774_v25, %v4523_v8  ;;  %v1001_v22 = vmax.f32 %v969_v57, 0.0  ;;  %v1724_v24 = vld [vmem:[#allocation8 + $0x60] sm:$0xff]  ;;  %v1726_v8 = vld [vmem:[#allocation8 + $0x70] sm:$0xff] }
 0x3c4   :  { %1179 = vmatmul.mubr.bf16.vlgmr.msra.gmra.mrb[32].mxu1 %v1086_v41  ;;  %v1728_v57 = vld [vmem:[#allocation8 + $0x80] sm:$0xff] }
 0x3c5   :  { %1837 = vmatpush1.bf16.msra.mxu1 %v1792_v36  ;;  %v995_v41 = vmax.f32 %v963_v2, 0.0  ;;  %v1800_v60 = vpack.c.bf16 %v1730_v55, %v1728_v57  ;;  %v1740_v55 = vld [vmem:[#allocation8 + $0xe0] sm:$0xff] }
 0x3c6   :  { %1838 = vmatprep.subr.bf16.mxu1 %v1795_v45  ;;  %v994_v45 = vmax.f32 %v962_v20, 0.0  ;;  %v1733_v20 = vld [vmem:[#allocation8 + $0xa8] sm:$0xff] }
 0x3c8   :  { %v4782_v43 = vpop.eup %2983 }
 0x3c9   :  { %1839 = vmatpush1.bf16.msra.mxu1 %v1794_v14  ;;  %v965_v9 = vmul.f32 %v4782_v43, %v4564_v27  ;;  %v964_v39 = vmul.f32 %v4782_v43, %v4561_v28  ;;  %v999_v14 = vmax.f32 %v967_v3, 0.0  ;;  %v1798_v28 = vpack.c.bf16 %v1726_v8, %v1724_v24  ;;  %v1737_v24 = vld [vmem:[#allocation8 + $0xc8] sm:$0xff] }
 0x3ca   :  { %1840 = vmatprep.subr.bf16.mxu1 %v1797_v56  ;;  %v1801_v56 = vpack.c.bf16 %v1731_v51, %v1729_v58  ;;  %v973_v2 = vmul.f32 %v4782_v43, %v4570_v49  ;;  %v1803_v3 = vpack.c.bf16 %v1735_v46, %v1733_v20  ;;  %v1739_v49 = vld [vmem:[#allocation8 + $0xd8] sm:$0xff]  ;;  %v998_v8 = vmax.f32 %v966_v62, 0.0  ;;  %v1738_v58 = vld [vmem:[#allocation8 + $0xd0] sm:$0xff]  ;;  %v1745_v20 = vld [vmem:[#allocation8 + $0x108] sm:$0xff] }
 0x3cb   :  { %v997_v36 = vmax.f32 %v965_v9, 0.0  ;;  %v996_v26 = vmax.f32 %v964_v39, 0.0  ;;  %v1091_v52 = vpack.c.bf16 %v1001_v22, %v999_v14  ;;  %v971_v9 = vmul.f32 %v4774_v25, %v4532_v42  ;;  %v1734_v22 = vld [vmem:[#allocation8 + $0xb0] sm:$0xff]  ;;  %v1736_v42 = vld [vmem:[#allocation8 + $0xc0] sm:$0xff]  ;;  %v1743_v14 = vld [vmem:[#allocation8 + $0xf8] sm:$0xff] }
 0x3cc   :  { %v1000_v39 = vmax.f32 %v968_v5, 0.0  ;;  %v972_v11 = vmul.f32 %v4782_v43, %v4567_v30  ;;  %v975_v5 = vmul.f32 %v4762_v59, %v4458_v40  ;;  %v1744_v40 = vld [vmem:[#allocation8 + $0x100] sm:$0xff] }
 0x3cd   :  { %v1089_v50 = vpack.c.bf16 %v997_v36, %v995_v41  ;;  %v1088_v27 = vpack.c.bf16 %v996_v26, %v994_v45  ;;  %1841 = vmatpush1.bf16.msra.mxu1 %v1796_v32  ;;  %v1732_v32 = vld [vmem:[#allocation8 + $0xa0] sm:$0xff]  ;;  %v1003_v41 = vmax.f32 %v971_v9, 0.0  ;;  %v1805_v26 = vpack.c.bf16 %v1739_v49, %v1737_v24  ;;  %v1751_v24 = vld [vmem:[#allocation8 + $0x138] sm:$0xff] }
 0x3ce   :  { %1842 = vmatprep.subr.bf16.mxu1 %v1799_v0  ;;  %v1005_v0 = vmax.f32 %v973_v2, 0.0  ;;  %v1802_v36 = vpack.c.bf16 %v1734_v22, %v1732_v32  ;;  %v1090_v45 = vpack.c.bf16 %v1000_v39, %v998_v8  ;;  %v1004_v30 = vmax.f32 %v972_v11, 0.0  ;;  %v1750_v11 = vld [vmem:[#allocation8 + $0x130] sm:$0xff] }
 0x3cf   :  { %1188 = vmatprep.mubr.bf16.mxu1 %v1089_v50  ;;  %v977_v50 = vmul.f32 %v4768_v44, %v4498_v10  ;;  %v1747_v10 = vld [vmem:[#allocation8 + $0x118] sm:$0xff]  ;;  %v1007_v62 = vmax.f32 %v975_v5, 0.0  ;;  %v981_v22 = vmul.f32 %v4782_v43, %v4578_v19  ;;  %v974_v49 = vmul.f32 %v4762_v59, %v4455_v12 }
 0x3d0   :  { %1189 = vmatmul.mubr.bf16.gmra.mrb[36].mxu1 %v1088_v27  ;;  %v1093_v51 = vpack.c.bf16 %v1005_v0, %v1003_v41  ;;  %v1741_v27 = vld [vmem:[#allocation8 + $0xe8] sm:$0xff]  ;;  %v1809_v39 = vpack.c.bf16 %v1747_v10, %v1745_v20  ;;  %v979_v8 = vmul.f32 %v4774_v25, %v4538_v4  ;;  %v1755_v19 = vld [vmem:[#allocation8 + $0x158] sm:$0xff]  ;;  %v980_v12 = vmul.f32 %v4782_v43, %v4573_v18  ;;  %v1752_v4 = vld [vmem:[#allocation8 + $0x140] sm:$0xff] }
 0x3d1   :  { %1198 = vmatprep.mubr.bf16.mxu1 %v1091_v52  ;;  %1843 = vmatpush1.bf16.msra.mxu1 %v1798_v28  ;;  %v970_v28 = vmul.f32 %v4774_v25, %v4529_v37  ;;  %v1807_v57 = vpack.c.bf16 %v1743_v14, %v1741_v27  ;;  %v1742_v52 = vld [vmem:[#allocation8 + $0xf0] sm:$0xff]  ;;  %v1009_v2 = vmax.f32 %v977_v50, 0.0  ;;  %v976_v37 = vmul.f32 %v4768_v44, %v4495_v38  ;;  %v1749_v0 = vld [vmem:[#allocation8 + $0x128] sm:$0xff]  ;;  %v1756_v10 = vld [vmem:[#allocation8 + $0x160] sm:$0xff] }
 0x3d2   :  { %1844 = vmatprep.subr.bf16.mxu1 %v1801_v56  ;;  %v1804_v56 = vpack.c.bf16 %v1738_v58, %v1736_v42  ;;  %v1806_v9 = vpack.c.bf16 %v1742_v52, %v1740_v55  ;;  %v1753_v42 = vld [vmem:[#allocation8 + $0x148] sm:$0xff]  ;;  %v1006_v58 = vmax.f32 %v974_v49, 0.0  ;;  %v978_v52 = vmul.f32 %v4774_v25, %v4535_v33  ;;  %v1760_v49 = vld [vmem:[#allocation8 + $0x180] sm:$0xff] }
 0x3d3   :  { %v1002_v46 = vmax.f32 %v970_v28, 0.0  ;;  %v1095_v32 = vpack.c.bf16 %v1009_v2, %v1007_v62  ;;  %v1008_v38 = vmax.f32 %v976_v37, 0.0  ;;  %v1813_v14 = vpack.c.bf16 %v1755_v19, %v1753_v42  ;;  %v1754_v28 = vld [vmem:[#allocation8 + $0x150] sm:$0xff] }
 0x3d4   :  { %v983_v18 = vmul.f32 %v4762_v59, %v4464_v16  ;;  %v1812_v20 = vpack.c.bf16 %v1754_v28, %v1752_v4  ;;  %v984_v16 = vmul.f32 %v4768_v44, %v4501_v23  ;;  %v987_v42 = vmul.f32 %v4774_v25, %v4544_v31 }
 0x3d5   :  { %1845 = vmatpush1.bf16.msra.mxu1 %v1800_v60  ;;  %v1092_v60 = vpack.c.bf16 %v1004_v30, %v1002_v46  ;;  %v1094_v27 = vpack.c.bf16 %v1008_v38, %v1006_v58  ;;  %v1757_v30 = vld [vmem:[#allocation8 + $0x168] sm:$0xff]  ;;  %v1012_v46 = vmax.f32 %v980_v12, 0.0  ;;  %v989_v38 = vmul.f32 %v4782_v43, %v4590_v47  ;;  %v1764_v58 = vld [vmem:[#allocation8 + $0x1a0] sm:$0xff]  ;;  %v1771_v12 = vld [vmem:[#allocation8 + $0x1d8] sm:$0xff] }
 0x3d6   :  { %1846 = vmatprep.subr.bf16.mxu1 %v1803_v3  ;;  %v1746_v3 = vld [vmem:[#allocation8 + $0x110] sm:$0xff]  ;;  %v1016_v23 = vmax.f32 %v984_v16, 0.0  ;;  %v1019_v28 = vmax.f32 %v987_v42, 0.0  ;;  %v988_v31 = vmul.f32 %v4782_v43, %v4581_v13  ;;  %v1772_v43 = vld [vmem:[#allocation8 + $0x1e0] sm:$0xff] }
 0x3d7   :  { %v1808_v41 = vpack.c.bf16 %v1746_v3, %v1744_v40  ;;  %v1010_v40 = vmax.f32 %v978_v52, 0.0  ;;  %v1773_v52 = vld [vmem:[#allocation8 + $0x1e8] sm:$0xff] }
 0x3d8   :  { %1199 = vmatmul.mubr.bf16.gmra.mrb[40].mxu1 %v1090_v45  ;;  %v1748_v45 = vld [vmem:[#allocation8 + $0x120] sm:$0xff] }
 0x3d9   :  { %1208 = vmatprep.mubr.bf16.mxu1 %v1093_v51  ;;  %1847 = vmatpush1.bf16.msra.mxu1 %v1802_v36  ;;  %v1811_v36 = vpack.c.bf16 %v1751_v24, %v1749_v0  ;;  %v1011_v51 = vmax.f32 %v979_v8, 0.0  ;;  %v1810_v50 = vpack.c.bf16 %v1750_v11, %v1748_v45  ;;  %v1096_v24 = vpack.c.bf16 %v1012_v46, %v1010_v40  ;;  %v1762_v8 = vld [vmem:[#allocation8 + $0x190] sm:$0xff]  ;;  %v1767_v45 = vld [vmem:[#allocation8 + $0x1b8] sm:$0xff] }
 0x3da   :  { %1848 = vmatprep.subr.bf16.mxu1 %v1805_v26  ;;  %v1013_v26 = vmax.f32 %v981_v22, 0.0  ;;  %v1816_v19 = vpack.c.bf16 %v1762_v8, %v1760_v49 }
 0x3dc   :  { %v1097_v5 = vpack.c.bf16 %v1013_v26, %v1011_v51  ;;  %v982_v26 = vmul.f32 %v4762_v59, %v4461_v61  ;;  %v1766_v51 = vld [vmem:[#allocation8 + $0x1b0] sm:$0xff] }
 0x3dd   :  { %1849 = vmatpush1.bf16.msra.mxu1 %v1804_v56  ;;  %v985_v56 = vmul.f32 %v4768_v44, %v4504_v63  ;;  %v1761_v63 = vld [vmem:[#allocation8 + $0x188] sm:$0xff]  ;;  %v1818_v61 = vpack.c.bf16 %v1766_v51, %v1764_v58 }
 0x3de   :  { %1850 = vmatprep.subr.bf16.mxu1 %v1807_v57  ;;  %v1759_v57 = vld [vmem:[#allocation8 + $0x178] sm:$0xff]  ;;  %v1014_v4 = vmax.f32 %v982_v26, 0.0 }
 0x3df   :  { %v1815_v62 = vpack.c.bf16 %v1759_v57, %v1757_v30  ;;  %v1768_v30 = vld [vmem:[#allocation8 + $0x1c0] sm:$0xff]  ;;  %v1770_v57 = vld [vmem:[#allocation8 + $0x1d0] sm:$0xff] }
 0x3e0   :  { %1209 = vmatmul.mubr.bf16.gmra.mrb[44].mxu1 %v1092_v60  ;;  %v1763_v60 = vld [vmem:[#allocation8 + $0x198] sm:$0xff]  ;;  %v1820_v46 = vpack.c.bf16 %v1770_v57, %v1768_v30  ;;  %v5342_v57 = vld [vmem:[#allocation29_spill] sm:$0xff] }
 0x3e1   :  { %1218 = vmatprep.mubr.bf16.mxu1 %v1095_v32  ;;  %1851 = vmatpush1.bf16.msra.mxu1 %v1806_v9  ;;  %v1758_v9 = vld [vmem:[#allocation8 + $0x170] sm:$0xff]  ;;  %v1015_v32 = vmax.f32 %v983_v18, 0.0  ;;  %v1817_v22 = vpack.c.bf16 %v1763_v60, %v1761_v63 }
 0x3e2   :  { %1852 = vmatprep.subr.bf16.mxu1 %v1809_v39  ;;  %v1017_v39 = vmax.f32 %v985_v56, 0.0  ;;  %v1814_v33 = vpack.c.bf16 %v1758_v9, %v1756_v10  ;;  %v1020_v9 = vmax.f32 %v988_v31, 0.0  ;;  %v1774_v63 = vld [vmem:[#allocation8 + $0x1f0] sm:$0xff] }
 0x3e3   :  { %v5341_v31 = vld [vmem:[#allocation37_spill] sm:$0xff] }
 0x3e5   :  { %1853 = vmatpush1.bf16.msra.mxu1 %v1808_v41  ;;  %v1099_v41 = vpack.c.bf16 %v1017_v39, %v1015_v32 }
 0x3e6   :  { %1854 = vmatprep.subr.bf16.mxu1 %v1811_v36  ;;  %v1765_v36 = vld [vmem:[#allocation8 + $0x1a8] sm:$0xff] }
 0x3e7   :  { %v1819_v44 = vpack.c.bf16 %v1767_v45, %v1765_v36 }
 0x3e8   :  { %1219 = vmatmul.mubr.bf16.gmra.mrb[48].mxu1 %v1094_v27  ;;  %v1626_v55 = vpop.xlane.xlu0 %1625  ;;  %v1769_v27 = vld [vmem:[#allocation8 + $0x1c8] sm:$0xff] }
 0x3e9   :  { %1228 = vmatprep.mubr.bf16.mxu1 %v1097_v5  ;;  %1855 = vmatpush1.bf16.msra.mxu1 %v1810_v50  ;;  %v1636_v2 = vmul.f32 0.0009765625, %v1626_v55  ;;  %v1021_v50 = vmax.f32 %v989_v38, 0.0  ;;  %v1098_v5 = vpack.c.bf16 %v1016_v23, %v1014_v4  ;;  %v1821_v56 = vpack.c.bf16 %v1771_v12, %v1769_v27 }
 0x3ea   :  { %1856 = vmatprep.subr.bf16.mxu1 %v1813_v14 }
 0x3eb   :  { %v1640_v37 = vadd.f32 1e-05, %v1636_v2  ;;  %v1101_v55 = vpack.c.bf16 %v1021_v50, %v1019_v28  ;;  %v1775_v2 = vld [vmem:[#allocation8 + $0x1f8] sm:$0xff] }
 0x3ec   :  { %v1823_v13 = vpack.c.bf16 %v1775_v2, %v1773_v52  ;;  %v5339_v50 = vld [vmem:[#allocation22_spill] sm:$0xff]  ;;  %v5344_v2 = vld [vmem:[#allocation21_spill] sm:$0xff] }
 0x3ed   :  { %1857 = vmatpush1.bf16.msra.mxu1 %v1812_v20  ;;  %2985 = vrsqrt.f32 %v1640_v37  ;;  %v986_v20 = vmul.f32 %v4774_v25, %v4541_v35  ;;  %v1822_v35 = vpack.c.bf16 %v1774_v63, %v1772_v43 }
 0x3ee   :  { %v1629_v3 = vpop.xlane.xlu1 %1628  ;;  %1858 = vmatprep.subr.bf16.mxu1 %v1815_v62 }
 0x3ef   :  { %v1637_v0 = vmul.f32 0.0009765625, %v1629_v3  ;;  %v1018_v40 = vmax.f32 %v986_v20, 0.0 }
 0x3f0   :  { %1229 = vmatmul.mubr.bf16.gmra.mrb[52].mxu1 %v1096_v24 }
 0x3f1   :  { %v1641_v11 = vadd.f32 1e-05, %v1637_v0  ;;  %1238 = vmatprep.mubr.bf16.mxu1 %v1099_v41  ;;  %1859 = vmatpush1.bf16.msra.mxu1 %v1814_v33  ;;  %v1100_v3 = vpack.c.bf16 %v1020_v9, %v1018_v40  ;;  %v5337_v41 = vld [vmem:[#allocation23_spill] sm:$0xff] }
 0x3f2   :  { %1860 = vmatprep.subr.bf16.mxu1 %v1817_v22 }
 0x3f3   :  { %2987 = vrsqrt.f32 %v1641_v11  ;;  %v5338_v11 = vld [vmem:[#allocation19_spill] sm:$0xff] }
 0x3f5   :  { %v1632_v47 = vpop.xlane.xlu0 %1631  ;;  %1861 = vmatpush1.bf16.msra.mxu1 %v1816_v19 }
 0x3f6   :  { %v1638_v14 = vmul.f32 0.0009765625, %v1632_v47  ;;  %1862 = vmatprep.subr.bf16.mxu1 %v1819_v44 }
 0x3f7   :  { %v4832_v18 = vpop.eup %2985 }
 0x3f8   :  { %v1642_v59 = vadd.f32 1e-05, %v1638_v14  ;;  %1239 = vmatmul.mubr.bf16.gmra.mrb[56].mxu1 %v1098_v5  ;;  %v1649_v60 = vmul.f32 %v4832_v18, %v4606_v54  ;;  %v1648_v54 = vmul.f32 %v4832_v18, %v4603_v6  ;;  %v1657_v26 = vmul.f32 %v4832_v18, %v5338_v11 }
 0x3f9   :  { %1248 = vmatprep.mubr.bf16.mxu1 %v1101_v55  ;;  %1863 = vmatpush1.bf16.msra.mxu1 %v1818_v61  ;;  %v5343_v55 = vld [vmem:[#allocation30_spill] sm:$0xff] }
 0x3fa   :  { %v1635_v10 = vpop.xlane.xlu1 %1634  ;;  %2989 = vrsqrt.f32 %v1642_v59  ;;  %1864 = vmatprep.subr.bf16.mxu1 %v1821_v56  ;;  %v1681_v33 = vmax.f32 %v1649_v60, 0.0  ;;  %v1680_v49 = vmax.f32 %v1648_v54, 0.0  ;;  %v1689_v51 = vmax.f32 %v1657_v26, 0.0 }
 0x3fb   :  { %v1639_v62 = vmul.f32 0.0009765625, %v1635_v10 }
 0x3fd   :  { %v4838_v37 = vpop.eup %2987  ;;  %v1643_v39 = vadd.f32 1e-05, %v1639_v62  ;;  %1865 = vmatpush1.bf16.msra.mxu1 %v1820_v46 }
 0x3fe   :  { %v1651_v25 = vmul.f32 %v4838_v37, %v4646_v53  ;;  %1866 = vmatprep.subr.bf16.mxu1 %v1823_v13  ;;  %v1650_v32 = vmul.f32 %v4838_v37, %v4643_v15  ;;  %v1659_v15 = vmul.f32 %v4838_v37, %v5337_v41  ;;  %v5345_v13 = vld [vmem:[#allocation26_spill] sm:$0xff] }
 0x3ff   :  { %2991 = vrsqrt.f32 %v1643_v39  ;;  %v1666_v43 = vmul.f32 %v4838_v37, %v5345_v13  ;;  %v5346_v39 = vld [vmem:[#allocation20_spill] sm:$0xff] }
 0x400   :  { %v1683_v22 = vmax.f32 %v1651_v25, 0.0  ;;  %1249 = vmatmul.mubr.bf16.gmra.mrb[60].mxu1 %v1100_v3  ;;  %v1682_v24 = vmax.f32 %v1650_v32, 0.0  ;;  %v1691_v23 = vmax.f32 %v1659_v15, 0.0  ;;  %v1664_v40 = vmul.f32 %v4832_v18, %v5346_v39  ;;  %v5351_v15 = vld [vmem:[#allocation27_spill] sm:$0xff] }
 0x401   :  { %1867 = vmatpush1.bf16.msra.mxu1 %v1822_v35  ;;  %v5347_v35 = vld [vmem:[#allocation31_spill] sm:$0xff]  ;;  %v1698_v3 = vmax.f32 %v1666_v43, 0.0 }
 0x402   :  { %v1777_v0 = vpack.c.bf16 %v1683_v22, %v1681_v33  ;;  %v1776_v53 = vpack.c.bf16 %v1682_v24, %v1680_v49  ;;  %v1781_v27 = vpack.c.bf16 %v1691_v23, %v1689_v51  ;;  %v1696_v33 = vmax.f32 %v1664_v40, 0.0  ;;  %v5354_v51 = vld [vmem:[#allocation24_spill] sm:$0xff] }
 0x404   :  { %1868 = vmatprep.mubr.bf16.mxu1 %v1777_v0  ;;  %v4846_v16 = vpop.eup %2989  ;;  %v1784_v54 = vpack.c.bf16 %v1698_v3, %v1696_v33  ;;  %v5348_v0 = vld [vmem:[#allocation42_spill] sm:$0xff] }
 0x405   :  { %v1653_v8 = vmul.f32 %v4846_v16, %v4686_v21  ;;  %v1652_v6 = vmul.f32 %v4846_v16, %v4683_v17  ;;  %v1658_v17 = vmul.f32 %v4838_v37, %v5339_v50  ;;  %v1661_v14 = vmul.f32 %v4846_v16, %v4692_v29  ;;  %v5355_v50 = vld [vmem:[#allocation35_spill] sm:$0xff] }
 0x406   :  { %v1660_v52 = vmul.f32 %v4846_v16, %v5343_v55  ;;  %v1665_v29 = vmul.f32 %v4832_v18, %v5344_v2  ;;  %v1669_v25 = vmul.f32 %v4846_v16, %v5347_v35  ;;  %v5359_v55 = vld [vmem:[#allocation17_spill] sm:$0xff] }
 0x407   :  { %v1685_v42 = vmax.f32 %v1653_v8, 0.0  ;;  %v1684_v44 = vmax.f32 %v1652_v6, 0.0  ;;  %v1690_v4 = vmax.f32 %v1658_v17, 0.0  ;;  %v1693_v59 = vmax.f32 %v1661_v14, 0.0  ;;  %v5350_v8 = vld [vmem:[#allocation33_spill] sm:$0xff] }
 0x408   :  { %1869 = vmatmul.mubr.bf16.vlgmr.msra.gmra.mrb[64].mxu1 %v1776_v53  ;;  %v1692_v46 = vmax.f32 %v1660_v52, 0.0  ;;  %v1697_v62 = vmax.f32 %v1665_v29, 0.0  ;;  %v1701_v22 = vmax.f32 %v1669_v25, 0.0  ;;  %v5349_v53 = vld [vmem:[#allocation28_spill] sm:$0xff]  ;;  %v1668_v41 = vmul.f32 %v4846_v16, %v5350_v8 }
 0x409   :  { %v4852_v38 = vpop.eup %2991  ;;  %v1673_v6 = vmul.f32 %v4832_v18, %v5351_v15  ;;  %v1677_v17 = vmul.f32 %v4846_v16, %v5355_v50 }
 0x40a   :  { %v1655_v36 = vmul.f32 %v4852_v38, %v4724_v1  ;;  %v1654_v45 = vmul.f32 %v4852_v38, %v4721_v48  ;;  %v1663_v1 = vmul.f32 %v4852_v38, %v4730_v7  ;;  %v5340_v48 = vld [vmem:[#allocation18_spill] sm:$0xff]  ;;  %v1662_v56 = vmul.f32 %v4852_v38, %v5341_v31 }
 0x40b   :  { %v1656_v12 = vmul.f32 %v4832_v18, %v5340_v48  ;;  %v1667_v7 = vmul.f32 %v4838_v37, %v5342_v57  ;;  %v1671_v60 = vmul.f32 %v4852_v38, %v4738_v34  ;;  %v1670_v24 = vmul.f32 %v4852_v38, %v5348_v0 }
 0x40c   :  { %v1687_v21 = vmax.f32 %v1655_v36, 0.0  ;;  %v1686_v19 = vmax.f32 %v1654_v45, 0.0  ;;  %v1695_v28 = vmax.f32 %v1663_v1, 0.0  ;;  %v1694_v20 = vmax.f32 %v1662_v56, 0.0  ;;  %v1134_v56 = vld [vmem:[%s5193_s8] sm:$0x3] }
 0x40d   :  { %v1688_v61 = vmax.f32 %v1656_v12, 0.0  ;;  %v1699_v10 = vmax.f32 %v1667_v7, 0.0  ;;  %v1703_v32 = vmax.f32 %v1671_v60, 0.0  ;;  %v1675_v34 = vmul.f32 %v4838_v37, %v5349_v53 }
 0x40e   :  { %v1779_v58 = vpack.c.bf16 %v1687_v21, %v1685_v42  ;;  %v1778_v47 = vpack.c.bf16 %v1686_v19, %v1684_v44  ;;  %v1783_v30 = vpack.c.bf16 %v1695_v28, %v1693_v59  ;;  %v1782_v9 = vpack.c.bf16 %v1694_v20, %v1692_v46  ;;  %v5352_v21 = vld [vmem:[#allocation25_spill] sm:$0xff]  ;;  %v5353_v44 = vld [vmem:[#allocation38_spill] sm:$0xff] }
 0x40f   :  { %v1780_v5 = vpack.c.bf16 %v1690_v4, %v1688_v61  ;;  %v1785_v63 = vpack.c.bf16 %v1699_v10, %v1697_v62  ;;  %v1787_v49 = vpack.c.bf16 %v1703_v32, %v1701_v22  ;;  %v1702_v36 = vmax.f32 %v1670_v24, 0.0  ;;  %v5356_v4 = vld [vmem:[#allocation43_spill] sm:$0xff]  ;;  %v5357_v61 = vld [vmem:[#allocation32_spill] sm:$0xff] }
 0x410   :  { %1878 = vmatprep.mubr.bf16.mxu1 %v1779_v58  ;;  %v1707_v45 = vmax.f32 %v1675_v34, 0.0  ;;  %v1700_v11 = vmax.f32 %v1668_v41, 0.0  ;;  %v1705_v26 = vmax.f32 %v1673_v6, 0.0  ;;  %v1674_v19 = vmul.f32 %v4838_v37, %v5352_v21 }
 0x411   :  { %1879 = vmatmul.mubr.bf16.gmra.mrb[68].mxu1 %v1778_v47  ;;  %v1679_v58 = vmul.f32 %v4852_v38, %v5353_v44  ;;  %v1672_v47 = vmul.f32 %v4832_v18, %v5354_v51  ;;  %v1709_v12 = vmax.f32 %v1677_v17, 0.0  ;;  %v1678_v37 = vmul.f32 %v4852_v38, %v5356_v4 }
 0x412   :  { %1888 = vmatprep.mubr.bf16.mxu1 %v1781_v27  ;;  %v1786_v42 = vpack.c.bf16 %v1702_v36, %v1700_v11  ;;  %v1789_v23 = vpack.c.bf16 %v1707_v45, %v1705_v26  ;;  %v1706_v27 = vmax.f32 %v1674_v19, 0.0  ;;  %v1676_v59 = vmul.f32 %v4846_v16, %v5357_v61 }
 0x413   :  { %v1711_v1 = vmax.f32 %v1679_v58, 0.0  ;;  %v1704_v48 = vmax.f32 %v1672_v47, 0.0  ;;  %v4913_v38 = vrot.slane %v1134_v56, %v5359_v55 }
 0x414   :  { %v1708_v18 = vmax.f32 %v1676_v59, 0.0 }
 0x415   :  { %v1788_v14 = vpack.c.bf16 %v1706_v27, %v1704_v48  ;;  %v1791_v28 = vpack.c.bf16 %v1711_v1, %v1709_v12 }
 0x419   :  { %1889 = vmatmul.mubr.bf16.gmra.mrb[72].mxu1 %v1780_v5  ;;  %v1710_v5 = vmax.f32 %v1678_v37, 0.0 }
 0x41a   :  { %1898 = vmatprep.mubr.bf16.mxu1 %v1783_v30  ;;  %v5358_v30 = vld [vmem:[#allocation16_spill] sm:$0xff] }
 0x41b   :  { %v1790_v31 = vpack.c.bf16 %v1710_v5, %v1708_v18  ;;  %v4910_v57 = vrot.slane %v1134_v56, %v5358_v30 }
 0x421   :  { %1899 = vmatmul.mubr.bf16.gmra.mrb[76].mxu1 %v1782_v9 }
 0x422   :  { %1908 = vmatprep.mubr.bf16.mxu1 %v1785_v63 }
 0x429   :  { %1909 = vmatmul.mubr.bf16.gmra.mrb[80].mxu1 %v1784_v54 }
 0x42a   :  { %1918 = vmatprep.mubr.bf16.mxu1 %v1787_v49 }
 0x431   :  { %1919 = vmatmul.mubr.bf16.gmra.mrb[84].mxu1 %v1786_v42 }
 0x432   :  { %1928 = vmatprep.mubr.bf16.mxu1 %v1789_v23 }
 0x439   :  { %1929 = vmatmul.mubr.bf16.gmra.mrb[88].mxu1 %v1788_v14 }
 0x43a   :  { %1938 = vmatprep.mubr.bf16.mxu1 %v1791_v28 }
 0x441   :  { %1939 = vmatmul.mubr.bf16.gmra.mrb[92].mxu1 %v1790_v31 }
 0x497   :  { %v1180_v7 = vpop.f32.mrb[32].mxu1 }
 0x498   :  { %v1182_v52 = vpop.f32.mrb[33].mxu1  ;;  %v4916_v16 = vadd.f32 %v1180_v7, %v4910_v57 }
 0x499   :  { %v1184_v2 = vpop.f32.mrb[34].mxu1  ;;  %v1183_v10 = vadd.f32 %v1182_v52, %v4913_v38 }
 0x49a   :  { %v4919_v29 = vadd.f32 %v1184_v2, %v4910_v57  ;;  %v1186_v20 = vpop.f32.mrb[35].mxu1 }
 0x49b   :  { %v1187_v46 = vadd.f32 %v1186_v20, %v4913_v38 }
 0x49c   :  { %v2277_v62 = vpack.c.bf16 %v4919_v29, %v4916_v16 }
 0x49d   :  { %v2278_v9 = vpack.c.bf16 %v1187_v46, %v1183_v10 }
 0x49f   :  { %2341 = vmatprep.mubr.bf16.mxu1 %v2278_v9 }
 0x4a3   :  { %v1190_v13 = vpop.f32.mrb[36].mxu1 }
 0x4a4   :  { %v1192_v43 = vpop.f32.mrb[37].mxu1  ;;  %v4929_v39 = vadd.f32 %v1190_v13, %v4910_v57 }
 0x4a5   :  { %v4926_v63 = vadd.f32 %v1192_v43, %v4913_v38  ;;  %v1194_v60 = vpop.f32.mrb[38].mxu1 }
 0x4a6   :  { %v4932_v40 = vadd.f32 %v1194_v60, %v4910_v57  ;;  %v1196_v35 = vpop.f32.mrb[39].mxu1 }
 0x4a7   :  { %v4935_v25 = vadd.f32 %v1196_v35, %v4913_v38 }
 0x4a8   :  { %v2279_v3 = vpack.c.bf16 %v4932_v40, %v4929_v39  ;;  %v2407_v39 = vld [vmem:[%s5198_s13 + $0x8] sm:$0xff] }
 0x4a9   :  { %v2280_v32 = vpack.c.bf16 %v4935_v25, %v4926_v63 }
 0x4ab   :  { %v1200_v33 = vpop.f32.mrb[40].mxu1 }
 0x4ac   :  { %v1202_v22 = vpop.f32.mrb[41].mxu1  ;;  %v4945_v24 = vadd.f32 %v1200_v33, %v4910_v57 }
 0x4ad   :  { %v4942_v54 = vadd.f32 %v1202_v22, %v4913_v38  ;;  %v1204_v0 = vpop.f32.mrb[42].mxu1 }
 0x4ae   :  { %v4948_v49 = vadd.f32 %v1204_v0, %v4910_v57  ;;  %v1206_v53 = vpop.f32.mrb[43].mxu1 }
 0x4af   :  { %v4951_v34 = vadd.f32 %v1206_v53, %v4913_v38 }
 0x4b0   :  { %v2281_v8 = vpack.c.bf16 %v4948_v49, %v4945_v24  ;;  %v2408_v24 = vld [vmem:[%s5198_s13 + $0x10] sm:$0xff] }
 0x4b1   :  { %v2282_v41 = vpack.c.bf16 %v4951_v34, %v4942_v54  ;;  %v2409_v34 = vld [vmem:[%s5198_s13 + $0x18] sm:$0xff] }
 0x4b3   :  { %v1210_v15 = vpop.f32.mrb[44].mxu1 }
 0x4b4   :  { %v1212_v6 = vpop.f32.mrb[45].mxu1  ;;  %v4961_v11 = vadd.f32 %v1210_v15, %v4910_v57 }
 0x4b5   :  { %v4958_v36 = vadd.f32 %v1212_v6, %v4913_v38  ;;  %v1214_v45 = vpop.f32.mrb[46].mxu1 }
 0x4b6   :  { %v4964_v26 = vadd.f32 %v1214_v45, %v4910_v57  ;;  %v1216_v42 = vpop.f32.mrb[47].mxu1 }
 0x4b7   :  { %v4967_v21 = vadd.f32 %v1216_v42, %v4913_v38  ;;  %v1824_v42 = vld [vmem:[%s5197_s12] sm:$0x3] }
 0x4b8   :  { %v2283_v19 = vpack.c.bf16 %v4964_v26, %v4961_v11 }
 0x4b9   :  { %v2284_v23 = vpack.c.bf16 %v4967_v21, %v4958_v36  ;;  %v2410_v21 = vld [vmem:[%s5198_s13 + $0x20] sm:$0xff] }
 0x4bb   :  { %v1220_v44 = vpop.f32.mrb[48].mxu1 }
 0x4bc   :  { %v1222_v58 = vpop.f32.mrb[49].mxu1  ;;  %v4977_v50 = vadd.f32 %v1220_v44, %v4910_v57 }
 0x4bd   :  { %v4974_v51 = vadd.f32 %v1222_v58, %v4913_v38  ;;  %v1224_v47 = vpop.f32.mrb[50].mxu1 }
 0x4be   :  { %v4980_v17 = vadd.f32 %v1224_v47, %v4910_v57  ;;  %v1226_v27 = vpop.f32.mrb[51].mxu1  ;;  %v5041_v47 = vrot.slane %v1824_v42, %v5358_v30 }
 0x4bf   :  { %v4983_v1 = vadd.f32 %v1226_v27, %v4913_v38 }
 0x4c0   :  { %v2285_v48 = vpack.c.bf16 %v4980_v17, %v4977_v50 }
 0x4c1   :  { %v2286_v12 = vpack.c.bf16 %v4983_v1, %v4974_v51 }
 0x4c3   :  { %v1230_v14 = vpop.f32.mrb[52].mxu1 }
 0x4c4   :  { %v1232_v4 = vpop.f32.mrb[53].mxu1  ;;  %v4993_v61 = vadd.f32 %v1230_v14, %v4910_v57 }
 0x4c5   :  { %v4990_v37 = vadd.f32 %v1232_v4, %v4913_v38  ;;  %v1234_v28 = vpop.f32.mrb[54].mxu1 }
 0x4c6   :  { %v4996_v59 = vadd.f32 %v1234_v28, %v4910_v57  ;;  %v1236_v5 = vpop.f32.mrb[55].mxu1 }
 0x4c7   :  { %v4999_v18 = vadd.f32 %v1236_v5, %v4913_v38 }
 0x4c8   :  { %v2287_v31 = vpack.c.bf16 %v4996_v59, %v4993_v61  ;;  %v2413_v61 = vld [vmem:[%s5198_s13 + $0x38] sm:$0xff] }
 0x4c9   :  { %v2288_v56 = vpack.c.bf16 %v4999_v18, %v4990_v37 }
 0x4cb   :  { %v1240_v7 = vpop.f32.mrb[56].mxu1 }
 0x4cc   :  { %v1242_v52 = vpop.f32.mrb[57].mxu1  ;;  %v5009_v10 = vadd.f32 %v1240_v7, %v4910_v57 }
 0x4cd   :  { %v5006_v2 = vadd.f32 %v1242_v52, %v4913_v38  ;;  %v1244_v20 = vpop.f32.mrb[58].mxu1 }
 0x4ce   :  { %v5012_v46 = vadd.f32 %v1244_v20, %v4910_v57  ;;  %v1246_v9 = vpop.f32.mrb[59].mxu1 }
 0x4cf   :  { %v5015_v13 = vadd.f32 %v1246_v9, %v4913_v38 }
 0x4d0   :  { %v2289_v43 = vpack.c.bf16 %v5012_v46, %v5009_v10  ;;  %v2414_v10 = vld [vmem:[%s5198_s13 + $0x40] sm:$0xff] }
 0x4d1   :  { %v2290_v60 = vpack.c.bf16 %v5015_v13, %v5006_v2  ;;  %v2415_v13 = vld [vmem:[%s5198_s13 + $0x48] sm:$0xff] }
 0x4d3   :  { %v1250_v35 = vpop.f32.mrb[60].mxu1 }
 0x4d4   :  { %v1252_v33 = vpop.f32.mrb[61].mxu1  ;;  %v5025_v53 = vadd.f32 %v1250_v35, %v4910_v57 }
 0x4d5   :  { %v5022_v22 = vadd.f32 %v1252_v33, %v4913_v38  ;;  %v1254_v0 = vpop.f32.mrb[62].mxu1 }
 0x4d6   :  { %v5028_v15 = vadd.f32 %v1254_v0, %v4910_v57  ;;  %v1256_v6 = vpop.f32.mrb[63].mxu1  ;;  %v5044_v57 = vrot.slane %v1824_v42, %v5359_v55 }
 0x4d7   :  { %v5031_v45 = vadd.f32 %v1256_v6, %v4913_v38  ;;  %v5049_v38 = vld [vmem:[%s5199_s14] sm:$0xf] }
 0x4d8   :  { %2750 = vmatprep.subr.mxu0 %v5049_v38  ;;  %v5361_v29 = vpack.c.bf16 %v5028_v15, %v5025_v53 }
 0x4d9   :  { %2751 = vmatpush3.xpose.msra.mxu0 %v5049_v38  ;;  %v5360_v16 = vpack.c.bf16 %v5031_v45, %v5022_v22  ;;  %v2416_v45 = vld [vmem:[%s5198_s13 + $0x50] sm:$0xff] }
 0x4db   :  { %v1870_v27 = vpop.f32.mrb[64].mxu1 }
 0x4dc   :  { %v1872_v14 = vpop.f32.mrb[65].mxu1  ;;  %v1871_v28 = vadd.f32 %v1870_v27, %v5041_v47 }
 0x4dd   :  { %v1874_v4 = vpop.f32.mrb[66].mxu1  ;;  %v1873_v7 = vadd.f32 %v1872_v14, %v5044_v57 }
 0x4de   :  { %v1875_v30 = vadd.f32 %v1874_v4, %v5041_v47  ;;  %v1876_v5 = vpop.f32.mrb[67].mxu1 }
 0x4df   :  { %v1877_v55 = vadd.f32 %v1876_v5, %v5044_v57 }
 0x4e0   :  { %v2293_v52 = vpack.c.bf16 %v1875_v30, %v1871_v28 }
 0x4e1   :  { %v2294_v20 = vpack.c.bf16 %v1877_v55, %v1873_v7 }
 0x4e3   :  { %2309 = vmatprep.subr.bf16.mxu1 %v2294_v20 }
 0x4e4   :  { %v1880_v9 = vpop.f32.mrb[68].mxu1  ;;  %2310 = vmatpush1.bf16.xpose.msra.mxu1 %v2293_v52 }
 0x4e5   :  { %v1882_v35 = vpop.f32.mrb[69].mxu1  ;;  %v1881_v0 = vadd.f32 %v1880_v9, %v5041_v47 }
 0x4e6   :  { %v1884_v33 = vpop.f32.mrb[70].mxu1  ;;  %v1883_v27 = vadd.f32 %v1882_v35, %v5044_v57 }
 0x4e7   :  { %v1885_v6 = vadd.f32 %v1884_v33, %v5041_v47  ;;  %v1886_v42 = vpop.f32.mrb[71].mxu1 }
 0x4e8   :  { %v1887_v4 = vadd.f32 %v1886_v42, %v5044_v57 }
 0x4e9   :  { %v2295_v44 = vpack.c.bf16 %v1885_v6, %v1881_v0 }
 0x4ea   :  { %v2296_v14 = vpack.c.bf16 %v1887_v4, %v1883_v27 }
 0x4ec   :  { %v1890_v58 = vpop.f32.mrb[72].mxu1  ;;  %2311 = vmatprep.subr.bf16.mxu1 %v2296_v14 }
 0x4ed   :  { %v1892_v28 = vpop.f32.mrb[73].mxu1  ;;  %2312 = vmatpush1.bf16.xpose.msra.mxu1 %v2295_v44  ;;  %v1891_v5 = vadd.f32 %v1890_v58, %v5041_v47 }
 0x4ee   :  { %v1894_v30 = vpop.f32.mrb[74].mxu1  ;;  %v1893_v52 = vadd.f32 %v1892_v28, %v5044_v57 }
 0x4ef   :  { %v1895_v7 = vadd.f32 %v1894_v30, %v5041_v47  ;;  %v1896_v55 = vpop.f32.mrb[75].mxu1 }
 0x4f0   :  { %v1897_v20 = vadd.f32 %v1896_v55, %v5044_v57 }
 0x4f1   :  { %v2297_v9 = vpack.c.bf16 %v1895_v7, %v1891_v5 }
 0x4f2   :  { %v2298_v35 = vpack.c.bf16 %v1897_v20, %v1893_v52 }
 0x4f4   :  { %v1900_v33 = vpop.f32.mrb[76].mxu1  ;;  %2313 = vmatprep.subr.bf16.mxu1 %v2298_v35 }
 0x4f5   :  { %v1902_v0 = vpop.f32.mrb[77].mxu1  ;;  %2314 = vmatpush1.bf16.xpose.msra.mxu1 %v2297_v9  ;;  %v1901_v42 = vadd.f32 %v1900_v33, %v5041_v47 }
 0x4f6   :  { %v1904_v6 = vpop.f32.mrb[78].mxu1  ;;  %v1903_v58 = vadd.f32 %v1902_v0, %v5044_v57 }
 0x4f7   :  { %v1905_v44 = vadd.f32 %v1904_v6, %v5041_v47  ;;  %v1906_v27 = vpop.f32.mrb[79].mxu1 }
 0x4f8   :  { %v1907_v4 = vadd.f32 %v1906_v27, %v5044_v57 }
 0x4f9   :  { %v2299_v14 = vpack.c.bf16 %v1905_v44, %v1901_v42 }
 0x4fa   :  { %v2300_v28 = vpack.c.bf16 %v1907_v4, %v1903_v58 }
 0x4fc   :  { %v1910_v30 = vpop.f32.mrb[80].mxu1  ;;  %2315 = vmatprep.subr.bf16.mxu1 %v2300_v28 }
 0x4fd   :  { %v1912_v5 = vpop.f32.mrb[81].mxu1  ;;  %2316 = vmatpush1.bf16.xpose.msra.mxu1 %v2299_v14  ;;  %v1911_v55 = vadd.f32 %v1910_v30, %v5041_v47 }
 0x4fe   :  { %v1914_v7 = vpop.f32.mrb[82].mxu1  ;;  %v1913_v9 = vadd.f32 %v1912_v5, %v5044_v57 }
 0x4ff   :  { %v1915_v52 = vadd.f32 %v1914_v7, %v5041_v47  ;;  %v1916_v20 = vpop.f32.mrb[83].mxu1 }
 0x500   :  { %v1917_v35 = vadd.f32 %v1916_v20, %v5044_v57 }
 0x501   :  { %v2301_v33 = vpack.c.bf16 %v1915_v52, %v1911_v55 }
 0x502   :  { %v2302_v0 = vpack.c.bf16 %v1917_v35, %v1913_v9 }
 0x504   :  { %v1920_v6 = vpop.f32.mrb[84].mxu1  ;;  %2317 = vmatprep.subr.bf16.mxu1 %v2302_v0 }
 0x505   :  { %v1922_v42 = vpop.f32.mrb[85].mxu1  ;;  %2318 = vmatpush1.bf16.xpose.msra.mxu1 %v2301_v33  ;;  %v1921_v27 = vadd.f32 %v1920_v6, %v5041_v47 }
 0x506   :  { %v1924_v44 = vpop.f32.mrb[86].mxu1  ;;  %v1923_v14 = vadd.f32 %v1922_v42, %v5044_v57 }
 0x507   :  { %v1925_v58 = vadd.f32 %v1924_v44, %v5041_v47  ;;  %v1926_v4 = vpop.f32.mrb[87].mxu1 }
 0x508   :  { %v1927_v28 = vadd.f32 %v1926_v4, %v5044_v57 }
 0x509   :  { %v2303_v30 = vpack.c.bf16 %v1925_v58, %v1921_v27 }
 0x50a   :  { %v2304_v5 = vpack.c.bf16 %v1927_v28, %v1923_v14 }
 0x50c   :  { %v1930_v7 = vpop.f32.mrb[88].mxu1  ;;  %2319 = vmatprep.subr.bf16.mxu1 %v2304_v5 }
 0x50d   :  { %v1932_v55 = vpop.f32.mrb[89].mxu1  ;;  %2320 = vmatpush1.bf16.xpose.msra.mxu1 %v2303_v30  ;;  %v1931_v20 = vadd.f32 %v1930_v7, %v5041_v47 }
 0x50e   :  { %v1934_v52 = vpop.f32.mrb[90].mxu1  ;;  %v1933_v33 = vadd.f32 %v1932_v55, %v5044_v57 }
 0x50f   :  { %v1935_v9 = vadd.f32 %v1934_v52, %v5041_v47  ;;  %v1936_v35 = vpop.f32.mrb[91].mxu1 }
 0x510   :  { %v1937_v0 = vadd.f32 %v1936_v35, %v5044_v57 }
 0x511   :  { %v2305_v6 = vpack.c.bf16 %v1935_v9, %v1931_v20 }
 0x512   :  { %v2306_v42 = vpack.c.bf16 %v1937_v0, %v1933_v33  ;;  %v2418_v0 = vld [vmem:[%s5198_s13 + $0x60] sm:$0xff] }
 0x514   :  { %v1940_v44 = vpop.f32.mrb[92].mxu1  ;;  %2321 = vmatprep.subr.bf16.mxu1 %v2306_v42  ;;  %v2419_v42 = vld [vmem:[%s5198_s13 + $0x68] sm:$0xff] }
 0x515   :  { %v1942_v27 = vpop.f32.mrb[93].mxu1  ;;  %2322 = vmatpush1.bf16.xpose.msra.mxu1 %v2305_v6  ;;  %v1941_v4 = vadd.f32 %v1940_v44, %v5041_v47 }
 0x516   :  { %v1944_v58 = vpop.f32.mrb[94].mxu1  ;;  %v1943_v30 = vadd.f32 %v1942_v27, %v5044_v57 }
 0x517   :  { %v1945_v14 = vadd.f32 %v1944_v58, %v5041_v47  ;;  %v1946_v28 = vpop.f32.mrb[95].mxu1 }
 0x518   :  { %v1947_v5 = vadd.f32 %v1946_v28, %v5044_v57  ;;  %v2417_v57 = vld [vmem:[%s5198_s13 + $0x58] sm:$0xff]  ;;  %v2420_v28 = vld [vmem:[%s5198_s13 + $0x70] sm:$0xff] }
 0x519   :  { %v2307_v7 = vpack.c.bf16 %v1945_v14, %v1941_v4 }
 0x51a   :  { %v2308_v55 = vpack.c.bf16 %v1947_v5, %v1943_v30  ;;  %v2421_v5 = vld [vmem:[%s5198_s13 + $0x78] sm:$0xff] }
 0x51c   :  { %2323 = vmatprep.subr.bf16.mxu1 %v2308_v55 }
 0x51d   :  { %2324 = vmatpush1.bf16.xpose.msra.mxu1 %v2307_v7 }
 0x524   :  { %2342 = vmatmul.mubr.bf16.vlgmr.msra.gmra.mrb[96].mxu1 %v2277_v62  ;;  %v2406_v62 = vld [vmem:[%s5198_s13] sm:$0xff] }
 0x525   :  { %2349 = vmatprep.mubr.bf16.mxu1 %v2280_v32 }
 0x52c   :  { %2350 = vmatmul.mubr.bf16.gmra.mrb[100].mxu1 %v2279_v3 }
 0x52d   :  { %2357 = vmatprep.mubr.bf16.mxu1 %v2282_v41 }
 0x534   :  { %2358 = vmatmul.mubr.bf16.gmra.mrb[104].mxu1 %v2281_v8 }
 0x535   :  { %2365 = vmatprep.mubr.bf16.mxu1 %v2284_v23  ;;  %v2411_v23 = vld [vmem:[%s5198_s13 + $0x28] sm:$0xff] }
 0x53c   :  { %2366 = vmatmul.mubr.bf16.gmra.mrb[108].mxu1 %v2283_v19 }
 0x53d   :  { %2373 = vmatprep.mubr.bf16.mxu1 %v2286_v12  ;;  %v2412_v12 = vld [vmem:[%s5198_s13 + $0x30] sm:$0xff] }
 0x544   :  { %2374 = vmatmul.mubr.bf16.gmra.mrb[112].mxu1 %v2285_v48 }
 0x545   :  { %2381 = vmatprep.mubr.bf16.mxu1 %v2288_v56 }
 0x54c   :  { %2382 = vmatmul.mubr.bf16.gmra.mrb[116].mxu1 %v2287_v31 }
 0x54d   :  { %2389 = vmatprep.mubr.bf16.mxu1 %v2290_v60 }
 0x554   :  { %2390 = vmatmul.mubr.bf16.gmra.mrb[120].mxu1 %v2289_v43 }
 0x555   :  { %2397 = vmatprep.mubr.bf16.mxu1 %v5360_v16 }
 0x55c   :  { %2398 = vmatmul.mubr.bf16.gmra.mrb[124].mxu1 %v5361_v29 }
 0x5f7   :  { %v2343_v63 = vpop.f32.mrb[96].mxu1 }
 0x5f8   :  { %v2422_v40 = vmul.f32 %v2406_v62, %v2343_v63  ;;  %v2345_v25 = vpop.f32.mrb[97].mxu1  ;;  %v3143_v63 = vmov 0.0|0.0  }
 0x5f9   :  { %v2346_v3 = vpop.f32.mrb[98].mxu1  ;;  %2811 = vmatprep.subr.bf16.mxu1 %v3143_v63 }
 0x5fa   :  { %v2423_v32 = vmul.f32 %v2407_v39, %v2346_v3  ;;  %v2348_v54 = vpop.f32.mrb[99].mxu1  ;;  %2752 = vmatprep.mubr.f32.mxu0 %v2422_v40  ;;  %v3145_v39 = vmov 0.0  }
 0x5fb   :  { %2808 = vmatprep.mubr.msk.f32.mxu1 %vm3144_vm0, %v3145_v39 }
 0x5fc   :  { %2753 = vmatmul.mubr.f32.vlgmr.msra.gmra.mrb[128].mxu0 %v2423_v32 }
 0x5ff   :  { %v2351_v49 = vpop.f32.mrb[100].mxu1 }
 0x600   :  { %v2424_v8 = vmul.f32 %v2408_v24, %v2351_v49  ;;  %v2353_v41 = vpop.f32.mrb[101].mxu1 }
 0x601   :  { %v2354_v36 = vpop.f32.mrb[102].mxu1 }
 0x602   :  { %v2425_v11 = vmul.f32 %v2409_v34, %v2354_v36  ;;  %v2356_v26 = vpop.f32.mrb[103].mxu1  ;;  %2755 = vmatprep.mubr.f32.mxu0 %v2424_v8 }
 0x604   :  { %2756 = vmatmul.mubr.f32.gmra.mrb[130].mxu0 %v2425_v11 }
 0x607   :  { %v2359_v19 = vpop.f32.mrb[104].mxu1 }
 0x608   :  { %v2426_v51 = vmul.f32 %v2410_v21, %v2359_v19  ;;  %v2361_v50 = vpop.f32.mrb[105].mxu1 }
 0x609   :  { %v2362_v17 = vpop.f32.mrb[106].mxu1 }
 0x60a   :  { %v2427_v1 = vmul.f32 %v2411_v23, %v2362_v17  ;;  %v2364_v48 = vpop.f32.mrb[107].mxu1  ;;  %2758 = vmatprep.mubr.f32.mxu0 %v2426_v51 }
 0x60c   :  { %2759 = vmatmul.mubr.f32.gmra.mrb[132].mxu0 %v2427_v1 }
 0x60f   :  { %v2367_v37 = vpop.f32.mrb[108].mxu1 }
 0x610   :  { %v2428_v59 = vmul.f32 %v2412_v12, %v2367_v37  ;;  %v2369_v18 = vpop.f32.mrb[109].mxu1 }
 0x611   :  { %v2370_v31 = vpop.f32.mrb[110].mxu1 }
 0x612   :  { %v2429_v56 = vmul.f32 %v2413_v61, %v2370_v31  ;;  %v2372_v2 = vpop.f32.mrb[111].mxu1  ;;  %2761 = vmatprep.mubr.f32.mxu0 %v2428_v59  ;;  %v5362_v59 = vlaneseq  ;;  %v5363_v31 = vld [vmem:[#allocation15_spill] sm:$0xff] }
 0x614   :  { %2762 = vmatmul.mubr.f32.gmra.mrb[134].mxu0 %v2429_v56  ;;  %v2670_v18 = vand.u32 127, %v5362_v59 }
 0x616   :  { %vm2671_vm2 = vcmp.eq.s32.totalorder %v5363_v31, %v2670_v18 }
 0x617   :  { %v2375_v46 = vpop.f32.mrb[112].mxu1 }
 0x618   :  { %v2430_v43 = vmul.f32 %v2414_v10, %v2375_v46  ;;  %v2377_v60 = vpop.f32.mrb[113].mxu1 }
 0x619   :  { %v2378_v22 = vpop.f32.mrb[114].mxu1 }
 0x61a   :  { %v2431_v53 = vmul.f32 %v2415_v13, %v2378_v22  ;;  %v2380_v15 = vpop.f32.mrb[115].mxu1  ;;  %2764 = vmatprep.mubr.f32.mxu0 %v2430_v43 }
 0x61c   :  { %2765 = vmatmul.mubr.f32.gmra.mrb[136].mxu0 %v2431_v53 }
 0x61f   :  { %v2383_v47 = vpop.f32.mrb[116].mxu1 }
 0x620   :  { %v2432_v52 = vmul.f32 %v2416_v45, %v2383_v47  ;;  %v2385_v20 = vpop.f32.mrb[117].mxu1 }
 0x621   :  { %v2386_v9 = vpop.f32.mrb[118].mxu1 }
 0x622   :  { %v2433_v35 = vmul.f32 %v2417_v57, %v2386_v9  ;;  %v2388_v33 = vpop.f32.mrb[119].mxu1  ;;  %2767 = vmatprep.mubr.f32.mxu0 %v2432_v52 }
 0x624   :  { %2768 = vmatmul.mubr.f32.gmra.mrb[138].mxu0 %v2433_v35 }
 0x627   :  { %v2391_v6 = vpop.f32.mrb[120].mxu1 }
 0x628   :  { %v2434_v44 = vmul.f32 %v2418_v0, %v2391_v6  ;;  %v2393_v27 = vpop.f32.mrb[121].mxu1 }
 0x629   :  { %v2394_v58 = vpop.f32.mrb[122].mxu1 }
 0x62a   :  { %v2435_v4 = vmul.f32 %v2419_v42, %v2394_v58  ;;  %v2396_v14 = vpop.f32.mrb[123].mxu1  ;;  %2770 = vmatprep.mubr.f32.mxu0 %v2434_v44 }
 0x62c   :  { %2771 = vmatmul.mubr.f32.gmra.mrb[140].mxu0 %v2435_v4 }
 0x62f   :  { %v2399_v30 = vpop.f32.mrb[124].mxu1 }
 0x630   :  { %v2436_v7 = vmul.f32 %v2420_v28, %v2399_v30  ;;  %v2401_v55 = vpop.f32.mrb[125].mxu1 }
 0x631   :  { %v2402_v16 = vpop.f32.mrb[126].mxu1 }
 0x632   :  { %v2437_v29 = vmul.f32 %v2421_v5, %v2402_v16  ;;  %v2404_v62 = vpop.f32.mrb[127].mxu1  ;;  %2773 = vmatprep.mubr.f32.mxu0 %v2436_v7 }
 0x634   :  { %2774 = vmatmul.mubr.f32.gmra.mrb[142].mxu0 %v2437_v29 }
 0x6cf   :  { %v2754_v40 = vpop.f32.mrb[128].mxu0 }
 0x6d0   :  { %v2505_v25 = vpop.f32.mrb[129].mxu0 }
 0x6d1   :  { %v2812_v3 = vpack.c.bf16 %v2754_v40, %v2505_v25 }
 0x6d3   :  { %2813 = vmatpush3.bf16.msra.mxu1 %v2812_v3 }
 0x6d4   :  { %2814 = vmatprep.subr.bf16.mxu1 %v3143_v63 }
 0x6d7   :  { %v2757_v32 = vpop.f32.mrb[130].mxu0 }
 0x6d8   :  { %v2515_v54 = vpop.f32.mrb[131].mxu0 }
 0x6d9   :  { %v2815_v24 = vpack.c.bf16 %v2757_v32, %v2515_v54 }
 0x6db   :  { %2816 = vmatpush3.bf16.msra.mxu1 %v2815_v24 }
 0x6dc   :  { %2817 = vmatprep.subr.bf16.mxu1 %v3143_v63 }
 0x6df   :  { %v2760_v49 = vpop.f32.mrb[132].mxu0 }
 0x6e0   :  { %v2525_v34 = vpop.f32.mrb[133].mxu0 }
 0x6e1   :  { %v2818_v8 = vpack.c.bf16 %v2760_v49, %v2525_v34 }
 0x6e3   :  { %2819 = vmatpush3.bf16.msra.mxu1 %v2818_v8 }
 0x6e4   :  { %2820 = vmatprep.subr.bf16.mxu1 %v3143_v63 }
 0x6e7   :  { %v2763_v41 = vpop.f32.mrb[134].mxu0 }
 0x6e8   :  { %v2535_v36 = vpop.f32.mrb[135].mxu0 }
 0x6e9   :  { %v2821_v11 = vpack.c.bf16 %v2763_v41, %v2535_v36 }
 0x6eb   :  { %2822 = vmatpush3.bf16.msra.mxu1 %v2821_v11 }
 0x6ec   :  { %2823 = vmatprep.subr.bf16.mxu1 %v3143_v63 }
 0x6ef   :  { %v2766_v26 = vpop.f32.mrb[136].mxu0 }
 0x6f0   :  { %v2545_v21 = vpop.f32.mrb[137].mxu0 }
 0x6f1   :  { %v2824_v19 = vpack.c.bf16 %v2766_v26, %v2545_v21 }
 0x6f3   :  { %2825 = vmatpush3.bf16.msra.mxu1 %v2824_v19 }
 0x6f4   :  { %2826 = vmatprep.subr.bf16.mxu1 %v3143_v63 }
 0x6f7   :  { %v2769_v23 = vpop.f32.mrb[138].mxu0 }
 0x6f8   :  { %v2555_v51 = vpop.f32.mrb[139].mxu0 }
 0x6f9   :  { %v2827_v50 = vpack.c.bf16 %v2769_v23, %v2555_v51 }
 0x6fb   :  { %2828 = vmatpush3.bf16.msra.mxu1 %v2827_v50 }
 0x6fc   :  { %2829 = vmatprep.subr.bf16.mxu1 %v3143_v63 }
 0x6ff   :  { %v2772_v17 = vpop.f32.mrb[140].mxu0 }
 0x700   :  { %v2565_v1 = vpop.f32.mrb[141].mxu0 }
 0x701   :  { %v2830_v48 = vpack.c.bf16 %v2772_v17, %v2565_v1 }
 0x703   :  { %2831 = vmatpush3.bf16.msra.mxu1 %v2830_v48 }
 0x704   :  { %2832 = vmatprep.subr.bf16.mxu1 %v3143_v63 }
 0x707   :  { %v2775_v12 = vpop.f32.mrb[142].mxu0 }
 0x708   :  { %v2575_v37 = vpop.f32.mrb[143].mxu0 }
 0x709   :  { %v2833_v61 = vpack.c.bf16 %v2775_v12, %v2575_v37 }
 0x70b   :  { %2834 = vmatpush3.bf16.msra.mxu1 %v2833_v61 }
 0x70e   :  { %2809 = vmatmul.mubr.f32.vlgmr.msra.gmra.mrb[128].mxu1 %v5049_v38  ;;  %v5364_v38 = vld [vmem:[#allocation46_spill] sm:$0xff] }
 0x7e1   :  { %v2650_v56 = vpop.f32.mrb[128].mxu1 }
 0x7e2   :  { %v2655_v2 = vsel %vm2654_vm1, %v2650_v56, -inf  ;;  %v2810_v10 = vpop.f32.mrb[129].mxu1  ;;  %v2672_v46 = vsel %vm2671_vm2, %v2650_v56, 0.0 }
 0x7e3   :  { %2656 = vmax.xlane.f32.xlu0 %v2655_v2  ;;  %v2673_v13 = vsel %vm2654_vm1, %v2672_v46, 0.0 }
 0x7e7   :  { %2674 = vadd.xlane.f32.xlu0 %v2673_v13 }
 0x870   :  { %v2657_v43 = vpop.xlane.xlu0 %2656 }
 0x871   :  { %v2658_v60 = vsub.f32 %v2650_v56, %v2657_v43 }
 0x873   :  { %v2659_v22 = vmul.f32 1.442695, %v2658_v60 }
 0x874   :  { %v2675_v42 = vpop.xlane.xlu0 %2674 }
 0x875   :  { %2993 = vpow2.f32 %v2659_v22 }
 0x87f   :  { %v2994_v53 = vpop.eup %2993 }
 0x880   :  { %v2661_v15 = vsel %vm2654_vm1, %v2994_v53, 0.0 }
 0x881   :  { %2662 = vadd.xlane.f32.xlu1 %v2661_v15 }
 0x885   :  { %2265 = vadd.xlane.f32.xlu1 %v5364_v38 }
 0x90e   :  { %v2663_v45 = vpop.xlane.xlu1 %2662 }
 0x90f   :  { %2995 = vlog2.f32 %v2663_v45 }
 0x912   :  { %v2266_v47 = vpop.xlane.xlu1 %2265 }
 0x913   :  { %v2267_v57 = vrot.slane %v2266_v47, 4 }
 0x915   :  { %v2268_v52 = vadd.f32 %v2267_v57, %v2266_v47 }
 0x917   :  { %v2269_v20 = vrot.slane %v2268_v52, 2 }
 0x919   :  { %v2996_v9 = vpop.eup %2995  ;;  %v2270_v35 = vadd.f32 %v2269_v20, %v2268_v52 }
 0x91a   :  { %v2665_v33 = vmul.f32 0.6931472, %v2996_v9 }
 0x91b   :  { %v2271_v0 = vrot.slane %v2270_v35, 1 }
 0x91c   :  { %v2666_v6 = vadd.f32 %v2665_v33, %v2657_v43 }
 0x91d   :  { %v2272_v44 = vadd.f32 %v2271_v0, %v2270_v35 }
 0x91e   :  { %v2676_v27 = vsub.f32 %v2666_v6, %v2675_v42 }
 0x91f   :  { %2835 = vpush %v2272_v44 }
 0x920   :  { %v2678_v58 = vsel %vm2677_vm3, %v2676_v27, 0.0 }
 0x921   :  { %2679 = vadd.xlane.f32.xlu0 %v2678_v58 }
 0x950   :  { %s2836_s13 = spop %2835 }
 0x951   :  { %s2276_s3 = smul.f32 3.0517578e-05, %s2836_s13 }
 0x953   :  { %2692 = sst [smem:[#allocation10]] %s2276_s3 }
 0x9ae   :  { %v2680_v4 = vpop.xlane.xlu0 %2679 }
 0x9af   :  { %v2681_v14 = vrot.slane %v2680_v4, 4 }
 0x9b1   :  { %v2682_v28 = vadd.f32 %v2681_v14, %v2680_v4 }
 0x9b3   :  { %v2683_v30 = vrot.slane %v2682_v28, 2 }
 0x9b5   :  { %v2684_v5 = vadd.f32 %v2683_v30, %v2682_v28 }
 0x9b7   :  { %v2685_v7 = vrot.slane %v2684_v5, 1 }
 0x9b9   :  { %v2686_v55 = vadd.f32 %v2685_v7, %v2684_v5 }
 0x9bb   :  { %2837 = vpush %v2686_v55 }
 0x9ec   :  { %s2838_s1 = spop %2837 }
 0x9ed   :  { %s2690_s6 = smul.f32 0.25, %s2838_s1 }
 0x9ef   :  { %2694 = sst [smem:[#allocation10 + $0x1]] %s2690_s6 }
 0x9f0   :  { %s2695_s4 = sadd.f32 %s2690_s6, %s2276_s3 }
 0x9f2   :  { %2697 = sst [smem:[#allocation10 + $0x2]] %s2695_s4 }
 0x9f3   :  { %3128 = shalt.err (!%p3125_p8)
}
 0x9f4   :  { %s3146_s20 = smov [#allocation10]  }
 0x9f5   :  { %2707 = dma.smem_to_vmem %s3146_s20, 16, %s2705_s2, [#allocation4]  }
 0x9f6   :  { %3135 = dma.done.wait [#allocation4], 16  }
 0x9f7   :  { %3136 = vsyncadd [#allocation4], 4294967280 }
 0x9f8   :  { %2711 = sfence }
 0x9f9   :  { %2712 = vsyncpa [#allocation3], 1 }
 0x9fa   :  { %2713 = vsyncpa [#allocation6], 1 }
 0x9fb   :  { %2714 = vsyncpa [#allocation9], 1 }
 0x9fc   :  { %2715 = vsyncpa [#allocation4], 1 }

</bundles_post_ra>
